<compile_context>
chip_gen: v5e
topology: v5e:2x2
jax: 0.10.0
libtpu: 0.0.40
codegen_flags: <defaults>
</compile_context>

<pallas_src>
import jax
import jax.numpy as jnp
from jax.experimental import pallas as pl
from jax.experimental.pallas import tpu as pltpu


def _round_up(v, m):
    return ((v + m - 1) // m) * m


def _default_num_splits():
    # v7x has 2 TensorCores per chip -> shard the outer "parallel" grid axis.
    # v5e / v6e are single-TC: a split would only double step overhead there.
    try:
        kind = jax.devices()[0].device_kind.lower()
    except Exception:
        return 1
    return 2 if "v7" in kind else 1


def gmm_full_nll(x, logits, mus, scale_tril, *, tile_n=4096, num_splits=None,
                 compute_dtype=jnp.float32):
    """Pallas-backed equivalent of GmmFull.forward(x).

    compute_dtype=jnp.bfloat16 streams x / W at half HBM bandwidth (native
    bf16 MXU on v6e/v7x); post-matmul math stays f32.  Default f32 gives
    exact parity with the reference.
    """
    n, d = x.shape
    k = logits.shape[0]
    assert d <= 128, "packed layout requires num_dims <= 128"
    if num_splits is None:
        num_splits = _default_num_splits()

    x = x.astype(jnp.float32)
    mus = mus.astype(jnp.float32)
    scale_tril = scale_tril.astype(jnp.float32)

    # --- parameter-side glue (O(K*D^2) / O(K^2 * 128^2 / D); no per-sample work)
    eye = jnp.eye(d, dtype=jnp.float32)
    linv = jax.vmap(
        lambda L: jax.scipy.linalg.solve_triangular(L, eye, lower=True)
    )(scale_tril)                                                   # (K, D, D)

    kd = k * d
    p_pack = 128 // d            # samples packed per lane-dense x row
    row_w = p_pack * d           # used lanes per packed row (<= 128)
    ycols = p_pack * kd          # y columns, ordered (sample, comp, dim)
    ycols_pad = _round_up(ycols, 128)
    lcols = k * p_pack           # logp columns, component-major (comp, sample)

    # W_small[d, k*D+e] = Linv[k, e, d]; block-diagonal replicate over P slots.
    w_small = jnp.transpose(linv, (2, 0, 1)).reshape(d, kd)
    w_big = jnp.kron(jnp.eye(p_pack, dtype=jnp.float32), w_small)   # (P*d, P*KD)
    w_big = jnp.zeros((128, ycols_pad), jnp.float32).at[:row_w, :ycols].set(w_big)
    w_big = w_big.astype(compute_dtype)

    # b[(s,k,e)] = (Linv_k @ mu_k)_e  (bias-folded mean), tiled over P slots.
    b_comp = jnp.einsum("kd,ked->ke", mus, linv)                    # (K, D)
    b_big = jnp.tile(b_comp.reshape(-1), p_pack)                    # (P*KD,)
    b_big = jnp.zeros((1, ycols_pad), jnp.float32).at[0, :ycols].set(b_big)

    # (-0.5)-scaled block selector: logp_maha = (y*y) @ sel, component-major out.
    sel_small = jnp.repeat(jnp.eye(k, dtype=jnp.float32), d, axis=0)   # (KD, K)
    sel = -0.5 * jnp.einsum("jc,st->sjct", sel_small,
                            jnp.eye(p_pack, dtype=jnp.float32))
    sel = sel.reshape(p_pack * kd, lcols)
    sel = jnp.zeros((ycols_pad, lcols), jnp.float32).at[:ycols, :].set(sel)

    half_log_det = jnp.sum(
        jnp.log(jnp.diagonal(scale_tril, axis1=-2, axis2=-1)), axis=-1)   # (K,)
    log_mix = jax.nn.log_softmax(logits.astype(jnp.float32))              # (K,)
    const = log_mix - half_log_det - 0.5 * d * jnp.log(2.0 * jnp.pi)      # (K,)
    c_big = jnp.repeat(const, p_pack).reshape(1, lcols)                   # comp-major

    # --- N tiling over packed rows (all sizes multiples of 8 sublanes) -------
    n_rows = pl.cdiv(n, p_pack)
    tile_rows = max(8, _round_up(max(tile_n // p_pack, 1), 8))
    rows_per_split = _round_up(pl.cdiv(n_rows, num_splits), 8)
    tile_rows = min(tile_rows, rows_per_split)
    tiles_per_split = pl.cdiv(rows_per_split, tile_rows)
    n_rows_pad = num_splits * tiles_per_split * tile_rows
    n_samples_pad = n_rows_pad * p_pack

    x_in = x.astype(compute_dtype)
    if n_samples_pad != n:
        x_in = jnp.pad(x_in, ((0, n_samples_pad - n), (0, 0)))
    x_in = x_in.reshape(n_rows_pad, row_w)
    if row_w != 128:
        x_in = jnp.pad(x_in, ((0, 0), (0, 128 - row_w)))

    def kernel(x_ref, w_ref, b_ref, s_ref, c_ref, out_ref, acc_ref):
        i = pl.program_id(1)

        @pl.when(i == 0)
        def _init():
            acc_ref[...] = jnp.zeros_like(acc_ref)

        # One lane-dense, 128-deep MXU pass: all K components, P packed samples.
        y = jnp.dot(x_ref[...], w_ref[...],
                    preferred_element_type=jnp.float32) - b_ref[...]   # (rows, ycols_pad)
        # (-0.5 * Mahalanobis) via the scaled block selector (MXU) + constants.
        logp = jnp.dot(y * y, s_ref[...],
                       preferred_element_type=jnp.float32) + c_ref[...]  # (rows, K*P)

        # Grouped logsumexp over components: component kk lives in lanes
        # [kk*P, (kk+1)*P); each packed sample s is lane kk*P + s.
        m = logp[:, 0:p_pack]
        for kk in range(1, k):
            m = jnp.maximum(m, logp[:, kk * p_pack:(kk + 1) * p_pack])
        ssum = jnp.exp(logp[:, 0:p_pack] - m)
        for kk in range(1, k):
            ssum = ssum + jnp.exp(logp[:, kk * p_pack:(kk + 1) * p_pack] - m)

        # Deferred reduction: plain VPU add into (tile_rows, P); the scalar
        # reduce happens once in the finalize branch.
        acc_ref[...] += m + jnp.log(ssum)

        @pl.when(i == pl.num_programs(1) - 1)
        def _finalize():
            out_ref[...] = jnp.broadcast_to(
                jnp.sum(acc_ref[...], keepdims=True), out_ref.shape)

    out = pl.pallas_call(
        kernel,
        out_shape=jax.ShapeDtypeStruct((num_splits * 8, 128), jnp.float32),
        grid_spec=pltpu.PrefetchScalarGridSpec(
            num_scalar_prefetch=0,
            grid=(num_splits, tiles_per_split),
            in_specs=[
                # x streams per tile; small params stay resident (constant block idx).
                pl.BlockSpec((tile_rows, 128),
                             lambda c, i: (c * tiles_per_split + i, 0)),
                pl.BlockSpec((128, ycols_pad), lambda c, i: (0, 0)),
                pl.BlockSpec((1, ycols_pad), lambda c, i: (0, 0)),
                pl.BlockSpec((ycols_pad, lcols), lambda c, i: (0, 0)),
                pl.BlockSpec((1, lcols), lambda c, i: (0, 0)),
            ],
            out_specs=pl.BlockSpec((8, 128), lambda c, i: (c, 0)),
            scratch_shapes=[pltpu.VMEM((tile_rows, p_pack), jnp.float32)],
        ),
        compiler_params=pltpu.CompilerParams(
            dimension_semantics=("parallel", "arbitrary"),
            vmem_limit_bytes=32 * 1024 * 1024,
        ),
    )(x_in, w_big, b_big, sel, c_big)

    kernel_sum = jnp.sum(out.reshape(num_splits, 8, 128)[:, 0, 0])

    # Analytic correction for zero-padded samples (keeps masking out of the
    # hot loop): each padded sample contributes logsumexp_k(logp(x=0)).
    logp0 = -0.5 * jnp.sum(b_comp * b_comp, axis=-1) + const            # (K,)
    lse_pad = jax.scipy.special.logsumexp(logp0)
    total = kernel_sum - (n_samples_pad - n) * lse_pad
    return -total / jnp.float32(n)


def gmm_full_nll_ref(x, logits, mus, scale_tril):
    """Pure-JAX reference (mirrors torch MixtureSameFamily(MVN).log_prob)."""
    n, d = x.shape
    eye = jnp.eye(d, dtype=jnp.float32)
    linv = jax.vmap(
        lambda L: jax.scipy.linalg.solve_triangular(L, eye, lower=True)
    )(scale_tril)
    diff = x[:, None, :] - mus[None, :, :]                              # (N, K, D)
    y = jnp.einsum("nkd,ked->nke", diff, linv)
    maha = jnp.sum(y * y, axis=-1)                                      # (N, K)
    half_log_det = jnp.sum(
        jnp.log(jnp.diagonal(scale_tril, axis1=-2, axis2=-1)), axis=-1)
    logp = (-0.5 * (maha + d * jnp.log(2.0 * jnp.pi))
            - half_log_det[None, :]
            + jax.nn.log_softmax(logits)[None, :])
    lse = jax.scipy.special.logsumexp(logp, axis=1)
    return -jnp.mean(lse)


def make_random_scale_trils(key, num_components, num_dims):
    """Deterministic stand-in for torch make_random_scale_trils:
    lower-triangular with strictly positive diagonal."""
    k_diag, k_off = jax.random.split(key)
    diag = jax.random.uniform(
        k_diag, (num_components, num_dims), minval=0.5, maxval=1.5,
        dtype=jnp.float32)
    off = 0.1 * jax.random.normal(
        k_off, (num_components, num_dims, num_dims), dtype=jnp.float32)
    tril = jnp.tril(off, k=-1) + jnp.eye(num_dims, dtype=jnp.float32) * diag[:, None, :]
    return tril


if __name__ == "__main__":
    num_components = 4
    num_dims = 8
    num_samples = 4000            # not a tile multiple -> exercises pad correction
    init_radius = 1.0

    key = jax.random.PRNGKey(0)
    k_x, k_mu, k_tril = jax.random.split(key, 3)

    logits = jnp.zeros((num_components,), dtype=jnp.float32)
    mus = jax.random.uniform(
        k_mu, (num_components, num_dims),
        minval=-init_radius, maxval=init_radius, dtype=jnp.float32)
    scale_tril = make_random_scale_trils(k_tril, num_components, num_dims)
    x = jax.random.normal(k_x, (num_samples, num_dims), dtype=jnp.float32)

    nll_ref = jax.block_until_ready(gmm_full_nll_ref(x, logits, mus, scale_tril))

    # Default f32 path: big tile (single grid step here), split chosen per chip.
    nll = jax.block_until_ready(gmm_full_nll(x, logits, mus, scale_tril))
    assert jnp.isfinite(nll), "kernel produced non-finite NLL"
    assert jnp.allclose(nll, nll_ref, rtol=1e-5, atol=1e-5), (nll, nll_ref)

    # Multi-step / multi-split path (exercises accumulator init/finalize).
    nll_ms = jax.block_until_ready(
        gmm_full_nll(x, logits, mus, scale_tril, tile_n=512, num_splits=2))
    assert jnp.allclose(nll_ms, nll_ref, rtol=1e-5, atol=1e-5), (nll_ms, nll_ref)

    # bf16 streaming of x / W (halves HBM bytes on v6e/v7x); post-matmul math f32.
    nll_bf16 = jax.block_until_ready(
        gmm_full_nll(x, logits, mus, scale_tril, compute_dtype=jnp.bfloat16))
    assert jnp.isfinite(nll_bf16), "bf16 kernel produced non-finite NLL"
    assert jnp.allclose(nll_bf16, nll_ref, rtol=5e-2, atol=5e-2), (nll_bf16, nll_ref)

    print("KERNEL_OK")
</pallas_src>

<mosaic_0001>
module attributes {stable_mosaic.version = 11 : i64} {
  func.func @kernel(%arg0: i32, %arg1: i32, %arg2: memref<256x128xf32, #tpu.memory_space<vmem>>, %arg3: memref<128x512xf32, #tpu.memory_space<vmem>>, %arg4: memref<1x512xf32, #tpu.memory_space<vmem>>, %arg5: memref<512x64xf32, #tpu.memory_space<vmem>>, %arg6: memref<1x64xf32, #tpu.memory_space<vmem>>, %arg7: memref<8x128xf32, #tpu.memory_space<vmem>>, %arg8: memref<256x16xf32, #tpu.memory_space<vmem>>) attributes {dimension_semantics = [#tpu.dimension_semantics<parallel>, #tpu.dimension_semantics<arbitrary>], iteration_bounds = array<i64: 1, 1>, scalar_prefetch = 0 : i64, scratch_operands = 1 : i64, tpu.core_type = #tpu.core_type<tc>, window_params = [{transform_indices = @transform_0, window_bounds = array<i64: 256, 128>}, {pipeline_mode = #tpu.pipeline_mode<synchronous>, transform_indices = @transform_1, window_bounds = array<i64: 128, 512>}, {pipeline_mode = #tpu.pipeline_mode<synchronous>, transform_indices = @transform_2, window_bounds = array<i64: 1, 512>}, {pipeline_mode = #tpu.pipeline_mode<synchronous>, transform_indices = @transform_3, window_bounds = array<i64: 512, 64>}, {pipeline_mode = #tpu.pipeline_mode<synchronous>, transform_indices = @transform_4, window_bounds = array<i64: 1, 64>}, {transform_indices = @transform_5, window_bounds = array<i64: 8, 128>}]} {
    %c0_i32 = arith.constant 0 : i32
    %0 = arith.cmpi eq, %arg1, %c0_i32 : i32
    %1 = arith.extui %0 : i1 to i32
    %c0_i32_0 = arith.constant 0 : i32
    %2 = arith.cmpi ne, %1, %c0_i32_0 : i32
    scf.if %2 {
      %cst_17 = arith.constant 0.000000e+00 : f32
      %45 = vector.broadcast %cst_17 : f32 to vector<256x16xf32>
      %c0_18 = arith.constant 0 : index
      %c0_19 = arith.constant 0 : index
      %46 = vector.load %arg8[%c0_18, %c0_19] : memref<256x16xf32, #tpu.memory_space<vmem>>, vector<256x16xf32>
      tpu.vector_store %arg8[%c0_18, %c0_19], %45 {strides = array<i32>} : memref<256x16xf32, #tpu.memory_space<vmem>>, vector<256x16xf32>,
    } else {
    }
    %c0 = arith.constant 0 : index
    %c0_1 = arith.constant 0 : index
    %3 = vector.load %arg2[%c0, %c0_1] : memref<256x128xf32, #tpu.memory_space<vmem>>, vector<256x128xf32>
    %c0_2 = arith.constant 0 : index
    %c0_3 = arith.constant 0 : index
    %4 = vector.load %arg3[%c0_2, %c0_3] : memref<128x512xf32, #tpu.memory_space<vmem>>, vector<128x512xf32>
    %cst = arith.constant dense<0.000000e+00> : vector<256x512xf32>
    %5 = tpu.matmul %3, %4, %cst {dimension_numbers = #tpu.dot_dimension_numbers<[1], [0], [0], [1], [0, 0, 1, 1], [], []>} : vector<256x128xf32>, vector<128x512xf32>, vector<256x512xf32> -> vector<256x512xf32>
    %c0_4 = arith.constant 0 : index
    %c0_5 = arith.constant 0 : index
    %6 = vector.load %arg4[%c0_4, %c0_5] : memref<1x512xf32, #tpu.memory_space<vmem>>, vector<1x512xf32>
    %7 = vector.broadcast %6 : vector<1x512xf32> to vector<256x512xf32>
    %8 = arith.subf %5, %7 : vector<256x512xf32>
    %9 = arith.mulf %8, %8 : vector<256x512xf32>
    %c0_6 = arith.constant 0 : index
    %c0_7 = arith.constant 0 : index
    %10 = vector.load %arg5[%c0_6, %c0_7] : memref<512x64xf32, #tpu.memory_space<vmem>>, vector<512x64xf32>
    %cst_8 = arith.constant dense<0.000000e+00> : vector<256x64xf32>
    %11 = tpu.matmul %9, %10, %cst_8 {dimension_numbers = #tpu.dot_dimension_numbers<[1], [0], [0], [1], [0, 0, 1, 1], [], []>} : vector<256x512xf32>, vector<512x64xf32>, vector<256x64xf32> -> vector<256x64xf32>
    %c0_9 = arith.constant 0 : index
    %c0_10 = arith.constant 0 : index
    %12 = vector.load %arg6[%c0_9, %c0_10] : memref<1x64xf32, #tpu.memory_space<vmem>>, vector<1x64xf32>
    %13 = vector.broadcast %12 : vector<1x64xf32> to vector<256x64xf32>
    %14 = arith.addf %11, %13 : vector<256x64xf32>
    %15 = vector.extract_strided_slice %14 {offsets = [0, 0], sizes = [256, 16], strides = [1, 1]} : vector<256x64xf32> to vector<256x16xf32>
    %16 = vector.extract_strided_slice %14 {offsets = [0, 16], sizes = [256, 16], strides = [1, 1]} : vector<256x64xf32> to vector<256x16xf32>
    %17 = arith.maximumf %15, %16 : vector<256x16xf32>
    %18 = vector.extract_strided_slice %14 {offsets = [0, 32], sizes = [256, 16], strides = [1, 1]} : vector<256x64xf32> to vector<256x16xf32>
    %19 = arith.maximumf %17, %18 : vector<256x16xf32>
    %20 = vector.extract_strided_slice %14 {offsets = [0, 48], sizes = [256, 16], strides = [1, 1]} : vector<256x64xf32> to vector<256x16xf32>
    %21 = arith.maximumf %19, %20 : vector<256x16xf32>
    %22 = vector.extract_strided_slice %14 {offsets = [0, 0], sizes = [256, 16], strides = [1, 1]} : vector<256x64xf32> to vector<256x16xf32>
    %23 = arith.subf %22, %21 : vector<256x16xf32>
    %24 = math.exp %23 : vector<256x16xf32>
    %25 = vector.extract_strided_slice %14 {offsets = [0, 16], sizes = [256, 16], strides = [1, 1]} : vector<256x64xf32> to vector<256x16xf32>
    %26 = arith.subf %25, %21 : vector<256x16xf32>
    %27 = math.exp %26 : vector<256x16xf32>
    %28 = arith.addf %24, %27 : vector<256x16xf32>
    %29 = vector.extract_strided_slice %14 {offsets = [0, 32], sizes = [256, 16], strides = [1, 1]} : vector<256x64xf32> to vector<256x16xf32>
    %30 = arith.subf %29, %21 : vector<256x16xf32>
    %31 = math.exp %30 : vector<256x16xf32>
    %32 = arith.addf %28, %31 : vector<256x16xf32>
    %33 = vector.extract_strided_slice %14 {offsets = [0, 48], sizes = [256, 16], strides = [1, 1]} : vector<256x64xf32> to vector<256x16xf32>
    %34 = arith.subf %33, %21 : vector<256x16xf32>
    %35 = math.exp %34 : vector<256x16xf32>
    %36 = arith.addf %32, %35 : vector<256x16xf32>
    %c0_11 = arith.constant 0 : index
    %c0_12 = arith.constant 0 : index
    %37 = vector.load %arg8[%c0_11, %c0_12] : memref<256x16xf32, #tpu.memory_space<vmem>>, vector<256x16xf32>
    %38 = math.log %36 : vector<256x16xf32>
    %39 = arith.addf %21, %38 : vector<256x16xf32>
    %40 = arith.addf %37, %39 : vector<256x16xf32>
    %c0_13 = arith.constant 0 : index
    %c0_14 = arith.constant 0 : index
    %41 = vector.load %arg8[%c0_13, %c0_14] : memref<256x16xf32, #tpu.memory_space<vmem>>, vector<256x16xf32>
    tpu.vector_store %arg8[%c0_13, %c0_14], %40 {strides = array<i32>} : memref<256x16xf32, #tpu.memory_space<vmem>>, vector<256x16xf32>,
    %c0_i32_15 = arith.constant 0 : i32
    %42 = arith.cmpi eq, %arg1, %c0_i32_15 : i32
    %43 = arith.extui %42 : i1 to i32
    %c0_i32_16 = arith.constant 0 : i32
    %44 = arith.cmpi ne, %43, %c0_i32_16 : i32
    scf.if %44 {
      %c0_17 = arith.constant 0 : index
      %c0_18 = arith.constant 0 : index
      %45 = vector.load %arg8[%c0_17, %c0_18] : memref<256x16xf32, #tpu.memory_space<vmem>>, vector<256x16xf32>
      %46 = vector.shape_cast %45 : vector<256x16xf32> to vector<1x256x16xf32>
      %cst_19 = arith.constant dense<0.000000e+00> : vector<1xf32>
      %47 = vector.multi_reduction <add>, %46, %cst_19 [1, 2] : vector<1x256x16xf32> to vector<1xf32>
      %48 = vector.shape_cast %47 : vector<1xf32> to vector<1x1x1xf32>
      %49 = vector.extract %48[0, 0, 0] : f32 from vector<1x1x1xf32>
      %50 = vector.broadcast %49 : f32 to vector<1x1xf32>
      %51 = vector.shape_cast %50 : vector<1x1xf32> to vector<1x1xf32>
      %52 = vector.broadcast %51 : vector<1x1xf32> to vector<8x128xf32>
      %c0_20 = arith.constant 0 : index
      %c0_21 = arith.constant 0 : index
      %53 = vector.load %arg7[%c0_20, %c0_21] : memref<8x128xf32, #tpu.memory_space<vmem>>, vector<8x128xf32>
      tpu.vector_store %arg7[%c0_20, %c0_21], %52 {strides = array<i32>} : memref<8x128xf32, #tpu.memory_space<vmem>>, vector<8x128xf32>,
    } else {
    }
    return
  }
  func.func @transform_0(%arg0: i32, %arg1: i32) -> (i32, i32) {
    %c1_i32 = arith.constant 1 : i32
    %0 = arith.muli %arg0, %c1_i32 : i32
    %1 = arith.addi %0, %arg1 : i32
    %c0_i32 = arith.constant 0 : i32
    %c0_i32_0 = arith.constant 0 : i32
    return %1, %c0_i32 : i32, i32
  }
  func.func @transform_1(%arg0: i32, %arg1: i32) -> (i32, i32) {
    %c0_i32 = arith.constant 0 : i32
    %c0_i32_0 = arith.constant 0 : i32
    %c0_i32_1 = arith.constant 0 : i32
    return %c0_i32, %c0_i32_0 : i32, i32
  }
  func.func @transform_2(%arg0: i32, %arg1: i32) -> (i32, i32) {
    %c0_i32 = arith.constant 0 : i32
    %c0_i32_0 = arith.constant 0 : i32
    %c0_i32_1 = arith.constant 0 : i32
    return %c0_i32, %c0_i32_0 : i32, i32
  }
  func.func @transform_3(%arg0: i32, %arg1: i32) -> (i32, i32) {
    %c0_i32 = arith.constant 0 : i32
    %c0_i32_0 = arith.constant 0 : i32
    %c0_i32_1 = arith.constant 0 : i32
    return %c0_i32, %c0_i32_0 : i32, i32
  }
  func.func @transform_4(%arg0: i32, %arg1: i32) -> (i32, i32) {
    %c0_i32 = arith.constant 0 : i32
    %c0_i32_0 = arith.constant 0 : i32
    %c0_i32_1 = arith.constant 0 : i32
    return %c0_i32, %c0_i32_0 : i32, i32
  }
  func.func @transform_5(%arg0: i32, %arg1: i32) -> (i32, i32) {
    %c0_i32 = arith.constant 0 : i32
    %c0_i32_0 = arith.constant 0 : i32
    return %arg0, %c0_i32 : i32, i32
  }
}

</mosaic_0001>

<bundles_post_ra>
// kernel: tpu_custom_call.1
= control target key start
LH: loop header
LB: loop body
LE: loop exit
PB: predicated region body
PF: predicated region fallthrough
CT: control target
= control target key end

     0   :  { %10 = vsyncpa [#allocation4], 0  ;;  %s6353_s0 = inlined_call_operand.vmem [shape: f32[256,128], index: 0, kind: input, shape index: {}]   ;;  %s6354_s1 = inlined_call_operand.vmem [shape: f32[128,512], index: 1, kind: input, shape index: {}]   ;;  %s6355_s2 = inlined_call_operand.hbm [shape: f32[1,512], index: 2, kind: input, shape index: {}]   ;;  %s6356_s3 = inlined_call_operand.vmem [shape: f32[512,64], index: 3, kind: input, shape index: {}]   ;;  %s6357_s4 = inlined_call_operand.hbm [shape: f32[1,64], index: 4, kind: input, shape index: {}]   ;;  %s6358_s5 = inlined_call_operand.hbm [shape: f32[8,128], index: 5, kind: output, shape index: {}]  }
   0x1   :  { %11 = vsyncpa [#allocation7], 0 }
   0x2   :  { %12 = vsyncpa [#allocation5], 0  ;;  %s30_s20 = sshll.u32 %s6355_s2, 4  ;;  %s3780_s21 = smov [#allocation3]   ;;  %s31_s20 = int_to_ptr.hbm [resolvable:$true] %s30_s20 }
   0x3   :  { %s32_s22 = sshll.u32 %s3780_s21, 4  ;;  %s43_s25 = sshll.u32 %s6357_s4, 4  ;;  %s33_s22 = int_to_ptr.vmem [resolvable:$true] %s32_s22  ;;  %s44_s25 = int_to_ptr.hbm [resolvable:$true] %s43_s25 }
   0x4   :  { %35 = dma.hbm_to_vmem [thread:$0]  %s31_s20, 64, %s33_s22, [#allocation4]  }
   0x5   :  { %s3781_s26 = smov [#allocation6]  }
   0x6   :  { %s45_s27 = sshll.u32 %s3781_s26, 4  ;;  %s46_s27 = int_to_ptr.vmem [resolvable:$true] %s45_s27 }
   0x7   :  { %48 = dma.hbm_to_vmem [thread:$0]  %s44_s25, 16, %s46_s27, [#allocation7]  }
   0x8   :  { %3774 = dma.done.wait [#allocation4], 64  }
   0x9   :  { %3775 = vsyncadd [#allocation4], 4294967232 }
   0xa   :  { %3776 = dma.done.wait [#allocation7], 16  }
   0xb   :  { %3777 = vsyncadd [#allocation7], 4294967280  ;;  %v200_v0 = vld [vmem:[%s6354_s1 + $0x1e0] sm:$0xff]  ;;  %v201_v1 = vld [vmem:[%s6354_s1 + $0x1e8] sm:$0xff]  ;;  %s3783_s16 = smov 96   ;;  %s3784_s17 = smov 112  }
   0xc   :  { %v202_v2 = vld [vmem:[%s6354_s1 + $0x1f0] sm:$0xff]  ;;  %204 = vmatpush.msra.mxu0 %v200_v0  ;;  %317 = vmatpush.msra.mxu1 %v201_v1  ;;  %v203_v3 = vld [vmem:[%s6354_s1 + $0x1f8] sm:$0xff]  ;;  %v196_v4 = vld [vmem:[%s6354_s1 + $0x1c0] sm:$0xff]  ;;  %s3785_s18 = smov 16   ;;  %s3786_s19 = smov 48   ;;  %vm75_vm0 = vcmask 130048  }
   0xd   :  { %v197_v5 = vld [vmem:[%s6354_s1 + $0x1c8] sm:$0xff]  ;;  %430 = vmatpush.msra.mxu2 %v202_v2  ;;  %543 = vmatpush.msra.mxu3 %v203_v3  ;;  %v198_v6 = vld [vmem:[%s6354_s1 + $0x1d0] sm:$0xff]  ;;  %v199_v7 = vld [vmem:[%s6354_s1 + $0x1d8] sm:$0xff]  ;;  %s3787_s20 = smov 32   ;;  %s3351_s23 = sshll.u32 %s6358_s5, 4  ;;  %s3352_s23 = int_to_ptr.hbm [resolvable:$true] %s3351_s23 }
   0xe   :  { %v192_v8 = vld [vmem:[%s6354_s1 + $0x1a0] sm:$0xff]  ;;  %205 = vmatpush.msra.mxu0 %v196_v4  ;;  %318 = vmatpush.msra.mxu1 %v197_v5  ;;  %v193_v9 = vld [vmem:[%s6354_s1 + $0x1a8] sm:$0xff]  ;;  %v194_v10 = vld [vmem:[%s6354_s1 + $0x1b0] sm:$0xff]  ;;  %s3789_s24 = smov [#allocation8]  }
   0xf   :  { %v195_v11 = vld [vmem:[%s6354_s1 + $0x1b8] sm:$0xff]  ;;  %431 = vmatpush.msra.mxu2 %v198_v6  ;;  %544 = vmatpush.msra.mxu3 %v199_v7  ;;  %v188_v12 = vld [vmem:[%s6354_s1 + $0x180] sm:$0xff]  ;;  %v189_v13 = vld [vmem:[%s6354_s1 + $0x188] sm:$0xff]  ;;  %s3349_s25 = sshll.u32 %s3789_s24, 4  ;;  %s3350_s25 = int_to_ptr.vmem [resolvable:$true] %s3349_s25 }
  0x10   :  { %206 = vmatpush.msra.mxu0 %v192_v8  ;;  %319 = vmatpush.msra.mxu1 %v193_v9  ;;  %v190_v14 = vld [vmem:[%s6354_s1 + $0x190] sm:$0xff]  ;;  %v191_v15 = vld [vmem:[%s6354_s1 + $0x198] sm:$0xff]  ;;  %v184_v16 = vld [vmem:[%s6354_s1 + $0x160] sm:$0xff] }
  0x11   :  { %432 = vmatpush.msra.mxu2 %v194_v10  ;;  %545 = vmatpush.msra.mxu3 %v195_v11  ;;  %v185_v17 = vld [vmem:[%s6354_s1 + $0x168] sm:$0xff]  ;;  %v186_v18 = vld [vmem:[%s6354_s1 + $0x170] sm:$0xff]  ;;  %v187_v19 = vld [vmem:[%s6354_s1 + $0x178] sm:$0xff] }
  0x12   :  { %207 = vmatpush.msra.mxu0 %v188_v12  ;;  %320 = vmatpush.msra.mxu1 %v189_v13  ;;  %v180_v20 = vld [vmem:[%s6354_s1 + $0x140] sm:$0xff]  ;;  %v181_v21 = vld [vmem:[%s6354_s1 + $0x148] sm:$0xff]  ;;  %v182_v22 = vld [vmem:[%s6354_s1 + $0x150] sm:$0xff] }
  0x13   :  { %433 = vmatpush.msra.mxu2 %v190_v14  ;;  %546 = vmatpush.msra.mxu3 %v191_v15  ;;  %v183_v23 = vld [vmem:[%s6354_s1 + $0x158] sm:$0xff]  ;;  %v176_v24 = vld [vmem:[%s6354_s1 + $0x120] sm:$0xff]  ;;  %v177_v25 = vld [vmem:[%s6354_s1 + $0x128] sm:$0xff] }
  0x14   :  { %208 = vmatpush.msra.mxu0 %v184_v16  ;;  %321 = vmatpush.msra.mxu1 %v185_v17  ;;  %v178_v26 = vld [vmem:[%s6354_s1 + $0x130] sm:$0xff]  ;;  %v179_v27 = vld [vmem:[%s6354_s1 + $0x138] sm:$0xff]  ;;  %v172_v28 = vld [vmem:[%s6354_s1 + $0x100] sm:$0xff] }
  0x15   :  { %434 = vmatpush.msra.mxu2 %v186_v18  ;;  %547 = vmatpush.msra.mxu3 %v187_v19  ;;  %v173_v29 = vld [vmem:[%s6354_s1 + $0x108] sm:$0xff]  ;;  %v174_v30 = vld [vmem:[%s6354_s1 + $0x110] sm:$0xff]  ;;  %v175_v31 = vld [vmem:[%s6354_s1 + $0x118] sm:$0xff] }
  0x16   :  { %209 = vmatpush.msra.mxu0 %v180_v20  ;;  %322 = vmatpush.msra.mxu1 %v181_v21  ;;  %v168_v32 = vld [vmem:[%s6354_s1 + $0xe0] sm:$0xff]  ;;  %v169_v33 = vld [vmem:[%s6354_s1 + $0xe8] sm:$0xff]  ;;  %v170_v34 = vld [vmem:[%s6354_s1 + $0xf0] sm:$0xff] }
  0x17   :  { %435 = vmatpush.msra.mxu2 %v182_v22  ;;  %548 = vmatpush.msra.mxu3 %v183_v23  ;;  %v171_v35 = vld [vmem:[%s6354_s1 + $0xf8] sm:$0xff]  ;;  %v164_v36 = vld [vmem:[%s6354_s1 + $0xc0] sm:$0xff]  ;;  %v165_v37 = vld [vmem:[%s6354_s1 + $0xc8] sm:$0xff] }
  0x18   :  { %210 = vmatpush.msra.mxu0 %v176_v24  ;;  %323 = vmatpush.msra.mxu1 %v177_v25  ;;  %v166_v38 = vld [vmem:[%s6354_s1 + $0xd0] sm:$0xff]  ;;  %v167_v39 = vld [vmem:[%s6354_s1 + $0xd8] sm:$0xff]  ;;  %v160_v40 = vld [vmem:[%s6354_s1 + $0xa0] sm:$0xff] }
  0x19   :  { %436 = vmatpush.msra.mxu2 %v178_v26  ;;  %549 = vmatpush.msra.mxu3 %v179_v27  ;;  %v161_v41 = vld [vmem:[%s6354_s1 + $0xa8] sm:$0xff]  ;;  %v162_v42 = vld [vmem:[%s6354_s1 + $0xb0] sm:$0xff]  ;;  %v163_v43 = vld [vmem:[%s6354_s1 + $0xb8] sm:$0xff] }
  0x1a   :  { %211 = vmatpush.msra.mxu0 %v172_v28  ;;  %324 = vmatpush.msra.mxu1 %v173_v29  ;;  %v156_v44 = vld [vmem:[%s6354_s1 + $0x80] sm:$0xff]  ;;  %v157_v45 = vld [vmem:[%s6354_s1 + $0x88] sm:$0xff]  ;;  %v158_v46 = vld [vmem:[%s6354_s1 + $0x90] sm:$0xff] }
  0x1b   :  { %437 = vmatpush.msra.mxu2 %v174_v30  ;;  %550 = vmatpush.msra.mxu3 %v175_v31  ;;  %v159_v47 = vld [vmem:[%s6354_s1 + $0x98] sm:$0xff]  ;;  %v152_v48 = vld [vmem:[%s6354_s1 + $0x60] sm:$0xff]  ;;  %v153_v49 = vld [vmem:[%s6354_s1 + $0x68] sm:$0xff] }
  0x1c   :  { %212 = vmatpush.msra.mxu0 %v168_v32  ;;  %325 = vmatpush.msra.mxu1 %v169_v33  ;;  %v154_v50 = vld [vmem:[%s6354_s1 + $0x70] sm:$0xff]  ;;  %v155_v51 = vld [vmem:[%s6354_s1 + $0x78] sm:$0xff]  ;;  %v148_v52 = vld [vmem:[%s6354_s1 + $0x40] sm:$0xff] }
  0x1d   :  { %438 = vmatpush.msra.mxu2 %v170_v34  ;;  %551 = vmatpush.msra.mxu3 %v171_v35  ;;  %v149_v53 = vld [vmem:[%s6354_s1 + $0x48] sm:$0xff]  ;;  %v150_v54 = vld [vmem:[%s6354_s1 + $0x50] sm:$0xff]  ;;  %v151_v55 = vld [vmem:[%s6354_s1 + $0x58] sm:$0xff] }
  0x1e   :  { %213 = vmatpush.msra.mxu0 %v164_v36  ;;  %326 = vmatpush.msra.mxu1 %v165_v37  ;;  %v144_v56 = vld [vmem:[%s6354_s1 + $0x20] sm:$0xff]  ;;  %v145_v57 = vld [vmem:[%s6354_s1 + $0x28] sm:$0xff]  ;;  %v146_v58 = vld [vmem:[%s6354_s1 + $0x30] sm:$0xff] }
  0x1f   :  { %439 = vmatpush.msra.mxu2 %v166_v38  ;;  %552 = vmatpush.msra.mxu3 %v167_v39  ;;  %v147_v59 = vld [vmem:[%s6354_s1 + $0x38] sm:$0xff]  ;;  %v140_v60 = vld [vmem:[%s6354_s1] sm:$0xff]  ;;  %v141_v61 = vld [vmem:[%s6354_s1 + $0x8] sm:$0xff] }
  0x20   :  { %214 = vmatpush.msra.mxu0 %v160_v40  ;;  %327 = vmatpush.msra.mxu1 %v161_v41  ;;  %v142_v62 = vld [vmem:[%s6354_s1 + $0x10] sm:$0xff]  ;;  %v143_v63 = vld [vmem:[%s6354_s1 + $0x18] sm:$0xff]  ;;  %v108_v0 = vld [vmem:[%s6353_s0] sm:$0xff] }
  0x21   :  { %440 = vmatpush.msra.mxu2 %v162_v42  ;;  %553 = vmatpush.msra.mxu3 %v163_v43  ;;  %v969_v1 = vld [vmem:[%s6356_s3 + $0x178] sm:$0xff]  ;;  %v968_v5 = vld [vmem:[%s6356_s3 + $0x170] sm:$0xff]  ;;  %v967_v9 = vld [vmem:[%s6356_s3 + $0x168] sm:$0xff] }
  0x22   :  { %215 = vmatpush.msra.mxu0 %v156_v44  ;;  %328 = vmatpush.msra.mxu1 %v157_v45  ;;  %v937_v2 = vld [vmem:[%s6356_s3 + $0x78] sm:$0xff]  ;;  %v936_v6 = vld [vmem:[%s6356_s3 + $0x70] sm:$0xff]  ;;  %v935_v10 = vld [vmem:[%s6356_s3 + $0x68] sm:$0xff] }
  0x23   :  { %441 = vmatpush.msra.mxu2 %v158_v46  ;;  %554 = vmatpush.msra.mxu3 %v159_v47  ;;  %v985_v3 = vld [vmem:[%s6356_s3 + $0x1f8] sm:$0xff]  ;;  %v984_v7 = vld [vmem:[%s6356_s3 + $0x1f0] sm:$0xff]  ;;  %v983_v11 = vld [vmem:[%s6356_s3 + $0x1e8] sm:$0xff] }
  0x24   :  { %216 = vmatpush.msra.mxu0 %v152_v48  ;;  %329 = vmatpush.msra.mxu1 %v153_v49  ;;  %v953_v4 = vld [vmem:[%s6356_s3 + $0xf8] sm:$0xff]  ;;  %v952_v8 = vld [vmem:[%s6356_s3 + $0xf0] sm:$0xff]  ;;  %v951_v12 = vld [vmem:[%s6356_s3 + $0xe8] sm:$0xff] }
  0x25   :  { %442 = vmatpush.msra.mxu2 %v154_v50  ;;  %555 = vmatpush.msra.mxu3 %v155_v51  ;;  %v109_v13 = vld [vmem:[%s6353_s0 + $0x8] sm:$0xff]  ;;  %v110_v14 = vld [vmem:[%s6353_s0 + $0x10] sm:$0xff]  ;;  %v966_v15 = vld [vmem:[%s6356_s3 + $0x160] sm:$0xff] }
  0x26   :  { %217 = vmatpush.msra.mxu0 %v148_v52  ;;  %330 = vmatpush.msra.mxu1 %v149_v53  ;;  %v934_v16 = vld [vmem:[%s6356_s3 + $0x60] sm:$0xff]  ;;  %v111_v19 = vld [vmem:[%s6353_s0 + $0x18] sm:$0xff]  ;;  %v113_v25 = vld [vmem:[%s6353_s0 + $0x28] sm:$0xff] }
  0x27   :  { %443 = vmatpush.msra.mxu2 %v150_v54  ;;  %556 = vmatpush.msra.mxu3 %v151_v55  ;;  %v982_v17 = vld [vmem:[%s6356_s3 + $0x1e0] sm:$0xff]  ;;  %v965_v21 = vld [vmem:[%s6356_s3 + $0x158] sm:$0xff]  ;;  %v114_v26 = vld [vmem:[%s6353_s0 + $0x30] sm:$0xff] }
  0x28   :  { %218 = vmatpush.msra.mxu0 %v144_v56  ;;  %331 = vmatpush.msra.mxu1 %v145_v57  ;;  %v950_v18 = vld [vmem:[%s6356_s3 + $0xe0] sm:$0xff]  ;;  %v933_v22 = vld [vmem:[%s6356_s3 + $0x58] sm:$0xff]  ;;  %v964_v27 = vld [vmem:[%s6356_s3 + $0x150] sm:$0xff] }
  0x29   :  { %444 = vmatpush.msra.mxu2 %v146_v58  ;;  %557 = vmatpush.msra.mxu3 %v147_v59  ;;  %v112_v20 = vld [vmem:[%s6353_s0 + $0x20] sm:$0xff]  ;;  %v981_v23 = vld [vmem:[%s6356_s3 + $0x1d8] sm:$0xff]  ;;  %v932_v28 = vld [vmem:[%s6356_s3 + $0x50] sm:$0xff] }
  0x2a   :  { %219 = vmatpush.msra.mxu0 %v140_v60  ;;  %332 = vmatpush.msra.mxu1 %v141_v61  ;;  %v949_v24 = vld [vmem:[%s6356_s3 + $0xd8] sm:$0xff]  ;;  %v980_v29 = vld [vmem:[%s6356_s3 + $0x1d0] sm:$0xff]  ;;  %v116_v32 = vld [vmem:[%s6353_s0 + $0x40] sm:$0xff] }
  0x2b   :  { %445 = vmatpush.msra.mxu2 %v142_v62  ;;  %558 = vmatpush.msra.mxu3 %v143_v63  ;;  %v948_v30 = vld [vmem:[%s6356_s3 + $0xd0] sm:$0xff]  ;;  %v115_v31 = vld [vmem:[%s6353_s0 + $0x38] sm:$0xff]  ;;  %v963_v33 = vld [vmem:[%s6356_s3 + $0x148] sm:$0xff] }
  0x2c   :  { %220 = vmatmul.f32.vlgmr.msra.gmra.mxu0 %v108_v0  ;;  %333 = vmatmul.f32.vlgmr.msra.gmra.mxu1 %v108_v0  ;;  %v931_v34 = vld [vmem:[%s6356_s3 + $0x48] sm:$0xff]  ;;  %v118_v38 = vld [vmem:[%s6353_s0 + $0x50] sm:$0xff]  ;;  %v962_v39 = vld [vmem:[%s6356_s3 + $0x140] sm:$0xff] }
  0x2d   :  { %446 = vmatmul.f32.vlgmr.msra.gmra.mxu2 %v108_v0  ;;  %559 = vmatmul.f32.vlgmr.msra.gmra.mxu3 %v108_v0  ;;  %v979_v35 = vld [vmem:[%s6356_s3 + $0x1c8] sm:$0xff]  ;;  %v930_v40 = vld [vmem:[%s6356_s3 + $0x40] sm:$0xff]  ;;  %v119_v43 = vld [vmem:[%s6353_s0 + $0x58] sm:$0xff] }
  0x2e   :  { %1216 = vmatpush.msrb.mxu2 %v969_v1  ;;  %990 = vmatpush.msrb.mxu0 %v937_v2  ;;  %v947_v36 = vld [vmem:[%s6356_s3 + $0xc8] sm:$0xff]  ;;  %v978_v41 = vld [vmem:[%s6356_s3 + $0x1c0] sm:$0xff]  ;;  %v961_v45 = vld [vmem:[%s6356_s3 + $0x138] sm:$0xff] }
  0x2f   :  { %1329 = vmatpush.msrb.mxu3 %v985_v3  ;;  %1103 = vmatpush.msrb.mxu1 %v953_v4  ;;  %v117_v37 = vld [vmem:[%s6353_s0 + $0x48] sm:$0xff]  ;;  %v946_v42 = vld [vmem:[%s6356_s3 + $0xc0] sm:$0xff]  ;;  %v929_v46 = vld [vmem:[%s6356_s3 + $0x38] sm:$0xff] }
  0x30   :  { %1217 = vmatpush.msrb.mxu2 %v968_v5  ;;  %991 = vmatpush.msrb.mxu0 %v936_v6  ;;  %v120_v44 = vld [vmem:[%s6353_s0 + $0x60] sm:$0xff]  ;;  %v977_v47 = vld [vmem:[%s6356_s3 + $0x1b8] sm:$0xff]  ;;  %v121_v48 = vld [vmem:[%s6353_s0 + $0x68] sm:$0xff] }
  0x31   :  { %1330 = vmatpush.msrb.mxu3 %v984_v7  ;;  %1104 = vmatpush.msrb.mxu1 %v952_v8  ;;  %v945_v49 = vld [vmem:[%s6356_s3 + $0xb8] sm:$0xff]  ;;  %v122_v50 = vld [vmem:[%s6353_s0 + $0x70] sm:$0xff]  ;;  %v124_v58 = vld [vmem:[%s6353_s0 + $0x80] sm:$0xff] }
  0x32   :  { %1218 = vmatpush.msrb.mxu2 %v967_v9  ;;  %992 = vmatpush.msrb.mxu0 %v935_v10  ;;  %v960_v51 = vld [vmem:[%s6356_s3 + $0x130] sm:$0xff]  ;;  %v123_v54 = vld [vmem:[%s6353_s0 + $0x78] sm:$0xff]  ;;  %v959_v59 = vld [vmem:[%s6356_s3 + $0x128] sm:$0xff] }
  0x33   :  { %1331 = vmatpush.msrb.mxu3 %v983_v11  ;;  %1105 = vmatpush.msrb.mxu1 %v951_v12  ;;  %v928_v52 = vld [vmem:[%s6356_s3 + $0x30] sm:$0xff]  ;;  %v927_v60 = vld [vmem:[%s6356_s3 + $0x28] sm:$0xff]  ;;  %v958_v9 = vld [vmem:[%s6356_s3 + $0x120] sm:$0xff] }
  0x34   :  { %223 = vmatmul.f32.gmra.mxu0 %v109_v13  ;;  %336 = vmatmul.f32.gmra.mxu1 %v109_v13  ;;  %v976_v53 = vld [vmem:[%s6356_s3 + $0x1b0] sm:$0xff]  ;;  %v975_v61 = vld [vmem:[%s6356_s3 + $0x1a8] sm:$0xff]  ;;  %v926_v10 = vld [vmem:[%s6356_s3 + $0x20] sm:$0xff] }
  0x35   :  { %449 = vmatmul.f32.gmra.mxu2 %v109_v13  ;;  %562 = vmatmul.f32.gmra.mxu3 %v109_v13  ;;  %v944_v55 = vld [vmem:[%s6356_s3 + $0xb0] sm:$0xff]  ;;  %v125_v2 = vld [vmem:[%s6353_s0 + $0x88] sm:$0xff]  ;;  %v974_v11 = vld [vmem:[%s6356_s3 + $0x1a0] sm:$0xff] }
  0x36   :  { %1219 = vmatpush.msrb.mxu2 %v966_v15  ;;  %993 = vmatpush.msrb.mxu0 %v934_v16  ;;  %v943_v3 = vld [vmem:[%s6356_s3 + $0xa8] sm:$0xff]  ;;  %v126_v8 = vld [vmem:[%s6353_s0 + $0x90] sm:$0xff]  ;;  %v127_v16 = vld [vmem:[%s6353_s0 + $0x98] sm:$0xff] }
  0x37   :  { %1332 = vmatpush.msrb.mxu3 %v982_v17  ;;  %1106 = vmatpush.msrb.mxu1 %v950_v18  ;;  %v942_v17 = vld [vmem:[%s6356_s3 + $0xa0] sm:$0xff] }
  0x38   :  { %1220 = vmatpush.msrb.mxu2 %v965_v21  ;;  %994 = vmatpush.msrb.mxu0 %v933_v22  ;;  %v128_v22 = vld [vmem:[%s6353_s0 + $0xa0] sm:$0xff] }
  0x39   :  { %1333 = vmatpush.msrb.mxu3 %v981_v23  ;;  %1107 = vmatpush.msrb.mxu1 %v949_v24  ;;  %v957_v23 = vld [vmem:[%s6356_s3 + $0x118] sm:$0xff] }
  0x3a   :  { %1221 = vmatpush.msrb.mxu2 %v964_v27  ;;  %995 = vmatpush.msrb.mxu0 %v932_v28  ;;  %v925_v24 = vld [vmem:[%s6356_s3 + $0x18] sm:$0xff] }
  0x3b   :  { %1334 = vmatpush.msrb.mxu3 %v980_v29  ;;  %1108 = vmatpush.msrb.mxu1 %v948_v30  ;;  %v129_v30 = vld [vmem:[%s6353_s0 + $0xa8] sm:$0xff] }
  0x3c   :  { %226 = vmatmul.f32.gmra.mxu0 %v110_v14  ;;  %339 = vmatmul.f32.gmra.mxu1 %v110_v14 }
  0x3d   :  { %452 = vmatmul.f32.gmra.mxu2 %v110_v14  ;;  %565 = vmatmul.f32.gmra.mxu3 %v110_v14 }
  0x3e   :  { %1222 = vmatpush.msrb.mxu2 %v963_v33  ;;  %996 = vmatpush.msrb.mxu0 %v931_v34 }
  0x3f   :  { %1335 = vmatpush.msrb.mxu3 %v979_v35  ;;  %1109 = vmatpush.msrb.mxu1 %v947_v36  ;;  %v130_v36 = vld [vmem:[%s6353_s0 + $0xb0] sm:$0xff] }
  0x40   :  { %1223 = vmatpush.msrb.mxu2 %v962_v39  ;;  %997 = vmatpush.msrb.mxu0 %v930_v40  ;;  %v972_v39 = vld [vmem:[%s6356_s3 + $0x190] sm:$0xff] }
  0x41   :  { %1336 = vmatpush.msrb.mxu3 %v978_v41  ;;  %1110 = vmatpush.msrb.mxu1 %v946_v42 }
  0x42   :  { %1224 = vmatpush.msrb.mxu2 %v961_v45  ;;  %998 = vmatpush.msrb.mxu0 %v929_v46  ;;  %v940_v45 = vld [vmem:[%s6356_s3 + $0x90] sm:$0xff] }
  0x43   :  { %1337 = vmatpush.msrb.mxu3 %v977_v47  ;;  %1111 = vmatpush.msrb.mxu1 %v945_v49 }
  0x44   :  { %229 = vmatmul.f32.gmra.mxu0 %v111_v19  ;;  %342 = vmatmul.f32.gmra.mxu1 %v111_v19 }
  0x45   :  { %455 = vmatmul.f32.gmra.mxu2 %v111_v19  ;;  %568 = vmatmul.f32.gmra.mxu3 %v111_v19 }
  0x46   :  { %1225 = vmatpush.msrb.mxu2 %v960_v51  ;;  %999 = vmatpush.msrb.mxu0 %v928_v52  ;;  %v955_v51 = vld [vmem:[%s6356_s3 + $0x108] sm:$0xff] }
  0x47   :  { %1338 = vmatpush.msrb.mxu3 %v976_v53  ;;  %1112 = vmatpush.msrb.mxu1 %v944_v55  ;;  %v923_v52 = vld [vmem:[%s6356_s3 + $0x8] sm:$0xff] }
  0x48   :  { %1226 = vmatpush.msrb.mxu2 %v959_v59  ;;  %1000 = vmatpush.msrb.mxu0 %v927_v60  ;;  %v971_v53 = vld [vmem:[%s6356_s3 + $0x188] sm:$0xff] }
  0x49   :  { %1339 = vmatpush.msrb.mxu3 %v975_v61  ;;  %1113 = vmatpush.msrb.mxu1 %v943_v3  ;;  %v133_v60 = vld [vmem:[%s6353_s0 + $0xc8] sm:$0xff] }
  0x4a   :  { %1227 = vmatpush.msrb.mxu2 %v958_v9  ;;  %1001 = vmatpush.msrb.mxu0 %v926_v10  ;;  %v939_v61 = vld [vmem:[%s6356_s3 + $0x88] sm:$0xff]  ;;  %v134_v10 = vld [vmem:[%s6353_s0 + $0xd0] sm:$0xff] }
  0x4b   :  { %1340 = vmatpush.msrb.mxu3 %v974_v11  ;;  %1114 = vmatpush.msrb.mxu1 %v942_v17  ;;  %v954_v11 = vld [vmem:[%s6356_s3 + $0x100] sm:$0xff] }
  0x4c   :  { %232 = vmatmul.f32.gmra.mxu0 %v112_v20  ;;  %345 = vmatmul.f32.gmra.mxu1 %v112_v20  ;;  %v970_v17 = vld [vmem:[%s6356_s3 + $0x180] sm:$0xff] }
  0x4d   :  { %458 = vmatmul.f32.gmra.mxu2 %v112_v20  ;;  %571 = vmatmul.f32.gmra.mxu3 %v112_v20 }
  0x4e   :  { %1228 = vmatpush.msrb.mxu2 %v957_v23  ;;  %1002 = vmatpush.msrb.mxu0 %v925_v24 }
  0x54   :  { %235 = vmatmul.f32.gmra.mxu0 %v113_v25  ;;  %348 = vmatmul.f32.gmra.mxu1 %v113_v25 }
  0x55   :  { %461 = vmatmul.f32.gmra.mxu2 %v113_v25  ;;  %574 = vmatmul.f32.gmra.mxu3 %v113_v25  ;;  %v973_v25 = vld [vmem:[%s6356_s3 + $0x198] sm:$0xff] }
  0x56   :  { %1341 = vmatpush.msrb.mxu3 %v973_v25 }
  0x58   :  { %1342 = vmatpush.msrb.mxu3 %v972_v39 }
  0x5a   :  { %1343 = vmatpush.msrb.mxu3 %v971_v53  ;;  %v137_v53 = vld [vmem:[%s6353_s0 + $0xe8] sm:$0xff] }
  0x5c   :  { %238 = vmatmul.f32.gmra.mxu0 %v114_v26  ;;  %351 = vmatmul.f32.gmra.mxu1 %v114_v26 }
  0x5d   :  { %464 = vmatmul.f32.gmra.mxu2 %v114_v26  ;;  %577 = vmatmul.f32.gmra.mxu3 %v114_v26 }
  0x5e   :  { %1344 = vmatpush.msrb.mxu3 %v970_v17  ;;  %v656_v17 = vld [vmem:[#allocation3] sm:$0xf] }
  0x64   :  { %241 = vmatmul.f32.gmra.mxu0 %v115_v31  ;;  %354 = vmatmul.f32.gmra.mxu1 %v115_v31 }
  0x65   :  { %467 = vmatmul.f32.gmra.mxu2 %v115_v31  ;;  %580 = vmatmul.f32.gmra.mxu3 %v115_v31  ;;  %v941_v31 = vld [vmem:[%s6356_s3 + $0x98] sm:$0xff] }
  0x66   :  { %1115 = vmatpush.msrb.mxu1 %v941_v31  ;;  %v938_v31 = vld [vmem:[%s6356_s3 + $0x80] sm:$0xff] }
  0x68   :  { %1116 = vmatpush.msrb.mxu1 %v940_v45 }
  0x6a   :  { %1117 = vmatpush.msrb.mxu1 %v939_v61 }
  0x6c   :  { %244 = vmatmul.f32.gmra.mxu0 %v116_v32  ;;  %357 = vmatmul.f32.gmra.mxu1 %v116_v32 }
  0x6d   :  { %470 = vmatmul.f32.gmra.mxu2 %v116_v32  ;;  %583 = vmatmul.f32.gmra.mxu3 %v116_v32 }
  0x6e   :  { %1118 = vmatpush.msrb.mxu1 %v938_v31 }
  0x74   :  { %247 = vmatmul.f32.gmra.mxu0 %v117_v37  ;;  %360 = vmatmul.f32.gmra.mxu1 %v117_v37 }
  0x75   :  { %473 = vmatmul.f32.gmra.mxu2 %v117_v37  ;;  %586 = vmatmul.f32.gmra.mxu3 %v117_v37  ;;  %v956_v37 = vld [vmem:[%s6356_s3 + $0x110] sm:$0xff] }
  0x76   :  { %1229 = vmatpush.msrb.mxu2 %v956_v37 }
  0x78   :  { %1230 = vmatpush.msrb.mxu2 %v955_v51 }
  0x7a   :  { %1231 = vmatpush.msrb.mxu2 %v954_v11 }
  0x7c   :  { %250 = vmatmul.f32.gmra.mxu0 %v118_v38  ;;  %363 = vmatmul.f32.gmra.mxu1 %v118_v38 }
  0x7d   :  { %476 = vmatmul.f32.gmra.mxu2 %v118_v38  ;;  %589 = vmatmul.f32.gmra.mxu3 %v118_v38  ;;  %v924_v38 = vld [vmem:[%s6356_s3 + $0x10] sm:$0xff] }
  0x7e   :  { %1003 = vmatpush.msrb.mxu0 %v924_v38 }
  0x80   :  { %1004 = vmatpush.msrb.mxu0 %v923_v52 }
  0x84   :  { %253 = vmatmul.f32.gmra.mxu0 %v119_v43  ;;  %366 = vmatmul.f32.gmra.mxu1 %v119_v43 }
  0x85   :  { %479 = vmatmul.f32.gmra.mxu2 %v119_v43  ;;  %592 = vmatmul.f32.gmra.mxu3 %v119_v43 }
  0x8c   :  { %256 = vmatmul.f32.gmra.mxu0 %v120_v44  ;;  %369 = vmatmul.f32.gmra.mxu1 %v120_v44 }
  0x8d   :  { %482 = vmatmul.f32.gmra.mxu2 %v120_v44  ;;  %595 = vmatmul.f32.gmra.mxu3 %v120_v44  ;;  %v131_v44 = vld [vmem:[%s6353_s0 + $0xb8] sm:$0xff] }
  0x94   :  { %259 = vmatmul.f32.gmra.mxu0 %v121_v48  ;;  %372 = vmatmul.f32.gmra.mxu1 %v121_v48 }
  0x95   :  { %485 = vmatmul.f32.gmra.mxu2 %v121_v48  ;;  %598 = vmatmul.f32.gmra.mxu3 %v121_v48 }
  0x9c   :  { %262 = vmatmul.f32.gmra.mxu0 %v122_v50  ;;  %375 = vmatmul.f32.gmra.mxu1 %v122_v50 }
  0x9d   :  { %488 = vmatmul.f32.gmra.mxu2 %v122_v50  ;;  %601 = vmatmul.f32.gmra.mxu3 %v122_v50  ;;  %v132_v50 = vld [vmem:[%s6353_s0 + $0xc0] sm:$0xff] }
  0xa4   :  { %265 = vmatmul.f32.gmra.mxu0 %v123_v54  ;;  %378 = vmatmul.f32.gmra.mxu1 %v123_v54 }
  0xa5   :  { %491 = vmatmul.f32.gmra.mxu2 %v123_v54  ;;  %604 = vmatmul.f32.gmra.mxu3 %v123_v54 }
  0xa9   :  { %v4186_v56 = vpop.f32.mrf.mxu0  ;;  %v4188_v57 = vpop.f32.mrf.mxu1 }
  0xac   :  { %268 = vmatmul.f32.gmra.mxu0 %v124_v58  ;;  %381 = vmatmul.f32.gmra.mxu1 %v124_v58 }
  0xad   :  { %494 = vmatmul.f32.gmra.mxu2 %v124_v58  ;;  %607 = vmatmul.f32.gmra.mxu3 %v124_v58 }
  0xb0   :  { %v4202_v62 = vpop.f32.mrf.mxu2  ;;  %v4204_v63 = vpop.f32.mrf.mxu3 }
  0xb1   :  { %v4206_v0 = vpop.f32.mrf.mxu0  ;;  %v4208_v1 = vpop.f32.mrf.mxu1 }
  0xb4   :  { %271 = vmatmul.f32.gmra.mxu0 %v125_v2  ;;  %384 = vmatmul.f32.gmra.mxu1 %v125_v2 }
  0xb5   :  { %497 = vmatmul.f32.gmra.mxu2 %v125_v2  ;;  %610 = vmatmul.f32.gmra.mxu3 %v125_v2 }
  0xb8   :  { %v4216_v4 = vpop.f32.mrf.mxu2  ;;  %v4218_v5 = vpop.f32.mrf.mxu3 }
  0xb9   :  { %v4220_v6 = vpop.f32.mrf.mxu0  ;;  %v4222_v7 = vpop.f32.mrf.mxu1 }
  0xbc   :  { %274 = vmatmul.f32.gmra.mxu0 %v126_v8  ;;  %387 = vmatmul.f32.gmra.mxu1 %v126_v8 }
  0xbd   :  { %500 = vmatmul.f32.gmra.mxu2 %v126_v8  ;;  %613 = vmatmul.f32.gmra.mxu3 %v126_v8 }
  0xc0   :  { %v4236_v12 = vpop.f32.mrf.mxu2  ;;  %v4238_v13 = vpop.f32.mrf.mxu3 }
  0xc1   :  { %v4240_v14 = vpop.f32.mrf.mxu0  ;;  %v4242_v15 = vpop.f32.mrf.mxu1 }
  0xc4   :  { %277 = vmatmul.f32.gmra.mxu0 %v127_v16  ;;  %390 = vmatmul.f32.gmra.mxu1 %v127_v16 }
  0xc5   :  { %503 = vmatmul.f32.gmra.mxu2 %v127_v16  ;;  %616 = vmatmul.f32.gmra.mxu3 %v127_v16  ;;  %v922_v16 = vld [vmem:[%s6356_s3] sm:$0xff] }
  0xc6   :  { %1005 = vmatpush.msrb.mxu0 %v922_v16  ;;  %v138_v16 = vld [vmem:[%s6353_s0 + $0xf0] sm:$0xff] }
  0xc8   :  { %v4250_v18 = vpop.f32.mrf.mxu2  ;;  %v4252_v19 = vpop.f32.mrf.mxu3 }
  0xc9   :  { %v4254_v20 = vpop.f32.mrf.mxu0  ;;  %v4256_v21 = vpop.f32.mrf.mxu1 }
  0xcc   :  { %280 = vmatmul.f32.gmra.mxu0 %v128_v22  ;;  %393 = vmatmul.f32.gmra.mxu1 %v128_v22 }
  0xcd   :  { %506 = vmatmul.f32.gmra.mxu2 %v128_v22  ;;  %619 = vmatmul.f32.gmra.mxu3 %v128_v22 }
  0xd0   :  { %v4270_v26 = vpop.f32.mrf.mxu2  ;;  %v4272_v27 = vpop.f32.mrf.mxu3 }
  0xd1   :  { %v4274_v28 = vpop.f32.mrf.mxu0  ;;  %v4276_v29 = vpop.f32.mrf.mxu1 }
  0xd4   :  { %283 = vmatmul.f32.gmra.mxu0 %v129_v30  ;;  %396 = vmatmul.f32.gmra.mxu1 %v129_v30 }
  0xd5   :  { %509 = vmatmul.f32.gmra.mxu2 %v129_v30  ;;  %622 = vmatmul.f32.gmra.mxu3 %v129_v30  ;;  %v135_v30 = vld [vmem:[%s6353_s0 + $0xd8] sm:$0xff] }
  0xd8   :  { %v4284_v32 = vpop.f32.mrf.mxu2  ;;  %v4286_v33 = vpop.f32.mrf.mxu3 }
  0xd9   :  { %v4288_v34 = vpop.f32.mrf.mxu0  ;;  %v4290_v35 = vpop.f32.mrf.mxu1 }
  0xdc   :  { %286 = vmatmul.f32.gmra.mxu0 %v130_v36  ;;  %399 = vmatmul.f32.gmra.mxu1 %v130_v36 }
  0xdd   :  { %512 = vmatmul.f32.gmra.mxu2 %v130_v36  ;;  %625 = vmatmul.f32.gmra.mxu3 %v130_v36 }
  0xe0   :  { %v4304_v40 = vpop.f32.mrf.mxu2  ;;  %v4306_v41 = vpop.f32.mrf.mxu3 }
  0xe1   :  { %v4308_v42 = vpop.f32.mrf.mxu0  ;;  %v4310_v43 = vpop.f32.mrf.mxu1 }
  0xe4   :  { %289 = vmatmul.f32.gmra.mxu0 %v131_v44  ;;  %402 = vmatmul.f32.gmra.mxu1 %v131_v44 }
  0xe5   :  { %515 = vmatmul.f32.gmra.mxu2 %v131_v44  ;;  %628 = vmatmul.f32.gmra.mxu3 %v131_v44  ;;  %v136_v44 = vld [vmem:[%s6353_s0 + $0xe0] sm:$0xff] }
  0xe8   :  { %v4318_v46 = vpop.f32.mrf.mxu2  ;;  %v4320_v47 = vpop.f32.mrf.mxu3 }
  0xe9   :  { %v4322_v48 = vpop.f32.mrf.mxu0  ;;  %v4324_v49 = vpop.f32.mrf.mxu1 }
  0xec   :  { %292 = vmatmul.f32.gmra.mxu0 %v132_v50  ;;  %405 = vmatmul.f32.gmra.mxu1 %v132_v50 }
  0xed   :  { %518 = vmatmul.f32.gmra.mxu2 %v132_v50  ;;  %631 = vmatmul.f32.gmra.mxu3 %v132_v50 }
  0xf0   :  { %v4338_v54 = vpop.f32.mrf.mxu2  ;;  %v4340_v55 = vpop.f32.mrf.mxu3 }
  0xf1   :  { %v4342_v58 = vpop.f32.mrf.mxu0  ;;  %v4344_v59 = vpop.f32.mrf.mxu1 }
  0xf4   :  { %295 = vmatmul.f32.gmra.mxu0 %v133_v60  ;;  %408 = vmatmul.f32.gmra.mxu1 %v133_v60 }
  0xf5   :  { %521 = vmatmul.f32.gmra.mxu2 %v133_v60  ;;  %634 = vmatmul.f32.gmra.mxu3 %v133_v60 }
  0xf8   :  { %v4352_v2 = vpop.f32.mrf.mxu2  ;;  %v4354_v3 = vpop.f32.mrf.mxu3 }
  0xf9   :  { %v4356_v8 = vpop.f32.mrf.mxu0  ;;  %v4358_v9 = vpop.f32.mrf.mxu1 }
  0xfc   :  { %298 = vmatmul.f32.gmra.mxu0 %v134_v10  ;;  %411 = vmatmul.f32.gmra.mxu1 %v134_v10 }
  0xfd   :  { %524 = vmatmul.f32.gmra.mxu2 %v134_v10  ;;  %637 = vmatmul.f32.gmra.mxu3 %v134_v10 }
 0x100   :  { %v4372_v22 = vpop.f32.mrf.mxu2  ;;  %v4374_v23 = vpop.f32.mrf.mxu3 }
 0x101   :  { %v4376_v24 = vpop.f32.mrf.mxu0  ;;  %v4378_v25 = vpop.f32.mrf.mxu1 }
 0x104   :  { %301 = vmatmul.f32.gmra.mxu0 %v135_v30  ;;  %414 = vmatmul.f32.gmra.mxu1 %v135_v30 }
 0x105   :  { %527 = vmatmul.f32.gmra.mxu2 %v135_v30  ;;  %640 = vmatmul.f32.gmra.mxu3 %v135_v30 }
 0x108   :  { %v4386_v36 = vpop.f32.mrf.mxu2  ;;  %v4388_v37 = vpop.f32.mrf.mxu3 }
 0x109   :  { %v4390_v38 = vpop.f32.mrf.mxu0  ;;  %v4392_v39 = vpop.f32.mrf.mxu1 }
 0x10a   :  { %6465 = vst [vmem:[#allocation12_spill] sm:$0xff] %v4392_v39 }
 0x10c   :  { %304 = vmatmul.f32.gmra.mxu0 %v136_v44  ;;  %417 = vmatmul.f32.gmra.mxu1 %v136_v44 }
 0x10d   :  { %530 = vmatmul.f32.gmra.mxu2 %v136_v44  ;;  %643 = vmatmul.f32.gmra.mxu3 %v136_v44 }
 0x110   :  { %v4397_v45 = vpop.f32.mrf.mxu2  ;;  %v4399_v50 = vpop.f32.mrf.mxu3 }
 0x111   :  { %6466 = vst [vmem:[#allocation13_spill] sm:$0xff] %v4397_v45  ;;  %v4401_v51 = vpop.f32.mrf.mxu0  ;;  %v4403_v52 = vpop.f32.mrf.mxu1 }
 0x112   :  { %6467 = vst [vmem:[#allocation14_spill] sm:$0xff] %v4399_v50 }
 0x113   :  { %6468 = vst [vmem:[#allocation15_spill] sm:$0xff] %v4401_v51 }
 0x114   :  { %6469 = vst [vmem:[#allocation16_spill] sm:$0xff] %v4403_v52  ;;  %307 = vmatmul.f32.gmra.mxu0 %v137_v53  ;;  %420 = vmatmul.f32.gmra.mxu1 %v137_v53 }
 0x115   :  { %533 = vmatmul.f32.gmra.mxu2 %v137_v53  ;;  %646 = vmatmul.f32.gmra.mxu3 %v137_v53 }
 0x118   :  { %v4408_v60 = vpop.f32.mrf.mxu2  ;;  %v4410_v61 = vpop.f32.mrf.mxu3 }
 0x119   :  { %6470 = vst [vmem:[#allocation17_spill] sm:$0xff] %v4408_v60  ;;  %v4412_v10 = vpop.f32.mrf.mxu0  ;;  %v4414_v11 = vpop.f32.mrf.mxu1  ;;  %v4434_v60 = vperm.slane %v656_v17, 2 }
 0x11a   :  { %6471 = vst [vmem:[#allocation18_spill] sm:$0xff] %v4410_v61  ;;  %v4432_v61 = vperm.slane %v656_v17, 1 }
 0x11b   :  { %6472 = vst [vmem:[#allocation19_spill] sm:$0xff] %v4412_v10  ;;  %v4430_v10 = vperm.slane %v656_v17, 0 }
 0x11c   :  { %6473 = vst [vmem:[#allocation20_spill] sm:$0xff] %v4414_v11  ;;  %310 = vmatmul.f32.gmra.mxu0 %v138_v16  ;;  %423 = vmatmul.f32.gmra.mxu1 %v138_v16  ;;  %v139_v11 = vld [vmem:[%s6353_s0 + $0xf8] sm:$0xff]  ;;  %s3782_s0 = smov 80  }
 0x11d   :  { %536 = vmatmul.f32.gmra.mxu2 %v138_v16  ;;  %649 = vmatmul.f32.gmra.mxu3 %v138_v16  ;;  %v4436_v16 = vperm.slane %v656_v17, 3 }
 0x120   :  { %v4419_v30 = vpop.f32.mrf.mxu2  ;;  %v4421_v31 = vpop.f32.mrf.mxu3 }
 0x121   :  { %6474 = vst [vmem:[#allocation21_spill] sm:$0xff] %v4419_v30  ;;  %v4423_v44 = vpop.f32.mrf.mxu0  ;;  %v4425_v53 = vpop.f32.mrf.mxu1  ;;  %v669_v30 = vsub.f32 %v4204_v63, %v4436_v16  ;;  %v672_v63 = vsub.f32 %v4216_v4, %v4434_v60  ;;  %v675_v4 = vsub.f32 %v4222_v7, %v4432_v61  ;;  %v678_v7 = vsub.f32 %v4240_v14, %v4430_v10 }
 0x122   :  { %6475 = vst [vmem:[#allocation22_spill] sm:$0xff] %v4421_v31  ;;  %v668_v31 = vsub.f32 %v4202_v62, %v4434_v60  ;;  %v671_v62 = vsub.f32 %v4208_v1, %v4432_v61  ;;  %v674_v1 = vsub.f32 %v4220_v6, %v4430_v10 }
 0x123   :  { %6476 = vst [vmem:[#allocation23_spill] sm:$0xff] %v4423_v44  ;;  %v666_v44 = vsub.f32 %v4186_v56, %v4430_v10  ;;  %v797_v39 = vmul.f32 %v669_v30, %v669_v30 }
 0x124   :  { %6477 = vst [vmem:[#allocation24_spill] sm:$0xff] %v4425_v53  ;;  %313 = vmatmul.f32.gmra.mxu0 %v139_v11  ;;  %426 = vmatmul.f32.gmra.mxu1 %v139_v11  ;;  %v667_v53 = vsub.f32 %v4188_v57, %v4432_v61  ;;  %v796_v56 = vmul.f32 %v668_v31, %v668_v31 }
 0x125   :  { %539 = vmatmul.f32.gmra.mxu2 %v139_v11  ;;  %652 = vmatmul.f32.gmra.mxu3 %v139_v11  ;;  %v794_v11 = vmul.f32 %v666_v44, %v666_v44  ;;  %v670_v57 = vsub.f32 %v4206_v0, %v4430_v10  ;;  %v800_v0 = vmul.f32 %v672_v63, %v672_v63 }
 0x126   :  { %v795_v45 = vmul.f32 %v667_v53, %v667_v53  ;;  %v799_v53 = vmul.f32 %v671_v62, %v671_v62 }
 0x128   :  { %v4446_v52 = vpop.f32.mrf.mxu2  ;;  %v4448_v17 = vpop.f32.mrf.mxu3 }
 0x129   :  { %v4450_v51 = vpop.f32.mrf.mxu0  ;;  %v4452_v50 = vpop.f32.mrf.mxu1 }
 0x12a   :  { %6478 = vst [vmem:[#allocation25_spill] sm:$0xff] %v4452_v50  ;;  %v673_v50 = vsub.f32 %v4218_v5, %v4436_v16  ;;  %v676_v5 = vsub.f32 %v4236_v12, %v4434_v60  ;;  %v679_v12 = vsub.f32 %v4242_v15, %v4432_v61  ;;  %v682_v15 = vsub.f32 %v4254_v20, %v4430_v10 }
 0x12c   :  { %1006 = vmatmul.f32.vlgmr.msrb.gmra.mxu0 %v794_v11  ;;  %1119 = vmatmul.f32.vlgmr.msrb.gmra.mxu1 %v795_v45  ;;  %v801_v11 = vmul.f32 %v673_v50, %v673_v50  ;;  %v804_v6 = vmul.f32 %v676_v5, %v676_v5 }
 0x12d   :  { %1232 = vmatmul.f32.vlgmr.msrb.gmra.mxu2 %v796_v56  ;;  %1345 = vmatmul.f32.vlgmr.msrb.gmra.mxu3 %v797_v39  ;;  %v798_v39 = vmul.f32 %v670_v57, %v670_v57  ;;  %v677_v56 = vsub.f32 %v4238_v13, %v4436_v16  ;;  %v680_v13 = vsub.f32 %v4250_v18, %v4434_v60 }
 0x12e   :  { %v683_v18 = vsub.f32 %v4256_v21, %v4432_v61  ;;  %v686_v21 = vsub.f32 %v4274_v28, %v4430_v10 }
 0x12f   :  { %v808_v14 = vmul.f32 %v680_v13, %v680_v13 }
 0x130   :  { %v4462_v44 = vpop.f32.mrf.mxu2  ;;  %v4464_v31 = vpop.f32.mrf.mxu3 }
 0x131   :  { %v4466_v30 = vpop.f32.mrf.mxu0  ;;  %v4468_v45 = vpop.f32.mrf.mxu1 }
 0x134   :  { %1009 = vmatmul.f32.gmra.mxu0 %v798_v39  ;;  %1122 = vmatmul.f32.gmra.mxu1 %v799_v53  ;;  %v802_v39 = vmul.f32 %v674_v1, %v674_v1  ;;  %v803_v53 = vmul.f32 %v675_v4, %v675_v4 }
 0x135   :  { %1235 = vmatmul.f32.gmra.mxu2 %v800_v0  ;;  %1348 = vmatmul.f32.gmra.mxu3 %v801_v11  ;;  %v805_v0 = vmul.f32 %v677_v56, %v677_v56  ;;  %v681_v11 = vsub.f32 %v4252_v19, %v4436_v16  ;;  %v684_v19 = vsub.f32 %v4270_v26, %v4434_v60 }
 0x136   :  { %v687_v26 = vsub.f32 %v4276_v29, %v4432_v61  ;;  %v690_v29 = vsub.f32 %v4288_v34, %v4430_v10 }
 0x137   :  { %v812_v20 = vmul.f32 %v684_v19, %v684_v19 }
 0x138   :  { %v4478_v57 = vpop.f32.mrf.mxu2  ;;  %v4480_v62 = vpop.f32.mrf.mxu3 }
 0x139   :  { %v4482_v50 = vpop.f32.mrf.mxu0  ;;  %v4484_v63 = vpop.f32.mrf.mxu1 }
 0x13c   :  { %1012 = vmatmul.f32.gmra.mxu0 %v802_v39  ;;  %1125 = vmatmul.f32.gmra.mxu1 %v803_v53  ;;  %v806_v39 = vmul.f32 %v678_v7, %v678_v7  ;;  %v807_v53 = vmul.f32 %v679_v12, %v679_v12 }
 0x13d   :  { %1238 = vmatmul.f32.gmra.mxu2 %v804_v6  ;;  %1351 = vmatmul.f32.gmra.mxu3 %v805_v0  ;;  %v809_v6 = vmul.f32 %v681_v11, %v681_v11  ;;  %v685_v0 = vsub.f32 %v4272_v27, %v4436_v16  ;;  %v688_v27 = vsub.f32 %v4284_v32, %v4434_v60 }
 0x13e   :  { %v691_v32 = vsub.f32 %v4290_v35, %v4432_v61  ;;  %v694_v35 = vsub.f32 %v4308_v42, %v4430_v10 }
 0x13f   :  { %v816_v28 = vmul.f32 %v688_v27, %v688_v27 }
 0x140   :  { %v4494_v1 = vpop.f32.mrf.mxu2  ;;  %v4496_v4 = vpop.f32.mrf.mxu3 }
 0x141   :  { %v4498_v5 = vpop.f32.mrf.mxu0  ;;  %v4500_v56 = vpop.f32.mrf.mxu1 }
 0x144   :  { %1015 = vmatmul.f32.gmra.mxu0 %v806_v39  ;;  %1128 = vmatmul.f32.gmra.mxu1 %v807_v53  ;;  %v810_v39 = vmul.f32 %v682_v15, %v682_v15  ;;  %v811_v53 = vmul.f32 %v683_v18, %v683_v18 }
 0x145   :  { %1241 = vmatmul.f32.gmra.mxu2 %v808_v14  ;;  %1354 = vmatmul.f32.gmra.mxu3 %v809_v6  ;;  %v813_v14 = vmul.f32 %v685_v0, %v685_v0  ;;  %v689_v6 = vsub.f32 %v4286_v33, %v4436_v16  ;;  %v692_v33 = vsub.f32 %v4304_v40, %v4434_v60 }
 0x146   :  { %v695_v40 = vsub.f32 %v4310_v43, %v4432_v61  ;;  %v698_v43 = vsub.f32 %v4322_v48, %v4430_v10 }
 0x147   :  { %v820_v34 = vmul.f32 %v692_v33, %v692_v33 }
 0x148   :  { %v4510_v7 = vpop.f32.mrf.mxu2  ;;  %v4512_v12 = vpop.f32.mrf.mxu3 }
 0x149   :  { %v4514_v13 = vpop.f32.mrf.mxu0  ;;  %v4516_v11 = vpop.f32.mrf.mxu1 }
 0x14c   :  { %1018 = vmatmul.f32.gmra.mxu0 %v810_v39  ;;  %1131 = vmatmul.f32.gmra.mxu1 %v811_v53  ;;  %v814_v39 = vmul.f32 %v686_v21, %v686_v21  ;;  %v815_v53 = vmul.f32 %v687_v26, %v687_v26 }
 0x14d   :  { %1244 = vmatmul.f32.gmra.mxu2 %v812_v20  ;;  %1357 = vmatmul.f32.gmra.mxu3 %v813_v14  ;;  %v817_v20 = vmul.f32 %v689_v6, %v689_v6  ;;  %v693_v14 = vsub.f32 %v4306_v41, %v4436_v16  ;;  %v696_v41 = vsub.f32 %v4318_v46, %v4434_v60 }
 0x14e   :  { %v699_v46 = vsub.f32 %v4324_v49, %v4432_v61  ;;  %v702_v49 = vsub.f32 %v4342_v58, %v4430_v10 }
 0x14f   :  { %v824_v42 = vmul.f32 %v696_v41, %v696_v41 }
 0x150   :  { %v4526_v15 = vpop.f32.mrf.mxu2  ;;  %v4528_v18 = vpop.f32.mrf.mxu3 }
 0x151   :  { %v4530_v19 = vpop.f32.mrf.mxu0  ;;  %v4532_v0 = vpop.f32.mrf.mxu1 }
 0x154   :  { %1021 = vmatmul.f32.gmra.mxu0 %v814_v39  ;;  %1134 = vmatmul.f32.gmra.mxu1 %v815_v53  ;;  %v818_v39 = vmul.f32 %v690_v29, %v690_v29  ;;  %v819_v53 = vmul.f32 %v691_v32, %v691_v32 }
 0x155   :  { %1247 = vmatmul.f32.gmra.mxu2 %v816_v28  ;;  %1360 = vmatmul.f32.gmra.mxu3 %v817_v20  ;;  %v821_v28 = vmul.f32 %v693_v14, %v693_v14  ;;  %v697_v20 = vsub.f32 %v4320_v47, %v4436_v16  ;;  %v700_v47 = vsub.f32 %v4338_v54, %v4434_v60 }
 0x156   :  { %v703_v54 = vsub.f32 %v4344_v59, %v4432_v61  ;;  %v706_v59 = vsub.f32 %v4356_v8, %v4430_v10 }
 0x157   :  { %v828_v48 = vmul.f32 %v700_v47, %v700_v47 }
 0x158   :  { %v4542_v21 = vpop.f32.mrf.mxu2  ;;  %v4544_v26 = vpop.f32.mrf.mxu3 }
 0x159   :  { %v4546_v27 = vpop.f32.mrf.mxu0  ;;  %v4548_v6 = vpop.f32.mrf.mxu1 }
 0x15c   :  { %1024 = vmatmul.f32.gmra.mxu0 %v818_v39  ;;  %1137 = vmatmul.f32.gmra.mxu1 %v819_v53  ;;  %v822_v39 = vmul.f32 %v694_v35, %v694_v35  ;;  %v823_v53 = vmul.f32 %v695_v40, %v695_v40 }
 0x15d   :  { %1250 = vmatmul.f32.gmra.mxu2 %v820_v34  ;;  %1363 = vmatmul.f32.gmra.mxu3 %v821_v28  ;;  %v825_v34 = vmul.f32 %v697_v20, %v697_v20  ;;  %v701_v28 = vsub.f32 %v4340_v55, %v4436_v16  ;;  %v704_v55 = vsub.f32 %v4352_v2, %v4434_v60 }
 0x15e   :  { %v707_v2 = vsub.f32 %v4358_v9, %v4432_v61  ;;  %v710_v9 = vsub.f32 %v4376_v24, %v4430_v10 }
 0x15f   :  { %v832_v58 = vmul.f32 %v704_v55, %v704_v55 }
 0x160   :  { %v4558_v29 = vpop.f32.mrf.mxu2  ;;  %v4560_v32 = vpop.f32.mrf.mxu3 }
 0x161   :  { %v4562_v33 = vpop.f32.mrf.mxu0  ;;  %v4564_v14 = vpop.f32.mrf.mxu1 }
 0x164   :  { %1027 = vmatmul.f32.gmra.mxu0 %v822_v39  ;;  %1140 = vmatmul.f32.gmra.mxu1 %v823_v53  ;;  %v826_v39 = vmul.f32 %v698_v43, %v698_v43  ;;  %v827_v53 = vmul.f32 %v699_v46, %v699_v46 }
 0x165   :  { %1253 = vmatmul.f32.gmra.mxu2 %v824_v42  ;;  %1366 = vmatmul.f32.gmra.mxu3 %v825_v34  ;;  %v829_v42 = vmul.f32 %v701_v28, %v701_v28  ;;  %v705_v34 = vsub.f32 %v4354_v3, %v4436_v16  ;;  %v708_v3 = vsub.f32 %v4372_v22, %v4434_v60 }
 0x166   :  { %v711_v22 = vsub.f32 %v4378_v25, %v4432_v61  ;;  %v714_v25 = vsub.f32 %v4390_v38, %v4430_v10 }
 0x167   :  { %v836_v8 = vmul.f32 %v708_v3, %v708_v3 }
 0x168   :  { %v4574_v35 = vpop.f32.mrf.mxu2  ;;  %v4576_v40 = vpop.f32.mrf.mxu3 }
 0x169   :  { %v4578_v41 = vpop.f32.mrf.mxu0  ;;  %v4580_v20 = vpop.f32.mrf.mxu1 }
 0x16c   :  { %1030 = vmatmul.f32.gmra.mxu0 %v826_v39  ;;  %1143 = vmatmul.f32.gmra.mxu1 %v827_v53  ;;  %v830_v39 = vmul.f32 %v702_v49, %v702_v49  ;;  %v831_v53 = vmul.f32 %v703_v54, %v703_v54 }
 0x16d   :  { %1256 = vmatmul.f32.gmra.mxu2 %v828_v48  ;;  %1369 = vmatmul.f32.gmra.mxu3 %v829_v42  ;;  %v833_v48 = vmul.f32 %v705_v34, %v705_v34  ;;  %v709_v42 = vsub.f32 %v4374_v23, %v4436_v16  ;;  %v712_v23 = vsub.f32 %v4386_v36, %v4434_v60  ;;  %v6482_v36 = vld [vmem:[#allocation12_spill] sm:$0xff] }
 0x16f   :  { %v840_v24 = vmul.f32 %v712_v23, %v712_v23 }
 0x170   :  { %v4590_v43 = vpop.f32.mrf.mxu2  ;;  %v4592_v46 = vpop.f32.mrf.mxu3 }
 0x171   :  { %v4594_v47 = vpop.f32.mrf.mxu0  ;;  %v4596_v28 = vpop.f32.mrf.mxu1 }
 0x174   :  { %1033 = vmatmul.f32.gmra.mxu0 %v830_v39  ;;  %1146 = vmatmul.f32.gmra.mxu1 %v831_v53  ;;  %v834_v39 = vmul.f32 %v706_v59, %v706_v59  ;;  %v835_v53 = vmul.f32 %v707_v2, %v707_v2 }
 0x175   :  { %1259 = vmatmul.f32.gmra.mxu2 %v832_v58  ;;  %1372 = vmatmul.f32.gmra.mxu3 %v833_v48  ;;  %v837_v58 = vmul.f32 %v709_v42, %v709_v42  ;;  %v713_v48 = vsub.f32 %v4388_v37, %v4436_v16  ;;  %v715_v37 = vsub.f32 %v6482_v36, %v4432_v61 }
 0x178   :  { %v4606_v49 = vpop.f32.mrf.mxu2  ;;  %v4608_v54 = vpop.f32.mrf.mxu3 }
 0x179   :  { %v4610_v55 = vpop.f32.mrf.mxu0  ;;  %v4612_v34 = vpop.f32.mrf.mxu1 }
 0x17c   :  { %1036 = vmatmul.f32.gmra.mxu0 %v834_v39  ;;  %1149 = vmatmul.f32.gmra.mxu1 %v835_v53  ;;  %v838_v39 = vmul.f32 %v710_v9, %v710_v9  ;;  %v839_v53 = vmul.f32 %v711_v22, %v711_v22 }
 0x17d   :  { %1262 = vmatmul.f32.gmra.mxu2 %v836_v8  ;;  %1375 = vmatmul.f32.gmra.mxu3 %v837_v58  ;;  %v841_v8 = vmul.f32 %v713_v48, %v713_v48  ;;  %v6483_v58 = vld [vmem:[#allocation13_spill] sm:$0xff] }
 0x180   :  { %v4622_v59 = vpop.f32.mrf.mxu2  ;;  %v4624_v2 = vpop.f32.mrf.mxu3 }
 0x181   :  { %6479 = vst [vmem:[#allocation26_spill] sm:$0xff] %v4624_v2  ;;  %v4626_v3 = vpop.f32.mrf.mxu0  ;;  %v4628_v42 = vpop.f32.mrf.mxu1  ;;  %v716_v2 = vsub.f32 %v6483_v58, %v4434_v60 }
 0x182   :  { %6480 = vst [vmem:[#allocation27_spill] sm:$0xff] %v4626_v3  ;;  %v6484_v3 = vld [vmem:[#allocation14_spill] sm:$0xff] }
 0x183   :  { %6481 = vst [vmem:[#allocation28_spill] sm:$0xff] %v4628_v42  ;;  %v717_v42 = vsub.f32 %v6484_v3, %v4436_v16  ;;  %v844_v38 = vmul.f32 %v716_v2, %v716_v2  ;;  %v6490_v3 = vld [vmem:[#allocation16_spill] sm:$0xff] }
 0x184   :  { %1039 = vmatmul.f32.gmra.mxu0 %v838_v39  ;;  %1152 = vmatmul.f32.gmra.mxu1 %v839_v53  ;;  %v842_v39 = vmul.f32 %v714_v25, %v714_v25  ;;  %v843_v53 = vmul.f32 %v715_v37, %v715_v37  ;;  %v719_v58 = vsub.f32 %v6490_v3, %v4432_v61 }
 0x185   :  { %1265 = vmatmul.f32.gmra.mxu2 %v840_v24  ;;  %1378 = vmatmul.f32.gmra.mxu3 %v841_v8  ;;  %v845_v24 = vmul.f32 %v717_v42, %v717_v42  ;;  %v6489_v8 = vld [vmem:[#allocation15_spill] sm:$0xff] }
 0x186   :  { %v718_v36 = vsub.f32 %v6489_v8, %v4430_v10 }
 0x188   :  { %v4638_v9 = vpop.f32.mrf.mxu2  ;;  %v4640_v22 = vpop.f32.mrf.mxu3 }
 0x189   :  { %6485 = vst [vmem:[#allocation12_spill] sm:$0xff] %v4638_v9  ;;  %v4642_v23 = vpop.f32.mrf.mxu0  ;;  %v4644_v48 = vpop.f32.mrf.mxu1 }
 0x18a   :  { %6486 = vst [vmem:[#allocation13_spill] sm:$0xff] %v4640_v22  ;;  %v6491_v22 = vld [vmem:[#allocation17_spill] sm:$0xff] }
 0x18b   :  { %6487 = vst [vmem:[#allocation14_spill] sm:$0xff] %v4642_v23  ;;  %v720_v9 = vsub.f32 %v6491_v22, %v4434_v60  ;;  %v6492_v23 = vld [vmem:[#allocation18_spill] sm:$0xff]  ;;  %v6497_v22 = vld [vmem:[#allocation19_spill] sm:$0xff] }
 0x18c   :  { %6488 = vst [vmem:[#allocation29_spill] sm:$0xff] %v4644_v48  ;;  %1042 = vmatmul.f32.gmra.mxu0 %v842_v39  ;;  %1155 = vmatmul.f32.gmra.mxu1 %v843_v53  ;;  %v721_v48 = vsub.f32 %v6492_v23, %v4436_v16  ;;  %v846_v39 = vmul.f32 %v718_v36, %v718_v36  ;;  %v6498_v23 = vld [vmem:[#allocation20_spill] sm:$0xff] }
 0x18d   :  { %1268 = vmatmul.f32.gmra.mxu2 %v844_v38  ;;  %1381 = vmatmul.f32.gmra.mxu3 %v845_v24  ;;  %v847_v53 = vmul.f32 %v719_v58, %v719_v58  ;;  %v848_v38 = vmul.f32 %v720_v9, %v720_v9  ;;  %v722_v8 = vsub.f32 %v6497_v22, %v4430_v10 }
 0x18e   :  { %v849_v24 = vmul.f32 %v721_v48, %v721_v48  ;;  %v723_v3 = vsub.f32 %v6498_v23, %v4432_v61 }
 0x190   :  { %v4654_v25 = vpop.f32.mrf.mxu2  ;;  %v4656_v2 = vpop.f32.mrf.mxu3 }
 0x191   :  { %6493 = vst [vmem:[#allocation15_spill] sm:$0xff] %v4654_v25  ;;  %v4658_v42 = vpop.f32.mrf.mxu0  ;;  %v4660_v37 = vpop.f32.mrf.mxu1 }
 0x192   :  { %6494 = vst [vmem:[#allocation16_spill] sm:$0xff] %v4656_v2  ;;  %v6499_v2 = vld [vmem:[#allocation21_spill] sm:$0xff] }
 0x193   :  { %6495 = vst [vmem:[#allocation17_spill] sm:$0xff] %v4658_v42  ;;  %v724_v25 = vsub.f32 %v6499_v2, %v4434_v60  ;;  %v6500_v42 = vld [vmem:[#allocation22_spill] sm:$0xff]  ;;  %v6503_v2 = vld [vmem:[#allocation23_spill] sm:$0xff] }
 0x194   :  { %6496 = vst [vmem:[#allocation18_spill] sm:$0xff] %v4660_v37  ;;  %1045 = vmatmul.f32.gmra.mxu0 %v846_v39  ;;  %1158 = vmatmul.f32.gmra.mxu1 %v847_v53  ;;  %v725_v37 = vsub.f32 %v6500_v42, %v4436_v16  ;;  %v850_v39 = vmul.f32 %v722_v8, %v722_v8  ;;  %v6504_v42 = vld [vmem:[#allocation24_spill] sm:$0xff] }
 0x195   :  { %1271 = vmatmul.f32.gmra.mxu2 %v848_v38  ;;  %1384 = vmatmul.f32.gmra.mxu3 %v849_v24  ;;  %v851_v53 = vmul.f32 %v723_v3, %v723_v3  ;;  %v852_v38 = vmul.f32 %v724_v25, %v724_v25  ;;  %v726_v22 = vsub.f32 %v6503_v2, %v4430_v10 }
 0x196   :  { %v853_v24 = vmul.f32 %v725_v37, %v725_v37  ;;  %v727_v23 = vsub.f32 %v6504_v42, %v4432_v61  ;;  %v732_v42 = vsub.f32 %v4462_v44, %v4434_v60  ;;  %v734_v44 = vsub.f32 %v4466_v30, %v4430_v10 }
 0x198   :  { %v4670_v36 = vpop.f32.mrf.mxu2  ;;  %v4672_v9 = vpop.f32.mrf.mxu3 }
 0x199   :  { %6501 = vst [vmem:[#allocation19_spill] sm:$0xff] %v4672_v9  ;;  %v4674_v48 = vpop.f32.mrf.mxu0  ;;  %v4676_v58 = vpop.f32.mrf.mxu1  ;;  %v728_v9 = vsub.f32 %v4446_v52, %v4434_v60  ;;  %v730_v52 = vsub.f32 %v4450_v51, %v4430_v10  ;;  %v860_v51 = vmul.f32 %v732_v42, %v732_v42 }
 0x19a   :  { %6502 = vst [vmem:[#allocation20_spill] sm:$0xff] %v4676_v58  ;;  %v729_v58 = vsub.f32 %v4448_v17, %v4436_v16  ;;  %v6507_v17 = vld [vmem:[#allocation25_spill] sm:$0xff] }
 0x19b   :  { %v731_v2 = vsub.f32 %v6507_v17, %v4432_v61 }
 0x19c   :  { %1048 = vmatmul.f32.gmra.mxu0 %v850_v39  ;;  %1161 = vmatmul.f32.gmra.mxu1 %v851_v53  ;;  %v854_v39 = vmul.f32 %v726_v22, %v726_v22  ;;  %v855_v53 = vmul.f32 %v727_v23, %v727_v23  ;;  %v4702_v22 = vld [vmem:[#allocation6] ss:$0 sm:$0xff] }
 0x19d   :  { %1274 = vmatmul.f32.gmra.mxu2 %v852_v38  ;;  %1387 = vmatmul.f32.gmra.mxu3 %v853_v24  ;;  %v856_v38 = vmul.f32 %v728_v9, %v728_v9  ;;  %v857_v24 = vmul.f32 %v729_v58, %v729_v58 }
 0x1a0   :  { %v4686_v8 = vpop.f32.mrf.mxu2  ;;  %v4688_v25 = vpop.f32.mrf.mxu3 }
 0x1a1   :  { %v4690_v37 = vpop.f32.mrf.mxu0  ;;  %v4692_v3 = vpop.f32.mrf.mxu1 }
 0x1a2   :  { %6505 = vst [vmem:[#allocation21_spill] sm:$0xff] %v4690_v37 }
 0x1a3   :  { %6506 = vst [vmem:[#allocation22_spill] sm:$0xff] %v4692_v3  ;;  %v733_v3 = vsub.f32 %v4464_v31, %v4436_v16  ;;  %v735_v31 = vsub.f32 %v4468_v45, %v4432_v61 }
 0x1a4   :  { %1051 = vmatmul.f32.gmra.mxu0 %v854_v39  ;;  %1164 = vmatmul.f32.gmra.mxu1 %v855_v53  ;;  %v858_v53 = vmul.f32 %v730_v52, %v730_v52  ;;  %v737_v52 = vsub.f32 %v4480_v62, %v4436_v16  ;;  %v739_v62 = vsub.f32 %v4484_v63, %v4432_v61 }
 0x1a5   :  { %1277 = vmatmul.f32.gmra.mxu2 %v856_v38  ;;  %1390 = vmatmul.f32.gmra.mxu3 %v857_v24  ;;  %v859_v38 = vmul.f32 %v731_v2, %v731_v2  ;;  %v861_v24 = vmul.f32 %v733_v3, %v733_v3 }
 0x1a6   :  { %v865_v37 = vmul.f32 %v737_v52, %v737_v52  ;;  %v867_v52 = vmul.f32 %v739_v62, %v739_v62 }
 0x1a8   :  { %v4704_v9 = vpop.f32.mrf.mxu2  ;;  %v4706_v58 = vpop.f32.mrf.mxu3 }
 0x1a9   :  { %6508 = vst [vmem:[#allocation23_spill] sm:$0xff] %v4704_v9  ;;  %v1007_v23 = vpop.f32.mrf.mxu0  ;;  %v1120_v39 = vpop.f32.mrf.mxu1 }
 0x1aa   :  { %6509 = vst [vmem:[#allocation24_spill] sm:$0xff] %v4706_v58  ;;  %v1008_v17 = vadd.f32 %v4702_v22, %v1007_v23  ;;  %v736_v58 = vsub.f32 %v4478_v57, %v4434_v60  ;;  %v738_v57 = vsub.f32 %v4482_v50, %v4430_v10 }
 0x1ac   :  { %1054 = vmatmul.f32.gmra.mxu0 %v858_v53  ;;  %1167 = vmatmul.f32.gmra.mxu1 %v859_v38  ;;  %v1121_v2 = vadd.f32 %v1120_v39, %v1008_v17  ;;  %v864_v9 = vmul.f32 %v736_v58, %v736_v58  ;;  %v740_v58 = vsub.f32 %v4494_v1, %v4434_v60 }
 0x1ad   :  { %1280 = vmatmul.f32.gmra.mxu2 %v860_v51  ;;  %1393 = vmatmul.f32.gmra.mxu3 %v861_v24  ;;  %v862_v51 = vmul.f32 %v734_v44, %v734_v44  ;;  %v863_v24 = vmul.f32 %v735_v31, %v735_v31  ;;  %v866_v31 = vmul.f32 %v738_v57, %v738_v57 }
 0x1b0   :  { %v1233_v3 = vpop.f32.mrf.mxu2  ;;  %v1346_v42 = vpop.f32.mrf.mxu3 }
 0x1b1   :  { %v1234_v23 = vadd.f32 %v1233_v3, %v1121_v2  ;;  %v1010_v53 = vpop.f32.mrf.mxu0  ;;  %v1123_v38 = vpop.f32.mrf.mxu1  ;;  %v868_v2 = vmul.f32 %v740_v58, %v740_v58 }
 0x1b2   :  { %v1011_v45 = vadd.f32 %v4702_v22, %v1010_v53  ;;  %v744_v53 = vsub.f32 %v4510_v7, %v4434_v60 }
 0x1b3   :  { %v4717_v30 = vadd.f32 %v1346_v42, %v1234_v23  ;;  %v743_v23 = vsub.f32 %v4500_v56, %v4432_v61 }
 0x1b4   :  { %1057 = vmatmul.f32.gmra.mxu0 %v862_v51  ;;  %1170 = vmatmul.f32.gmra.mxu1 %v863_v24 }
 0x1b5   :  { %1283 = vmatmul.f32.gmra.mxu2 %v864_v9  ;;  %1396 = vmatmul.f32.gmra.mxu3 %v865_v37  ;;  %v741_v37 = vsub.f32 %v4496_v4, %v4436_v16  ;;  %v1124_v9 = vadd.f32 %v1123_v38, %v1011_v45  ;;  %v742_v4 = vsub.f32 %v4498_v5, %v4430_v10 }
 0x1b6   :  { %1730 = vrot.lane.b32.xlu1 %v4717_v30, %s3782_s0  ;;  %1602 = vrot.lane.b32.xlu2 %v4717_v30, %s3783_s16  ;;  %v745_v38 = vsub.f32 %v4512_v12, %v4436_v16  ;;  %v871_v56 = vmul.f32 %v743_v23, %v743_v23  ;;  %v746_v12 = vsub.f32 %v4514_v13, %v4430_v10 }
 0x1b7   :  { %1474 = vrot.lane.b32.xlu0 %v4717_v30, %s3784_s17  ;;  %v869_v3 = vmul.f32 %v741_v37, %v741_v37  ;;  %v870_v58 = vmul.f32 %v742_v4, %v742_v4  ;;  %v872_v37 = vmul.f32 %v744_v53, %v744_v53 }
 0x1b8   :  { %v1236_v50 = vpop.f32.mrf.mxu2  ;;  %v1349_v63 = vpop.f32.mrf.mxu3 }
 0x1b9   :  { %v1237_v39 = vadd.f32 %v1236_v50, %v1124_v9  ;;  %v1013_v17 = vpop.f32.mrf.mxu0  ;;  %v1126_v44 = vpop.f32.mrf.mxu1  ;;  %v873_v9 = vmul.f32 %v745_v38, %v745_v38  ;;  %v751_v38 = vsub.f32 %v4532_v0, %v4432_v61 }
 0x1ba   :  { %v1014_v1 = vadd.f32 %v4702_v22, %v1013_v17  ;;  %v749_v17 = vsub.f32 %v4528_v18, %v4436_v16  ;;  %v750_v18 = vsub.f32 %v4530_v19, %v4430_v10 }
 0x1bb   :  { %v4734_v42 = vadd.f32 %v1349_v63, %v1237_v39  ;;  %v747_v63 = vsub.f32 %v4516_v11, %v4432_v61  ;;  %v748_v39 = vsub.f32 %v4526_v15, %v4434_v60 }
 0x1bc   :  { %1060 = vmatmul.f32.gmra.mxu0 %v866_v31  ;;  %1173 = vmatmul.f32.gmra.mxu1 %v867_v52  ;;  %v1127_v51 = vadd.f32 %v1126_v44, %v1014_v1  ;;  %v874_v1 = vmul.f32 %v746_v12, %v746_v12  ;;  %v877_v23 = vmul.f32 %v749_v17, %v749_v17 }
 0x1bd   :  { %1286 = vmatmul.f32.gmra.mxu2 %v868_v2  ;;  %1399 = vmatmul.f32.gmra.mxu3 %v869_v3  ;;  %v875_v11 = vmul.f32 %v747_v63, %v747_v63  ;;  %v876_v4 = vmul.f32 %v748_v39, %v748_v39  ;;  %v755_v12 = vsub.f32 %v4548_v6, %v4432_v61 }
 0x1be   :  { %1732 = vrot.lane.b32.xlu2 %v4734_v42, %s3782_s0  ;;  %v756_v63 = vsub.f32 %v4558_v29, %v4434_v60  ;;  %v757_v39 = vsub.f32 %v4560_v32, %v4436_v16  ;;  %v758_v32 = vsub.f32 %v4562_v33, %v4430_v10 }
 0x1bf   :  { %1476 = vrot.lane.b32.xlu0 %v4734_v42, %s3784_s17 }
 0x1c0   :  { %v1239_v24 = vpop.f32.mrf.mxu2  ;;  %v1352_v45 = vpop.f32.mrf.mxu3 }
 0x1c1   :  { %v1240_v57 = vadd.f32 %v1239_v24, %v1127_v51  ;;  %v1016_v5 = vpop.f32.mrf.mxu0  ;;  %v1129_v62 = vpop.f32.mrf.mxu1  ;;  %v752_v51 = vsub.f32 %v4542_v21, %v4434_v60  ;;  %v753_v24 = vsub.f32 %v4544_v26, %v4436_v16  ;;  %v754_v26 = vsub.f32 %v4546_v27, %v4430_v10 }
 0x1c2   :  { %v1017_v7 = vadd.f32 %v4702_v22, %v1016_v5 }
 0x1c3   :  { %v4749_v50 = vadd.f32 %v1352_v45, %v1240_v57 }
 0x1c4   :  { %1063 = vmatmul.f32.gmra.mxu0 %v870_v58  ;;  %1176 = vmatmul.f32.gmra.mxu1 %v871_v56  ;;  %v1130_v44 = vadd.f32 %v1129_v62, %v1017_v7  ;;  %v878_v58 = vmul.f32 %v750_v18, %v750_v18  ;;  %v879_v56 = vmul.f32 %v751_v38, %v751_v38 }
 0x1c5   :  { %1289 = vmatmul.f32.gmra.mxu2 %v872_v37  ;;  %1402 = vmatmul.f32.gmra.mxu3 %v873_v9  ;;  %v880_v37 = vmul.f32 %v752_v51, %v752_v51  ;;  %v881_v9 = vmul.f32 %v753_v24, %v753_v24 }
 0x1c6   :  { %1478 = vrot.lane.b32.xlu1 %v4749_v50, %s3784_s17 }
 0x1c7   :  { %1604 = vrot.lane.b32.xlu0 %v4734_v42, %s3783_s16 }
 0x1c8   :  { %v1242_v31 = vpop.f32.mrf.mxu2  ;;  %v1355_v52 = vpop.f32.mrf.mxu3 }
 0x1c9   :  { %v1243_v2 = vadd.f32 %v1242_v31, %v1130_v44  ;;  %v1019_v13 = vpop.f32.mrf.mxu0  ;;  %v1132_v3 = vpop.f32.mrf.mxu1 }
 0x1ca   :  { %v1020_v15 = vadd.f32 %v4702_v22, %v1019_v13  ;;  %v883_v13 = vmul.f32 %v755_v12, %v755_v12 }
 0x1cb   :  { %v4764_v53 = vadd.f32 %v1355_v52, %v1243_v2  ;;  %v882_v2 = vmul.f32 %v754_v26, %v754_v26 }
 0x1cc   :  { %1066 = vmatmul.f32.gmra.mxu0 %v874_v1  ;;  %1179 = vmatmul.f32.gmra.mxu1 %v875_v11  ;;  %v1133_v45 = vadd.f32 %v1132_v3, %v1020_v15  ;;  %v884_v3 = vmul.f32 %v756_v63, %v756_v63  ;;  %v885_v1 = vmul.f32 %v757_v39, %v757_v39 }
 0x1cd   :  { %1292 = vmatmul.f32.gmra.mxu2 %v876_v4  ;;  %1405 = vmatmul.f32.gmra.mxu3 %v877_v23  ;;  %v759_v4 = vsub.f32 %v4564_v14, %v4432_v61  ;;  %v760_v23 = vsub.f32 %v4574_v35, %v4434_v60  ;;  %v761_v15 = vsub.f32 %v4576_v40, %v4436_v16 }
 0x1ce   :  { %1606 = vrot.lane.b32.xlu1 %v4749_v50, %s3783_s16  ;;  %1608 = vrot.lane.b32.xlu2 %v4764_v53, %s3783_s16  ;;  %v762_v40 = vsub.f32 %v4578_v41, %v4430_v10 }
 0x1cf   :  { %1734 = vrot.lane.b32.xlu0 %v4749_v50, %s3782_s0 }
 0x1d0   :  { %v1245_v19 = vpop.f32.mrf.mxu2  ;;  %v1358_v57 = vpop.f32.mrf.mxu3  ;;  %v890_v12 = vmul.f32 %v762_v40, %v762_v40 }
 0x1d1   :  { %v1246_v5 = vadd.f32 %v1245_v19, %v1133_v45  ;;  %v1022_v0 = vpop.f32.mrf.mxu0  ;;  %v1135_v62 = vpop.f32.mrf.mxu1  ;;  %v886_v45 = vmul.f32 %v758_v32, %v758_v32  ;;  %v887_v19 = vmul.f32 %v759_v4, %v759_v4 }
 0x1d2   :  { %v1023_v21 = vadd.f32 %v4702_v22, %v1022_v0 }
 0x1d3   :  { %v4781_v7 = vadd.f32 %v1358_v57, %v1246_v5  ;;  %v888_v57 = vmul.f32 %v760_v23, %v760_v23  ;;  %v889_v5 = vmul.f32 %v761_v15, %v761_v15  ;;  %v771_v15 = vsub.f32 %v4612_v34, %v4432_v61 }
 0x1d4   :  { %1069 = vmatmul.f32.gmra.mxu0 %v878_v58  ;;  %1182 = vmatmul.f32.gmra.mxu1 %v879_v56  ;;  %v1136_v17 = vadd.f32 %v1135_v62, %v1023_v21  ;;  %v763_v62 = vsub.f32 %v4580_v20, %v4432_v61  ;;  %v764_v58 = vsub.f32 %v4590_v43, %v4434_v60 }
 0x1d5   :  { %1295 = vmatmul.f32.gmra.mxu2 %v880_v37  ;;  %1408 = vmatmul.f32.gmra.mxu3 %v881_v9  ;;  %v765_v56 = vsub.f32 %v4592_v46, %v4436_v16  ;;  %v766_v46 = vsub.f32 %v4594_v47, %v4430_v10 }
 0x1d6   :  { %1480 = vrot.lane.b32.xlu1 %v4764_v53, %s3784_s17  ;;  %1482 = vrot.lane.b32.xlu2 %v4781_v7, %s3784_s17  ;;  %v891_v63 = vmul.f32 %v763_v62, %v763_v62  ;;  %v892_v39 = vmul.f32 %v764_v58, %v764_v58  ;;  %v6516_v62 = vld [vmem:[#allocation27_spill] sm:$0xff] }
 0x1d7   :  { %1610 = vrot.lane.b32.xlu0 %v4781_v7, %s3783_s16  ;;  %v774_v58 = vsub.f32 %v6516_v62, %v4430_v10  ;;  %v6528_v62 = vld [vmem:[#allocation19_spill] sm:$0xff] }
 0x1d8   :  { %v1248_v27 = vpop.f32.mrf.mxu2  ;;  %v1361_v44 = vpop.f32.mrf.mxu3 }
 0x1d9   :  { %v1249_v31 = vadd.f32 %v1248_v27, %v1136_v17  ;;  %v1025_v6 = vpop.f32.mrf.mxu0  ;;  %v1138_v52 = vpop.f32.mrf.mxu1  ;;  %v893_v17 = vmul.f32 %v765_v56, %v765_v56  ;;  %v6517_v56 = vld [vmem:[#allocation28_spill] sm:$0xff] }
 0x1da   :  { %v1026_v29 = vadd.f32 %v4702_v22, %v1025_v6  ;;  %v769_v6 = vsub.f32 %v4608_v54, %v4436_v16  ;;  %v770_v54 = vsub.f32 %v4610_v55, %v4430_v10 }
 0x1db   :  { %v4798_v11 = vadd.f32 %v1361_v44, %v1249_v31  ;;  %v767_v44 = vsub.f32 %v4596_v28, %v4432_v61  ;;  %v768_v31 = vsub.f32 %v4606_v49, %v4434_v60 }
 0x1dc   :  { %1072 = vmatmul.f32.gmra.mxu0 %v882_v2  ;;  %1185 = vmatmul.f32.gmra.mxu1 %v883_v13  ;;  %v1139_v18 = vadd.f32 %v1138_v52, %v1026_v29  ;;  %v897_v4 = vmul.f32 %v769_v6, %v769_v6 }
 0x1dd   :  { %6510 = vst [vmem:[#allocation25_spill] sm:$0xff] %v4798_v11  ;;  %1298 = vmatmul.f32.gmra.mxu2 %v884_v3  ;;  %1411 = vmatmul.f32.gmra.mxu3 %v885_v1  ;;  %v894_v1 = vmul.f32 %v766_v46, %v766_v46  ;;  %v895_v29 = vmul.f32 %v767_v44, %v767_v44 }
 0x1de   :  { %1736 = vrot.lane.b32.xlu1 %v4764_v53, %s3782_s0  ;;  %1738 = vrot.lane.b32.xlu2 %v4781_v7, %s3782_s0  ;;  %v896_v32 = vmul.f32 %v768_v31, %v768_v31  ;;  %v902_v46 = vmul.f32 %v774_v58, %v774_v58  ;;  %v785_v58 = vsub.f32 %v6528_v62, %v4436_v16 }
 0x1df   :  { %1740 = vrot.lane.b32.xlu0 %v4798_v11, %s3782_s0 }
 0x1e0   :  { %v1251_v33 = vpop.f32.mrf.mxu2  ;;  %v1364_v38 = vpop.f32.mrf.mxu3 }
 0x1e1   :  { %v1252_v51 = vadd.f32 %v1251_v33, %v1139_v18  ;;  %v1028_v14 = vpop.f32.mrf.mxu0  ;;  %v1141_v24 = vpop.f32.mrf.mxu1  ;;  %v772_v18 = vsub.f32 %v4622_v59, %v4434_v60  ;;  %v6514_v33 = vld [vmem:[#allocation26_spill] sm:$0xff] }
 0x1e2   :  { %v1029_v35 = vadd.f32 %v4702_v22, %v1028_v14 }
 0x1e3   :  { %v4815_v0 = vadd.f32 %v1364_v38, %v1252_v51  ;;  %v773_v38 = vsub.f32 %v6514_v33, %v4436_v16 }
 0x1e4   :  { %1075 = vmatmul.f32.gmra.mxu0 %v886_v45  ;;  %1188 = vmatmul.f32.gmra.mxu1 %v887_v19  ;;  %v1142_v37 = vadd.f32 %v1141_v24, %v1029_v35  ;;  %v898_v19 = vmul.f32 %v770_v54, %v770_v54 }
 0x1e5   :  { %6511 = vst [vmem:[#allocation30_spill] sm:$0xff] %v4815_v0  ;;  %1301 = vmatmul.f32.gmra.mxu2 %v888_v57  ;;  %1414 = vmatmul.f32.gmra.mxu3 %v889_v5  ;;  %v899_v57 = vmul.f32 %v771_v15, %v771_v15  ;;  %v900_v5 = vmul.f32 %v772_v18, %v772_v18 }
 0x1e6   :  { %1612 = vrot.lane.b32.xlu1 %v4798_v11, %s3783_s16  ;;  %1484 = vrot.lane.b32.xlu2 %v4798_v11, %s3784_s17  ;;  %v901_v35 = vmul.f32 %v773_v38, %v773_v38 }
 0x1e7   :  { %1486 = vrot.lane.b32.xlu0 %v4815_v0, %s3784_s17 }
 0x1e8   :  { %v1254_v41 = vpop.f32.mrf.mxu2  ;;  %v1367_v9 = vpop.f32.mrf.mxu3 }
 0x1e9   :  { %v1255_v21 = vadd.f32 %v1254_v41, %v1142_v37  ;;  %v1031_v20 = vpop.f32.mrf.mxu0  ;;  %v1144_v26 = vpop.f32.mrf.mxu1  ;;  %v775_v37 = vsub.f32 %v6517_v56, %v4432_v61  ;;  %v6518_v41 = vld [vmem:[#allocation12_spill] sm:$0xff] }
 0x1ea   :  { %v1032_v43 = vadd.f32 %v4702_v22, %v1031_v20 }
 0x1eb   :  { %v4832_v27 = vadd.f32 %v1367_v9, %v1255_v21  ;;  %v776_v9 = vsub.f32 %v6518_v41, %v4434_v60  ;;  %v6519_v21 = vld [vmem:[#allocation13_spill] sm:$0xff]  ;;  %v903_v44 = vmul.f32 %v775_v37, %v775_v37 }
 0x1ec   :  { %1078 = vmatmul.f32.gmra.mxu0 %v890_v12  ;;  %1191 = vmatmul.f32.gmra.mxu1 %v891_v63  ;;  %v1145_v52 = vadd.f32 %v1144_v26, %v1032_v43  ;;  %v777_v20 = vsub.f32 %v6519_v21, %v4436_v16 }
 0x1ed   :  { %6512 = vst [vmem:[#allocation31_spill] sm:$0xff] %v4832_v27  ;;  %1304 = vmatmul.f32.gmra.mxu2 %v892_v39  ;;  %1417 = vmatmul.f32.gmra.mxu3 %v893_v17  ;;  %v904_v31 = vmul.f32 %v776_v9, %v776_v9 }
 0x1ee   :  { %1742 = vrot.lane.b32.xlu1 %v4815_v0, %s3782_s0  ;;  %1614 = vrot.lane.b32.xlu2 %v4815_v0, %s3783_s16  ;;  %v905_v6 = vmul.f32 %v777_v20, %v777_v20 }
 0x1ef   :  { %1616 = vrot.lane.b32.xlu0 %v4832_v27, %s3783_s16 }
 0x1f0   :  { %v1257_v47 = vpop.f32.mrf.mxu2  ;;  %v1370_v2 = vpop.f32.mrf.mxu3 }
 0x1f1   :  { %v1258_v13 = vadd.f32 %v1257_v47, %v1145_v52  ;;  %v1034_v28 = vpop.f32.mrf.mxu0  ;;  %v1147_v3 = vpop.f32.mrf.mxu1 }
 0x1f2   :  { %v1035_v49 = vadd.f32 %v4702_v22, %v1034_v28  ;;  %v6522_v28 = vld [vmem:[#allocation29_spill] sm:$0xff] }
 0x1f3   :  { %v4849_v23 = vadd.f32 %v1370_v2, %v1258_v13  ;;  %v6521_v2 = vld [vmem:[#allocation14_spill] sm:$0xff] }
 0x1f4   :  { %1081 = vmatmul.f32.gmra.mxu0 %v894_v1  ;;  %1194 = vmatmul.f32.gmra.mxu1 %v895_v29  ;;  %v1148_v51 = vadd.f32 %v1147_v3, %v1035_v49  ;;  %v778_v13 = vsub.f32 %v6521_v2, %v4430_v10  ;;  %v779_v3 = vsub.f32 %v6522_v28, %v4432_v61  ;;  %v6523_v1 = vld [vmem:[#allocation15_spill] sm:$0xff] }
 0x1f5   :  { %6513 = vst [vmem:[#allocation32_spill] sm:$0xff] %v4849_v23  ;;  %1307 = vmatmul.f32.gmra.mxu2 %v896_v32  ;;  %1420 = vmatmul.f32.gmra.mxu3 %v897_v4  ;;  %v780_v29 = vsub.f32 %v6523_v1, %v4434_v60  ;;  %v6524_v32 = vld [vmem:[#allocation16_spill] sm:$0xff] }
 0x1f6   :  { %1488 = vrot.lane.b32.xlu1 %v4832_v27, %s3784_s17  ;;  %1744 = vrot.lane.b32.xlu2 %v4832_v27, %s3782_s0  ;;  %v781_v4 = vsub.f32 %v6524_v32, %v4436_v16 }
 0x1f7   :  { %1746 = vrot.lane.b32.xlu0 %v4849_v23, %s3782_s0 }
 0x1f8   :  { %v1260_v55 = vpop.f32.mrf.mxu2  ;;  %v1373_v14 = vpop.f32.mrf.mxu3 }
 0x1f9   :  { %v1261_v24 = vadd.f32 %v1260_v55, %v1148_v51  ;;  %v1037_v34 = vpop.f32.mrf.mxu0  ;;  %v1150_v45 = vpop.f32.mrf.mxu1  ;;  %v906_v51 = vmul.f32 %v778_v13, %v778_v13  ;;  %v907_v55 = vmul.f32 %v779_v3, %v779_v3 }
 0x1fa   :  { %v1038_v59 = vadd.f32 %v4702_v22, %v1037_v34 }
 0x1fb   :  { %v4866_v40 = vadd.f32 %v1373_v14, %v1261_v24  ;;  %v908_v14 = vmul.f32 %v780_v29, %v780_v29  ;;  %v909_v24 = vmul.f32 %v781_v4, %v781_v4 }
 0x1fc   :  { %1084 = vmatmul.f32.gmra.mxu0 %v898_v19  ;;  %1197 = vmatmul.f32.gmra.mxu1 %v899_v57  ;;  %v1151_v26 = vadd.f32 %v1150_v45, %v1038_v59  ;;  %v6526_v19 = vld [vmem:[#allocation17_spill] sm:$0xff]  ;;  %v784_v59 = vsub.f32 %v4670_v36, %v4434_v60 }
 0x1fd   :  { %6515 = vst [vmem:[#allocation26_spill] sm:$0xff] %v4866_v40  ;;  %1310 = vmatmul.f32.gmra.mxu2 %v900_v5  ;;  %1423 = vmatmul.f32.gmra.mxu3 %v901_v35  ;;  %v782_v57 = vsub.f32 %v6526_v19, %v4430_v10  ;;  %v6527_v5 = vld [vmem:[#allocation18_spill] sm:$0xff] }
 0x1fe   :  { %1618 = vrot.lane.b32.xlu1 %v4849_v23, %s3783_s16  ;;  %1490 = vrot.lane.b32.xlu2 %v4849_v23, %s3784_s17  ;;  %v783_v35 = vsub.f32 %v6527_v5, %v4432_v61 }
 0x1ff   :  { %1492 = vrot.lane.b32.xlu0 %v4866_v40, %s3784_s17  ;;  %v910_v20 = vmul.f32 %v782_v57, %v782_v57 }
 0x200   :  { %v1263_v12 = vpop.f32.mrf.mxu2  ;;  %v1376_v63 = vpop.f32.mrf.mxu3 }
 0x201   :  { %v1264_v39 = vadd.f32 %v1263_v12, %v1151_v26  ;;  %v1040_v17 = vpop.f32.mrf.mxu0  ;;  %v1153_v43 = vpop.f32.mrf.mxu1  ;;  %v911_v26 = vmul.f32 %v783_v35, %v783_v35  ;;  %v912_v12 = vmul.f32 %v784_v59, %v784_v59 }
 0x202   :  { %v1041_v47 = vadd.f32 %v4702_v22, %v1040_v17 }
 0x203   :  { %v4883_v52 = vadd.f32 %v1376_v63, %v1264_v39  ;;  %v913_v63 = vmul.f32 %v785_v58, %v785_v58 }
 0x204   :  { %1087 = vmatmul.f32.gmra.mxu0 %v902_v46  ;;  %1200 = vmatmul.f32.gmra.mxu1 %v903_v44  ;;  %v1154_v49 = vadd.f32 %v1153_v43, %v1041_v47  ;;  %v786_v43 = vsub.f32 %v4674_v48, %v4430_v10  ;;  %v6530_v46 = vld [vmem:[#allocation20_spill] sm:$0xff]  ;;  %v789_v47 = vsub.f32 %v4688_v25, %v4436_v16  ;;  %v6532_v25 = vld [vmem:[#allocation21_spill] sm:$0xff] }
 0x205   :  { %6520 = vst [vmem:[#allocation27_spill] sm:$0xff] %v4883_v52  ;;  %1313 = vmatmul.f32.gmra.mxu2 %v904_v31  ;;  %1426 = vmatmul.f32.gmra.mxu3 %v905_v6  ;;  %v787_v44 = vsub.f32 %v6530_v46, %v4432_v61  ;;  %v788_v6 = vsub.f32 %v4686_v8, %v4434_v60 }
 0x206   :  { %1748 = vrot.lane.b32.xlu1 %v4866_v40, %s3782_s0  ;;  %1620 = vrot.lane.b32.xlu2 %v4866_v40, %s3783_s16  ;;  %v914_v1 = vmul.f32 %v786_v43, %v786_v43  ;;  %v917_v4 = vmul.f32 %v789_v47, %v789_v47 }
 0x207   :  { %1622 = vrot.lane.b32.xlu0 %v4883_v52, %s3783_s16  ;;  %v915_v29 = vmul.f32 %v787_v44, %v787_v44  ;;  %v916_v32 = vmul.f32 %v788_v6, %v788_v6 }
 0x208   :  { %v1266_v54 = vpop.f32.mrf.mxu2  ;;  %v1379_v15 = vpop.f32.mrf.mxu3 }
 0x209   :  { %v1267_v18 = vadd.f32 %v1266_v54, %v1154_v49  ;;  %v1043_v33 = vpop.f32.mrf.mxu0  ;;  %v1156_v38 = vpop.f32.mrf.mxu1 }
 0x20a   :  { %v1044_v45 = vadd.f32 %v4702_v22, %v1043_v33 }
 0x20b   :  { %v4900_v34 = vadd.f32 %v1379_v15, %v1267_v18  ;;  %v790_v15 = vsub.f32 %v6532_v25, %v4430_v10  ;;  %v6533_v18 = vld [vmem:[#allocation22_spill] sm:$0xff] }
 0x20c   :  { %1090 = vmatmul.f32.gmra.mxu0 %v906_v51  ;;  %1203 = vmatmul.f32.gmra.mxu1 %v907_v55  ;;  %v1157_v56 = vadd.f32 %v1156_v38, %v1044_v45  ;;  %v791_v33 = vsub.f32 %v6533_v18, %v4432_v61  ;;  %v6534_v38 = vld [vmem:[#allocation23_spill] sm:$0xff]  ;;  %v6535_v55 = vld [vmem:[#allocation24_spill] sm:$0xff] }
 0x20d   :  { %6525 = vst [vmem:[#allocation28_spill] sm:$0xff] %v4900_v34  ;;  %1316 = vmatmul.f32.gmra.mxu2 %v908_v14  ;;  %1429 = vmatmul.f32.gmra.mxu3 %v909_v24  ;;  %v792_v51 = vsub.f32 %v6534_v38, %v4434_v60  ;;  %v793_v14 = vsub.f32 %v6535_v55, %v4436_v16 }
 0x20e   :  { %1494 = vrot.lane.b32.xlu1 %v4883_v52, %s3784_s17  ;;  %1750 = vrot.lane.b32.xlu2 %v4883_v52, %s3782_s0  ;;  %v918_v5 = vmul.f32 %v790_v15, %v790_v15  ;;  %v919_v35 = vmul.f32 %v791_v33, %v791_v33 }
 0x20f   :  { %1752 = vrot.lane.b32.xlu0 %v4900_v34, %s3782_s0  ;;  %v920_v59 = vmul.f32 %v792_v51, %v792_v51  ;;  %v921_v62 = vmul.f32 %v793_v14, %v793_v14 }
 0x210   :  { %v1269_v37 = vpop.f32.mrf.mxu2  ;;  %v1382_v9 = vpop.f32.mrf.mxu3 }
 0x211   :  { %v1270_v41 = vadd.f32 %v1269_v37, %v1157_v56  ;;  %v1046_v21 = vpop.f32.mrf.mxu0  ;;  %v1159_v36 = vpop.f32.mrf.mxu1 }
 0x212   :  { %v1047_v17 = vadd.f32 %v4702_v22, %v1046_v21  ;;  %v4924_v31 = vpop.permute.xlu2 %1602 }
 0x213   :  { %v4917_v39 = vadd.f32 %v1382_v9, %v1270_v41 }
 0x214   :  { %1093 = vmatmul.f32.gmra.mxu0 %v910_v20  ;;  %1206 = vmatmul.f32.gmra.mxu1 %v911_v26  ;;  %v1160_v2 = vadd.f32 %v1159_v36, %v1047_v17 }
 0x215   :  { %6529 = vst [vmem:[#allocation12_spill] sm:$0xff] %v4917_v39  ;;  %1319 = vmatmul.f32.gmra.mxu2 %v912_v12  ;;  %1432 = vmatmul.f32.gmra.mxu3 %v913_v63 }
 0x216   :  { %1624 = vrot.lane.b32.xlu1 %v4900_v34, %s3783_s16  ;;  %1496 = vrot.lane.b32.xlu2 %v4900_v34, %s3784_s17 }
 0x217   :  { %1498 = vrot.lane.b32.xlu0 %v4917_v39, %s3784_s17 }
 0x218   :  { %v1272_v48 = vpop.f32.mrf.mxu2  ;;  %v1385_v28 = vpop.f32.mrf.mxu3 }
 0x219   :  { %v1273_v13 = vadd.f32 %v1272_v48, %v1160_v2  ;;  %v1049_v3 = vpop.f32.mrf.mxu0  ;;  %v1162_v8 = vpop.f32.mrf.mxu1 }
 0x21a   :  { %v1050_v54 = vadd.f32 %v4702_v22, %v1049_v3  ;;  %v1733_v10 = vpop.permute.xlu2 %1732 }
 0x21b   :  { %v4936_v49 = vadd.f32 %v1385_v28, %v1273_v13 }
 0x21c   :  { %1096 = vmatmul.f32.gmra.mxu0 %v914_v1  ;;  %1209 = vmatmul.f32.gmra.mxu1 %v915_v29  ;;  %v1163_v24 = vadd.f32 %v1162_v8, %v1050_v54 }
 0x21d   :  { %6531 = vst [vmem:[#allocation13_spill] sm:$0xff] %v4936_v49  ;;  %1322 = vmatmul.f32.gmra.mxu2 %v916_v32  ;;  %1435 = vmatmul.f32.gmra.mxu3 %v917_v4 }
 0x21e   :  { %1754 = vrot.lane.b32.xlu1 %v4917_v39, %s3782_s0  ;;  %1626 = vrot.lane.b32.xlu2 %v4917_v39, %s3783_s16 }
 0x21f   :  { %1628 = vrot.lane.b32.xlu0 %v4936_v49, %s3783_s16 }
 0x220   :  { %v1275_v45 = vpop.f32.mrf.mxu2  ;;  %v1388_v61 = vpop.f32.mrf.mxu3 }
 0x221   :  { %v1276_v19 = vadd.f32 %v1275_v45, %v1163_v24  ;;  %v1052_v57 = vpop.f32.mrf.mxu0  ;;  %v1165_v16 = vpop.f32.mrf.mxu1 }
 0x222   :  { %v1053_v60 = vadd.f32 %v4702_v22, %v1052_v57 }
 0x223   :  { %v4953_v58 = vadd.f32 %v1388_v61, %v1276_v19 }
 0x224   :  { %1212 = vmatmul.f32.gmra.mxu1 %v919_v35  ;;  %1099 = vmatmul.f32.gmra.mxu0 %v918_v5  ;;  %v1166_v56 = vadd.f32 %v1165_v16, %v1053_v60 }
 0x225   :  { %6536 = vst [vmem:[#allocation14_spill] sm:$0xff] %v4953_v58  ;;  %1325 = vmatmul.f32.gmra.mxu2 %v920_v59  ;;  %1438 = vmatmul.f32.gmra.mxu3 %v921_v62 }
 0x226   :  { %1500 = vrot.lane.b32.xlu1 %v4936_v49, %s3784_s17  ;;  %1756 = vrot.lane.b32.xlu2 %v4936_v49, %s3782_s0 }
 0x227   :  { %1758 = vrot.lane.b32.xlu0 %v4953_v58, %s3782_s0 }
 0x228   :  { %v4962_v37 = vpop.permute.xlu2 %1608  ;;  %v1278_v9 = vpop.f32.mrf.mxu2 }
 0x229   :  { %v1475_v41 = vpop.permute.xlu0 %1474  ;;  %v1279_v21 = vadd.f32 %v1278_v9, %v1166_v56  ;;  %v1391_v20 = vpop.f32.mrf.mxu3 }
 0x22a   :  { %v1570_v12 = vmax.f32 %v4717_v30, %v1475_v41  ;;  %v1731_v63 = vpop.permute.xlu1 %1730  ;;  %v1055_v17 = vpop.f32.mrf.mxu0 }
 0x22b   :  { %v4964_v26 = vadd.f32 %v1391_v20, %v1279_v21  ;;  %v1056_v44 = vadd.f32 %v4702_v22, %v1055_v17  ;;  %v1168_v47 = vpop.f32.mrf.mxu1 }
 0x22c   :  { %v1698_v43 = vmax.f32 %v1570_v12, %v4924_v31 }
 0x22d   :  { %6537 = vst [vmem:[#allocation29_spill] sm:$0xff] %v4964_v26  ;;  %v1169_v48 = vadd.f32 %v1168_v47, %v1056_v44 }
 0x22e   :  { %1630 = vrot.lane.b32.xlu1 %v4953_v58, %s3783_s16  ;;  %1502 = vrot.lane.b32.xlu2 %v4953_v58, %s3784_s17  ;;  %v4977_v6 = vmax.f32 %v1698_v43, %v1731_v63 }
 0x22f   :  { %1504 = vrot.lane.b32.xlu0 %v4964_v26, %s3784_s17 }
 0x230   :  { %v4973_v36 = vpop.permute.xlu2 %1482  ;;  %6538 = vst [vmem:[#allocation15_spill] sm:$0xff] %v4977_v6  ;;  %v1281_v2 = vpop.f32.mrf.mxu2 }
 0x231   :  { %v1477_v46 = vpop.permute.xlu0 %1476  ;;  %v1282_v28 = vadd.f32 %v1281_v2, %v1169_v48  ;;  %v1394_v1 = vpop.f32.mrf.mxu3 }
 0x232   :  { %v1571_v32 = vmax.f32 %v4734_v42, %v1477_v46  ;;  %v1058_v4 = vpop.f32.mrf.mxu0 }
 0x233   :  { %v4987_v29 = vadd.f32 %v1394_v1, %v1282_v28  ;;  %v1059_v18 = vadd.f32 %v4702_v22, %v1058_v4  ;;  %v1171_v38 = vpop.f32.mrf.mxu1 }
 0x235   :  { %6539 = vst [vmem:[#allocation16_spill] sm:$0xff] %v4987_v29  ;;  %v1172_v55 = vadd.f32 %v1171_v38, %v1059_v18 }
 0x236   :  { %1760 = vrot.lane.b32.xlu1 %v4964_v26, %s3782_s0  ;;  %1632 = vrot.lane.b32.xlu2 %v4964_v26, %s3783_s16 }
 0x237   :  { %1986 = vrot.lane.b32.xlu0 %v4977_v6, %s3785_s18 }
 0x238   :  { %v1479_v13 = vpop.permute.xlu1 %1478  ;;  %v4985_v31 = vpop.permute.xlu2 %1738 }
 0x239   :  { %v1605_v3 = vpop.permute.xlu0 %1604  ;;  %v1284_v51 = vpop.f32.mrf.mxu2  ;;  %v1572_v57 = vmax.f32 %v4749_v50, %v1479_v13 }
 0x23a   :  { %v1699_v25 = vmax.f32 %v1571_v32, %v1605_v3  ;;  %v1285_v45 = vadd.f32 %v1284_v51, %v1172_v55  ;;  %v1397_v61 = vpop.f32.mrf.mxu3  ;;  %v1061_v5 = vpop.f32.mrf.mxu0  ;;  %v1574_v55 = vmax.f32 %v4781_v7, %v4973_v36 }
 0x23b   :  { %v1062_v16 = vadd.f32 %v4702_v22, %v1061_v5  ;;  %v1174_v41 = vpop.f32.mrf.mxu1 }
 0x23c   :  { %v4999_v33 = vmax.f32 %v1699_v25, %v1733_v10  ;;  %v5009_v10 = vadd.f32 %v1397_v61, %v1285_v45 }
 0x23d   :  { %v1175_v21 = vadd.f32 %v1174_v41, %v1062_v16 }
 0x23e   :  { %2690 = vrot.lane.b32.xlu2 %v4977_v6, %s3786_s19  ;;  %2338 = vrot.lane.b32.xlu1 %v4977_v6, %s3787_s20  ;;  %6540 = vst [vmem:[#allocation17_spill] sm:$0xff] %v4999_v33 }
 0x23f   :  { %1634 = vrot.lane.b32.xlu0 %v4987_v29, %s3783_s16  ;;  %6541 = vst [vmem:[#allocation18_spill] sm:$0xff] %v5009_v10 }
 0x240   :  { %v1607_v54 = vpop.permute.xlu1 %1606  ;;  %v4996_v8 = vpop.permute.xlu2 %1484 }
 0x241   :  { %v1735_v15 = vpop.permute.xlu0 %1734  ;;  %v1700_v62 = vmax.f32 %v1572_v57, %v1607_v54  ;;  %v1287_v9 = vpop.f32.mrf.mxu2 }
 0x242   :  { %v1288_v63 = vadd.f32 %v1287_v9, %v1175_v21  ;;  %v1400_v43 = vpop.f32.mrf.mxu3  ;;  %v1064_v44 = vpop.f32.mrf.mxu0 }
 0x243   :  { %v5023_v56 = vmax.f32 %v1700_v62, %v1735_v15  ;;  %v1065_v28 = vadd.f32 %v4702_v22, %v1064_v44  ;;  %v1177_v32 = vpop.f32.mrf.mxu1  ;;  %v1575_v44 = vmax.f32 %v4798_v11, %v4996_v8 }
 0x244   :  { %v5035_v46 = vadd.f32 %v1400_v43, %v1288_v63 }
 0x245   :  { %6542 = vst [vmem:[#allocation19_spill] sm:$0xff] %v5023_v56  ;;  %v1178_v54 = vadd.f32 %v1177_v32, %v1065_v28 }
 0x246   :  { %1762 = vrot.lane.b32.xlu2 %v4987_v29, %s3782_s0  ;;  %1506 = vrot.lane.b32.xlu1 %v4987_v29, %s3784_s17  ;;  %6543 = vst [vmem:[#allocation20_spill] sm:$0xff] %v5035_v46 }
 0x247   :  { %2692 = vrot.lane.b32.xlu0 %v4999_v33, %s3786_s19 }
 0x248   :  { %v1481_v14 = vpop.permute.xlu1 %1480  ;;  %v5007_v24 = vpop.permute.xlu2 %1614 }
 0x249   :  { %v1611_v19 = vpop.permute.xlu0 %1610  ;;  %v1573_v47 = vmax.f32 %v4764_v53, %v1481_v14  ;;  %v1290_v4 = vpop.f32.mrf.mxu2 }
 0x24a   :  { %v1291_v18 = vadd.f32 %v1290_v4, %v1178_v54  ;;  %v1403_v38 = vpop.f32.mrf.mxu3  ;;  %v1067_v14 = vpop.f32.mrf.mxu0  ;;  %v1702_v57 = vmax.f32 %v1574_v55, %v1611_v19 }
 0x24b   :  { %v1701_v3 = vmax.f32 %v1573_v47, %v4962_v37  ;;  %v1180_v16 = vpop.f32.mrf.mxu1 }
 0x24c   :  { %v5066_v51 = vadd.f32 %v1403_v38, %v1291_v18  ;;  %v5084_v62 = vmax.f32 %v1702_v57, %v4985_v31 }
 0x24e   :  { %2340 = vrot.lane.b32.xlu2 %v4999_v33, %s3787_s20  ;;  %1988 = vrot.lane.b32.xlu1 %v4999_v33, %s3785_s18  ;;  %6545 = vst [vmem:[#allocation22_spill] sm:$0xff] %v5066_v51 }
 0x24f   :  { %1764 = vrot.lane.b32.xlu0 %v5009_v10, %s3782_s0  ;;  %6546 = vst [vmem:[#allocation23_spill] sm:$0xff] %v5084_v62 }
 0x250   :  { %v1737_v35 = vpop.permute.xlu1 %1736  ;;  %v5018_v59 = vpop.permute.xlu2 %1744 }
 0x251   :  { %v5020_v60 = vpop.permute.xlu0 %1740  ;;  %v5052_v1 = vmax.f32 %v1701_v3, %v1737_v35  ;;  %v1068_v35 = vadd.f32 %v4702_v22, %v1067_v14  ;;  %v1293_v41 = vpop.f32.mrf.mxu2 }
 0x252   :  { %v1406_v31 = vpop.f32.mrf.mxu3  ;;  %v1070_v47 = vpop.f32.mrf.mxu0 }
 0x253   :  { %6544 = vst [vmem:[#allocation21_spill] sm:$0xff] %v5052_v1  ;;  %v1181_v36 = vadd.f32 %v1180_v16, %v1068_v35  ;;  %v1071_v54 = vadd.f32 %v4702_v22, %v1070_v47  ;;  %v1183_v38 = vpop.f32.mrf.mxu1 }
 0x255   :  { %v1294_v21 = vadd.f32 %v1293_v41, %v1181_v36  ;;  %v1184_v8 = vadd.f32 %v1183_v38, %v1071_v54 }
 0x256   :  { %1508 = vrot.lane.b32.xlu2 %v5009_v10, %s3784_s17  ;;  %1636 = vrot.lane.b32.xlu1 %v5009_v10, %s3783_s16 }
 0x257   :  { %2342 = vrot.lane.b32.xlu0 %v5023_v56, %s3787_s20  ;;  %v5098_v43 = vadd.f32 %v1406_v31, %v1294_v21 }
 0x258   :  { %v1613_v20 = vpop.permute.xlu1 %1612  ;;  %v5031_v12 = vpop.permute.xlu2 %1490 }
 0x259   :  { %v5033_v17 = vpop.permute.xlu0 %1486  ;;  %6547 = vst [vmem:[#allocation24_spill] sm:$0xff] %v5098_v43  ;;  %v1703_v32 = vmax.f32 %v1575_v44, %v1613_v20  ;;  %v1296_v55 = vpop.f32.mrf.mxu2  ;;  %v5146_v44 = vld [vmem:[#allocation6] ss:$0 sm:$0xff] }
 0x25a   :  { %v1297_v22 = vadd.f32 %v1296_v55, %v1184_v8  ;;  %v1576_v16 = vmax.f32 %v4815_v0, %v5033_v17  ;;  %v1073_v41 = vpop.f32.mrf.mxu0 }
 0x25b   :  { %v5116_v18 = vmax.f32 %v1703_v32, %v5020_v60  ;;  %v1409_v60 = vpop.f32.mrf.mxu3  ;;  %v1074_v47 = vadd.f32 %v5146_v44, %v1073_v41  ;;  %v1186_v17 = vpop.f32.mrf.mxu1 }
 0x25c   :  { %v5130_v35 = vadd.f32 %v1409_v60, %v1297_v22  ;;  %v1704_v32 = vmax.f32 %v1576_v16, %v5007_v24 }
 0x25d   :  { %6548 = vst [vmem:[#allocation33_spill] sm:$0xff] %v5116_v18  ;;  %v1187_v55 = vadd.f32 %v1186_v17, %v1074_v47 }
 0x25e   :  { %2694 = vrot.lane.b32.xlu1 %v5023_v56, %s3786_s19  ;;  %1990 = vrot.lane.b32.xlu2 %v5023_v56, %s3785_s18  ;;  %6549 = vst [vmem:[#allocation34_spill] sm:$0xff] %v5130_v35 }
 0x25f   :  { %1510 = vrot.lane.b32.xlu0 %v5035_v46, %s3784_s17 }
 0x260   :  { %v5044_v2 = vpop.permute.xlu1 %1742  ;;  %v5046_v48 = vpop.permute.xlu2 %1620 }
 0x261   :  { %v5048_v13 = vpop.permute.xlu0 %1616  ;;  %v5151_v54 = vmax.f32 %v1704_v32, %v5044_v2  ;;  %v1299_v38 = vpop.f32.mrf.mxu2 }
 0x262   :  { %v1300_v24 = vadd.f32 %v1299_v38, %v1187_v55  ;;  %v1076_v47 = vpop.f32.mrf.mxu0 }
 0x263   :  { %6550 = vst [vmem:[#allocation35_spill] sm:$0xff] %v5151_v54  ;;  %v1412_v2 = vpop.f32.mrf.mxu3 }
 0x264   :  { %v5165_v16 = vadd.f32 %v1412_v2, %v1300_v24  ;;  %v1189_v2 = vpop.f32.mrf.mxu1 }
 0x266   :  { %1766 = vrot.lane.b32.xlu1 %v5035_v46, %s3782_s0  ;;  %1638 = vrot.lane.b32.xlu2 %v5035_v46, %s3783_s16  ;;  %6551 = vst [vmem:[#allocation36_spill] sm:$0xff] %v5165_v16 }
 0x267   :  { %1992 = vrot.lane.b32.xlu0 %v5052_v1, %s3785_s18 }
 0x268   :  { %v5060_v25 = vpop.permute.xlu1 %1488  ;;  %v5062_v15 = vpop.permute.xlu2 %1750 }
 0x269   :  { %v5064_v37 = vpop.permute.xlu0 %1746  ;;  %v1577_v41 = vmax.f32 %v4832_v27, %v5060_v25  ;;  %v1077_v25 = vadd.f32 %v5146_v44, %v1076_v47 }
 0x26b   :  { %v1705_v38 = vmax.f32 %v1577_v41, %v5048_v13 }
 0x26d   :  { %v5184_v24 = vmax.f32 %v1705_v38, %v5018_v59  ;;  %v1415_v59 = vpop.f32.mrf.mxu3 }
 0x26e   :  { %2344 = vrot.lane.b32.xlu1 %v5052_v1, %s3787_s20  ;;  %2696 = vrot.lane.b32.xlu2 %v5052_v1, %s3786_s19 }
 0x26f   :  { %1640 = vrot.lane.b32.xlu0 %v5066_v51, %s3783_s16  ;;  %6552 = vst [vmem:[#allocation37_spill] sm:$0xff] %v5184_v24 }
 0x270   :  { %v5076_v45 = vpop.permute.xlu1 %1618  ;;  %v5078_v61 = vpop.permute.xlu2 %1496 }
 0x271   :  { %v5080_v5 = vpop.permute.xlu0 %1492 }
 0x276   :  { %1512 = vrot.lane.b32.xlu1 %v5066_v51, %s3784_s17  ;;  %1768 = vrot.lane.b32.xlu2 %v5066_v51, %s3782_s0 }
 0x277   :  { %2698 = vrot.lane.b32.xlu0 %v5084_v62, %s3786_s19 }
 0x278   :  { %v5092_v19 = vpop.permute.xlu1 %1748  ;;  %v5094_v9 = vpop.permute.xlu2 %1626 }
 0x279   :  { %v5096_v63 = vpop.permute.xlu0 %1622 }
 0x27e   :  { %2346 = vrot.lane.b32.xlu2 %v5084_v62, %s3787_s20  ;;  %1994 = vrot.lane.b32.xlu1 %v5084_v62, %s3785_s18 }
 0x27f   :  { %1770 = vrot.lane.b32.xlu0 %v5098_v43, %s3782_s0 }
 0x280   :  { %v5108_v28 = vpop.permute.xlu1 %1494  ;;  %v5110_v3 = vpop.permute.xlu2 %1756 }
 0x281   :  { %v5112_v4 = vpop.permute.xlu0 %1752  ;;  %v1580_v6 = vmax.f32 %v4883_v52, %v5108_v28 }
 0x286   :  { %1514 = vrot.lane.b32.xlu2 %v5098_v43, %s3784_s17  ;;  %1642 = vrot.lane.b32.xlu1 %v5098_v43, %s3783_s16 }
 0x287   :  { %2348 = vrot.lane.b32.xlu0 %v5116_v18, %s3787_s20 }
 0x288   :  { %v5124_v20 = vpop.permute.xlu1 %1624  ;;  %v5126_v14 = vpop.permute.xlu2 %1502 }
 0x289   :  { %v5128_v57 = vpop.permute.xlu0 %1498 }
 0x28e   :  { %2700 = vrot.lane.b32.xlu1 %v5116_v18, %s3786_s19  ;;  %1996 = vrot.lane.b32.xlu2 %v5116_v18, %s3785_s18  ;;  %v1302_v18 = vpop.f32.mrf.mxu2 }
 0x28f   :  { %1516 = vrot.lane.b32.xlu0 %v5130_v35, %s3784_s17 }
 0x290   :  { %v5140_v36 = vpop.permute.xlu1 %1754  ;;  %v5142_v21 = vpop.permute.xlu2 %1632 }
 0x291   :  { %v5144_v31 = vpop.permute.xlu0 %1628 }
 0x296   :  { %1772 = vrot.lane.b32.xlu1 %v5130_v35, %s3782_s0  ;;  %1644 = vrot.lane.b32.xlu2 %v5130_v35, %s3783_s16  ;;  %v1305_v33 = vpop.f32.mrf.mxu2 }
 0x297   :  { %1998 = vrot.lane.b32.xlu0 %v5151_v54, %s3785_s18 }
 0x298   :  { %v5159_v8 = vpop.permute.xlu1 %1500  ;;  %v5161_v22 = vpop.permute.xlu2 %2690 }
 0x299   :  { %v5163_v60 = vpop.permute.xlu0 %1758 }
 0x29e   :  { %2702 = vrot.lane.b32.xlu2 %v5151_v54, %s3786_s19  ;;  %2350 = vrot.lane.b32.xlu1 %v5151_v54, %s3787_s20  ;;  %v1190_v54 = vadd.f32 %v1189_v2, %v1077_v25  ;;  %v1578_v25 = vmax.f32 %v4849_v23, %v5031_v12  ;;  %v1079_v2 = vpop.f32.mrf.mxu0 }
 0x29f   :  { %1646 = vrot.lane.b32.xlu0 %v5165_v16, %s3783_s16 }
 0x2a0   :  { %v5175_v32 = vpop.permute.xlu1 %1630  ;;  %v5177_v17 = vpop.permute.xlu2 %1762  ;;  %v1303_v47 = vadd.f32 %v1302_v18, %v1190_v54  ;;  %v1706_v54 = vmax.f32 %v1578_v25, %v5076_v45 }
 0x2a1   :  { %v5180_v55 = vpop.permute.xlu0 %1504 }
 0x2a2   :  { %v5198_v38 = vadd.f32 %v1415_v59, %v1303_v47  ;;  %v1080_v59 = vadd.f32 %v5146_v44, %v1079_v2  ;;  %v5217_v56 = vmax.f32 %v1706_v54, %v5064_v37  ;;  %v1418_v37 = vpop.f32.mrf.mxu3 }
 0x2a4   :  { %6553 = vst [vmem:[#allocation38_spill] sm:$0xff] %v5198_v38 }
 0x2a5   :  { %6554 = vst [vmem:[#allocation39_spill] sm:$0xff] %v5217_v56 }
 0x2a6   :  { %1774 = vrot.lane.b32.xlu2 %v5165_v16, %s3782_s0  ;;  %1518 = vrot.lane.b32.xlu1 %v5165_v16, %s3784_s17  ;;  %v1308_v16 = vpop.f32.mrf.mxu2 }
 0x2a7   :  { %2704 = vrot.lane.b32.xlu0 %v5184_v24, %s3786_s19 }
 0x2a8   :  { %v5192_v13 = vpop.permute.xlu1 %1760  ;;  %v5194_v41 = vpop.permute.xlu2 %2340 }
 0x2a9   :  { %v5196_v62 = vpop.permute.xlu0 %1986 }
 0x2ae   :  { %2352 = vrot.lane.b32.xlu2 %v5184_v24, %s3787_s20  ;;  %2000 = vrot.lane.b32.xlu1 %v5184_v24, %s3785_s18  ;;  %v1192_v24 = vpop.f32.mrf.mxu1 }
 0x2af   :  { %1776 = vrot.lane.b32.xlu0 %v5198_v38, %s3782_s0  ;;  %v1193_v12 = vadd.f32 %v1192_v24, %v1080_v59  ;;  %v1579_v24 = vmax.f32 %v4866_v40, %v5080_v5  ;;  %v1082_v59 = vpop.f32.mrf.mxu0 }
 0x2b0   :  { %v5208_v1 = vpop.permute.xlu1 %2338  ;;  %v5210_v18 = vpop.permute.xlu2 %1508 }
 0x2b1   :  { %v5213_v47 = vpop.permute.xlu0 %1634  ;;  %v1306_v2 = vadd.f32 %v1305_v33, %v1193_v12 }
 0x2b3   :  { %v5231_v54 = vadd.f32 %v1418_v37, %v1306_v2  ;;  %v1083_v2 = vadd.f32 %v5146_v44, %v1082_v59  ;;  %v1707_v37 = vmax.f32 %v1579_v24, %v5046_v48 }
 0x2b5   :  { %6555 = vst [vmem:[#allocation40_spill] sm:$0xff] %v5231_v54  ;;  %v5250_v27 = vmax.f32 %v1707_v37, %v5092_v19  ;;  %v1421_v19 = vpop.f32.mrf.mxu3 }
 0x2b6   :  { %1520 = vrot.lane.b32.xlu2 %v5198_v38, %s3784_s17  ;;  %1648 = vrot.lane.b32.xlu1 %v5198_v38, %s3783_s16 }
 0x2b7   :  { %2354 = vrot.lane.b32.xlu0 %v5217_v56, %s3787_s20  ;;  %6556 = vst [vmem:[#allocation41_spill] sm:$0xff] %v5250_v27 }
 0x2b8   :  { %v5225_v45 = vpop.permute.xlu1 %1506  ;;  %v5227_v25 = vpop.permute.xlu2 %1990 }
 0x2b9   :  { %v5229_v23 = vpop.permute.xlu0 %2692 }
 0x2be   :  { %2706 = vrot.lane.b32.xlu1 %v5217_v56, %s3786_s19  ;;  %2002 = vrot.lane.b32.xlu2 %v5217_v56, %s3785_s18  ;;  %v1195_v56 = vpop.f32.mrf.mxu1 }
 0x2bf   :  { %1522 = vrot.lane.b32.xlu0 %v5231_v54, %s3784_s17  ;;  %v1196_v5 = vadd.f32 %v1195_v56, %v1083_v2  ;;  %v1085_v56 = vpop.f32.mrf.mxu0 }
 0x2c0   :  { %v5241_v38 = vpop.permute.xlu1 %1988  ;;  %v5243_v33 = vpop.permute.xlu2 %1638  ;;  %v1086_v28 = vadd.f32 %v5146_v44, %v1085_v56 }
 0x2c1   :  { %v5245_v12 = vpop.permute.xlu0 %1764  ;;  %v1309_v48 = vadd.f32 %v1308_v16, %v1196_v5  ;;  %v1708_v5 = vmax.f32 %v1580_v6, %v5096_v63 }
 0x2c3   :  { %v5264_v37 = vadd.f32 %v1421_v19, %v1309_v48  ;;  %v5283_v19 = vmax.f32 %v1708_v5, %v5062_v15  ;;  %v1424_v15 = vpop.f32.mrf.mxu3 }
 0x2c5   :  { %6557 = vst [vmem:[#allocation42_spill] sm:$0xff] %v5264_v37 }
 0x2c6   :  { %1778 = vrot.lane.b32.xlu1 %v5231_v54, %s3782_s0  ;;  %1650 = vrot.lane.b32.xlu2 %v5231_v54, %s3783_s16  ;;  %6558 = vst [vmem:[#allocation43_spill] sm:$0xff] %v5283_v19  ;;  %v1198_v52 = vpop.f32.mrf.mxu1  ;;  %v1311_v54 = vpop.f32.mrf.mxu2 }
 0x2c7   :  { %2004 = vrot.lane.b32.xlu0 %v5250_v27, %s3785_s18 }
 0x2c8   :  { %v5258_v40 = vpop.permute.xlu1 %1636  ;;  %v5260_v59 = vpop.permute.xlu2 %2696 }
 0x2c9   :  { %v5262_v24 = vpop.permute.xlu0 %2342 }
 0x2ce   :  { %2708 = vrot.lane.b32.xlu2 %v5250_v27, %s3786_s19  ;;  %2356 = vrot.lane.b32.xlu1 %v5250_v27, %s3787_s20  ;;  %v1199_v27 = vadd.f32 %v1198_v52, %v1086_v28  ;;  %v1581_v52 = vmax.f32 %v4900_v34, %v5078_v61  ;;  %v1088_v28 = vpop.f32.mrf.mxu0  ;;  %v1314_v11 = vpop.f32.mrf.mxu2 }
 0x2cf   :  { %1652 = vrot.lane.b32.xlu0 %v5264_v37, %s3783_s16 }
 0x2d0   :  { %v5274_v2 = vpop.permute.xlu1 %2694  ;;  %v5276_v16 = vpop.permute.xlu2 %1768  ;;  %v1312_v56 = vadd.f32 %v1311_v54, %v1199_v27  ;;  %v1709_v54 = vmax.f32 %v1581_v52, %v5124_v20 }
 0x2d1   :  { %v5279_v48 = vpop.permute.xlu0 %1510 }
 0x2d2   :  { %v5297_v5 = vadd.f32 %v1424_v15, %v1312_v56  ;;  %v1089_v15 = vadd.f32 %v5146_v44, %v1088_v28  ;;  %v5316_v0 = vmax.f32 %v1709_v54, %v5112_v4  ;;  %v1427_v4 = vpop.f32.mrf.mxu3 }
 0x2d4   :  { %6559 = vst [vmem:[#allocation44_spill] sm:$0xff] %v5297_v5 }
 0x2d5   :  { %6560 = vst [vmem:[#allocation45_spill] sm:$0xff] %v5316_v0 }
 0x2d6   :  { %1780 = vrot.lane.b32.xlu2 %v5264_v37, %s3782_s0  ;;  %1524 = vrot.lane.b32.xlu1 %v5264_v37, %s3784_s17  ;;  %v1317_v43 = vpop.f32.mrf.mxu2 }
 0x2d7   :  { %2710 = vrot.lane.b32.xlu0 %v5283_v19, %s3786_s19 }
 0x2d8   :  { %v5291_v6 = vpop.permute.xlu1 %1766  ;;  %v5293_v63 = vpop.permute.xlu2 %2346 }
 0x2d9   :  { %v5295_v35 = vpop.permute.xlu0 %1992 }
 0x2de   :  { %2358 = vrot.lane.b32.xlu2 %v5283_v19, %s3787_s20  ;;  %2006 = vrot.lane.b32.xlu1 %v5283_v19, %s3785_s18  ;;  %v1201_v19 = vpop.f32.mrf.mxu1 }
 0x2df   :  { %1782 = vrot.lane.b32.xlu0 %v5297_v5, %s3782_s0  ;;  %v1202_v61 = vadd.f32 %v1201_v19, %v1089_v15  ;;  %v1582_v19 = vmax.f32 %v4917_v39, %v5128_v57  ;;  %v1091_v15 = vpop.f32.mrf.mxu0 }
 0x2e0   :  { %v5307_v37 = vpop.permute.xlu1 %2344  ;;  %v5309_v27 = vpop.permute.xlu2 %1514 }
 0x2e1   :  { %v5312_v56 = vpop.permute.xlu0 %1640  ;;  %v1315_v28 = vadd.f32 %v1314_v11, %v1202_v61 }
 0x2e3   :  { %v5330_v54 = vadd.f32 %v1427_v4, %v1315_v28  ;;  %v1092_v28 = vadd.f32 %v5146_v44, %v1091_v15  ;;  %v1710_v4 = vmax.f32 %v1582_v19, %v5094_v9 }
 0x2e5   :  { %6562 = vst [vmem:[#allocation47_spill] sm:$0xff] %v5330_v54 }
 0x2e6   :  { %1526 = vrot.lane.b32.xlu2 %v5297_v5, %s3784_s17  ;;  %1654 = vrot.lane.b32.xlu1 %v5297_v5, %s3783_s16 }
 0x2e7   :  { %2360 = vrot.lane.b32.xlu0 %v5316_v0, %s3787_s20 }
 0x2e8   :  { %v5324_v20 = vpop.permute.xlu1 %1512  ;;  %v5326_v52 = vpop.permute.xlu2 %1996 }
 0x2e9   :  { %6561 = vst [vmem:[#allocation46_spill] sm:$0xff] %v5326_v52  ;;  %v5328_v34 = vpop.permute.xlu0 %2698  ;;  %v5349_v52 = vmax.f32 %v1710_v4, %v5140_v36  ;;  %v1430_v36 = vpop.f32.mrf.mxu3 }
 0x2eb   :  { %6564 = vst [vmem:[#allocation49_spill] sm:$0xff] %v5349_v52 }
 0x2ee   :  { %2712 = vrot.lane.b32.xlu1 %v5316_v0, %s3786_s19  ;;  %2008 = vrot.lane.b32.xlu2 %v5316_v0, %s3785_s18  ;;  %v1204_v0 = vpop.f32.mrf.mxu1 }
 0x2ef   :  { %1528 = vrot.lane.b32.xlu0 %v5330_v54, %s3784_s17  ;;  %v1205_v57 = vadd.f32 %v1204_v0, %v1092_v28  ;;  %v1094_v0 = vpop.f32.mrf.mxu0 }
 0x2f0   :  { %v5340_v5 = vpop.permute.xlu1 %1994  ;;  %v5342_v11 = vpop.permute.xlu2 %1644 }
 0x2f1   :  { %6563 = vst [vmem:[#allocation48_spill] sm:$0xff] %v5342_v11  ;;  %v5344_v61 = vpop.permute.xlu0 %1770  ;;  %v1318_v9 = vadd.f32 %v1317_v43, %v1205_v57  ;;  %v1583_v11 = vmax.f32 %v4936_v49, %v5159_v8  ;;  %v1095_v8 = vadd.f32 %v5146_v44, %v1094_v0 }
 0x2f3   :  { %v5363_v4 = vadd.f32 %v1430_v36, %v1318_v9  ;;  %v1711_v57 = vmax.f32 %v1583_v11, %v5144_v31 }
 0x2f5   :  { %6565 = vst [vmem:[#allocation50_spill] sm:$0xff] %v5363_v4  ;;  %v5382_v36 = vmax.f32 %v1711_v57, %v5110_v3  ;;  %v1433_v3 = vpop.f32.mrf.mxu3 }
 0x2f6   :  { %1784 = vrot.lane.b32.xlu1 %v5330_v54, %s3782_s0  ;;  %1656 = vrot.lane.b32.xlu2 %v5330_v54, %s3783_s16  ;;  %v1207_v49 = vpop.f32.mrf.mxu1  ;;  %v1320_v54 = vpop.f32.mrf.mxu2 }
 0x2f7   :  { %2010 = vrot.lane.b32.xlu0 %v5349_v52, %s3785_s18  ;;  %6567 = vst [vmem:[#allocation52_spill] sm:$0xff] %v5382_v36 }
 0x2f8   :  { %v5357_v39 = vpop.permute.xlu1 %1642  ;;  %v5359_v15 = vpop.permute.xlu2 %2702 }
 0x2f9   :  { %v5361_v19 = vpop.permute.xlu0 %2348 }
 0x2fe   :  { %2714 = vrot.lane.b32.xlu2 %v5349_v52, %s3786_s19  ;;  %2362 = vrot.lane.b32.xlu1 %v5349_v52, %s3787_s20  ;;  %v1208_v52 = vadd.f32 %v1207_v49, %v1095_v8  ;;  %v1584_v49 = vmax.f32 %v4953_v58, %v5126_v14  ;;  %v1097_v8 = vpop.f32.mrf.mxu0 }
 0x2ff   :  { %1658 = vrot.lane.b32.xlu0 %v5363_v4, %s3783_s16 }
 0x300   :  { %v5373_v28 = vpop.permute.xlu1 %2700  ;;  %v5375_v43 = vpop.permute.xlu2 %1774  ;;  %v1321_v0 = vadd.f32 %v1320_v54, %v1208_v52  ;;  %v1712_v54 = vmax.f32 %v1584_v49, %v5175_v32 }
 0x301   :  { %6566 = vst [vmem:[#allocation51_spill] sm:$0xff] %v5375_v43  ;;  %v5378_v9 = vpop.permute.xlu0 %1516 }
 0x302   :  { %v5396_v57 = vadd.f32 %v1433_v3, %v1321_v0  ;;  %v1098_v3 = vadd.f32 %v5146_v44, %v1097_v8 }
 0x304   :  { %6570 = vst [vmem:[#allocation55_spill] sm:$0xff] %v5396_v57 }
 0x306   :  { %1786 = vrot.lane.b32.xlu2 %v5363_v4, %s3782_s0  ;;  %1530 = vrot.lane.b32.xlu1 %v5363_v4, %s3784_s17 }
 0x307   :  { %2716 = vrot.lane.b32.xlu0 %v5382_v36, %s3786_s19 }
 0x308   :  { %v5390_v31 = vpop.permute.xlu1 %1772  ;;  %v5392_v11 = vpop.permute.xlu2 %2352 }
 0x309   :  { %6568 = vst [vmem:[#allocation53_spill] sm:$0xff] %v5392_v11  ;;  %v5394_v43 = vpop.permute.xlu0 %1998  ;;  %v1323_v11 = vpop.f32.mrf.mxu2 }
 0x30a   :  { %6569 = vst [vmem:[#allocation54_spill] sm:$0xff] %v5394_v43  ;;  %v5415_v43 = vmax.f32 %v1712_v54, %v5163_v60  ;;  %v1436_v60 = vpop.f32.mrf.mxu3 }
 0x30c   :  { %6571 = vst [vmem:[#allocation56_spill] sm:$0xff] %v5415_v43 }
 0x30e   :  { %2364 = vrot.lane.b32.xlu2 %v5382_v36, %s3787_s20  ;;  %2012 = vrot.lane.b32.xlu1 %v5382_v36, %s3785_s18  ;;  %v1210_v36 = vpop.f32.mrf.mxu1 }
 0x30f   :  { %1788 = vrot.lane.b32.xlu0 %v5396_v57, %s3782_s0  ;;  %v1211_v14 = vadd.f32 %v1210_v36, %v1098_v3  ;;  %v1585_v36 = vmax.f32 %v4964_v26, %v5180_v55  ;;  %v1100_v55 = vpop.f32.mrf.mxu0 }
 0x310   :  { %v5406_v4 = vpop.permute.xlu1 %2350  ;;  %v5408_v52 = vpop.permute.xlu2 %1520 }
 0x311   :  { %v5411_v0 = vpop.permute.xlu0 %1646  ;;  %v1324_v8 = vadd.f32 %v1323_v11, %v1211_v14  ;;  %v2434_v11 = vsub.f32 %v4717_v30, %v5208_v1  ;;  %v2082_v1 = vsub.f32 %v4717_v30, %v5196_v62  ;;  %v2786_v62 = vsub.f32 %v4717_v30, %v5161_v22 }
 0x312   :  { %v2435_v22 = vsub.f32 %v4734_v42, %v5194_v41 }
 0x313   :  { %v5429_v54 = vadd.f32 %v1436_v60, %v1324_v8  ;;  %v1713_v60 = vmax.f32 %v1585_v36, %v5142_v21  ;;  %v1101_v36 = vadd.f32 %v5146_v44, %v1100_v55 }
 0x315   :  { %6572 = vst [vmem:[#allocation57_spill] sm:$0xff] %v5429_v54 }
 0x316   :  { %1532 = vrot.lane.b32.xlu2 %v5396_v57, %s3784_s17  ;;  %1660 = vrot.lane.b32.xlu1 %v5396_v57, %s3783_s16  ;;  %v2466_v57 = vmul.f32 1.442695, %v2434_v11  ;;  %v2114_v11 = vmul.f32 1.442695, %v2082_v1  ;;  %v2818_v1 = vmul.f32 1.442695, %v2786_v62 }
 0x317   :  { %2366 = vrot.lane.b32.xlu0 %v5415_v43, %s3787_s20 }
 0x318   :  { %v5423_v32 = vpop.permute.xlu1 %1518  ;;  %v5425_v49 = vpop.permute.xlu2 %2002  ;;  %3381 = vpow2.f32 %v2466_v57 }
 0x319   :  { %v5427_v58 = vpop.permute.xlu0 %2704  ;;  %3383 = vpow2.f32 %v2114_v11  ;;  %v2468_v11 = vmul.f32 1.442695, %v2435_v22 }
 0x31a   :  { %3385 = vpow2.f32 %v2818_v1 }
 0x31b   :  { %3387 = vpow2.f32 %v2468_v11 }
 0x31e   :  { %2718 = vrot.lane.b32.xlu1 %v5415_v43, %s3786_s19  ;;  %2014 = vrot.lane.b32.xlu2 %v5415_v43, %s3785_s18  ;;  %v5449_v43 = vmax.f32 %v1713_v60, %v5192_v13  ;;  %v1213_v60 = vpop.f32.mrf.mxu1 }
 0x31f   :  { %1534 = vrot.lane.b32.xlu0 %v5429_v54, %s3784_s17 }
 0x320   :  { %v5441_v3 = vpop.permute.xlu1 %2000  ;;  %v5443_v14 = vpop.permute.xlu2 %1650  ;;  %6575 = vst [vmem:[#allocation60_spill] sm:$0xff] %v5449_v43 }
 0x321   :  { %6573 = vst [vmem:[#allocation58_spill] sm:$0xff] %v5443_v14  ;;  %v5445_v8 = vpop.permute.xlu0 %1776  ;;  %v1326_v14 = vpop.f32.mrf.mxu2 }
 0x322   :  { %6574 = vst [vmem:[#allocation59_spill] sm:$0xff] %v5445_v8  ;;  %v1214_v8 = vadd.f32 %v1213_v60, %v1101_v36  ;;  %v1439_v36 = vpop.f32.mrf.mxu3 }
 0x324   :  { %v1327_v57 = vadd.f32 %v1326_v14, %v1214_v8  ;;  %v2083_v14 = vsub.f32 %v4734_v42, %v5241_v38  ;;  %v2787_v38 = vsub.f32 %v4734_v42, %v5229_v23  ;;  %v2084_v23 = vsub.f32 %v4749_v50, %v5227_v25 }
 0x326   :  { %1790 = vrot.lane.b32.xlu1 %v5429_v54, %s3782_s0  ;;  %1662 = vrot.lane.b32.xlu2 %v5429_v54, %s3783_s16  ;;  %v3382_v54 = vpop.eup %3381  ;;  %v5479_v60 = vadd.f32 %v1439_v36, %v1327_v57  ;;  %v2116_v57 = vmul.f32 1.442695, %v2083_v14  ;;  %v2820_v1 = vmul.f32 1.442695, %v2787_v38 }
 0x327   :  { %2016 = vrot.lane.b32.xlu0 %v5449_v43, %s3785_s18 }
 0x328   :  { %v5459_v26 = vpop.permute.xlu1 %1648  ;;  %v5461_v21 = vpop.permute.xlu2 %2708  ;;  %6578 = vst [vmem:[#allocation63_spill] sm:$0xff] %v5479_v60  ;;  %3389 = vpow2.f32 %v2116_v57 }
 0x329   :  { %6576 = vst [vmem:[#allocation61_spill] sm:$0xff] %v5461_v21  ;;  %v5463_v13 = vpop.permute.xlu0 %2354  ;;  %3391 = vpow2.f32 %v2820_v1 }
 0x32a   :  { %6577 = vst [vmem:[#allocation62_spill] sm:$0xff] %v5463_v13  ;;  %v3384_v13 = vpop.eup %3383 }
 0x32b   :  { %v3386_v41 = vpop.eup %3385 }
 0x32c   :  { %v3388_v36 = vpop.eup %3387 }
 0x32e   :  { %2720 = vrot.lane.b32.xlu2 %v5449_v43, %s3786_s19  ;;  %2368 = vrot.lane.b32.xlu1 %v5449_v43, %s3787_s20  ;;  %v1586_v43 = vmax.f32 %v4987_v29, %v5225_v45  ;;  %v3390_v22 = vpop.eup %3389 }
 0x32f   :  { %2562 = vrot.lane.b32.xlu0 %v3382_v54, %s3783_s16 }
 0x330   :  { %v5473_v21 = vpop.permute.xlu1 %2706  ;;  %v5475_v44 = vpop.permute.xlu2 %1780  ;;  %v1714_v54 = vmax.f32 %v1586_v43, %v5213_v47 }
 0x331   :  { %v5477_v55 = vpop.permute.xlu0 %1522 }
 0x332   :  { %v5500_v62 = vmax.f32 %v1714_v54, %v5177_v17  ;;  %v1587_v54 = vmax.f32 %v5009_v10, %v5210_v18  ;;  %v2118_v18 = vmul.f32 1.442695, %v2084_v23  ;;  %v3392_v10 = vpop.eup %3391  ;;  %v1588_v23 = vmax.f32 %v5035_v46, %v5279_v48 }
 0x334   :  { %6579 = vst [vmem:[#allocation64_spill] sm:$0xff] %v5500_v62  ;;  %v1715_v14 = vmax.f32 %v1587_v54, %v5258_v40  ;;  %3393 = vpow2.f32 %v2118_v18  ;;  %v2436_v40 = vsub.f32 %v4749_v50, %v5262_v24  ;;  %v2789_v54 = vsub.f32 %v4764_v53, %v5260_v59 }
 0x335   :  { %v2437_v24 = vsub.f32 %v4764_v53, %v5307_v37 }
 0x336   :  { %2210 = vrot.lane.b32.xlu2 %v3384_v13, %s3784_s17  ;;  %1536 = vrot.lane.b32.xlu1 %v5479_v60, %s3784_s17  ;;  %v5531_v38 = vmax.f32 %v1715_v14, %v5245_v12  ;;  %v2470_v12 = vmul.f32 1.442695, %v2436_v40  ;;  %v2824_v18 = vmul.f32 1.442695, %v2789_v54  ;;  %v1716_v40 = vmax.f32 %v1588_v23, %v5243_v33 }
 0x337   :  { %1664 = vrot.lane.b32.xlu0 %v5479_v60, %s3783_s16  ;;  %v1589_v23 = vmax.f32 %v5066_v51, %v5324_v20 }
 0x338   :  { %v5493_v8 = vpop.permute.xlu1 %1778  ;;  %v5495_v45 = vpop.permute.xlu2 %2358  ;;  %6580 = vst [vmem:[#allocation65_spill] sm:$0xff] %v5531_v38  ;;  %3395 = vpow2.f32 %v2470_v12  ;;  %v5567_v12 = vmax.f32 %v1716_v40, %v5291_v6 }
 0x339   :  { %v5497_v13 = vpop.permute.xlu0 %2004  ;;  %3397 = vpow2.f32 %v2824_v18  ;;  %v2085_v18 = vsub.f32 %v4764_v53, %v5295_v35  ;;  %v1717_v40 = vmax.f32 %v1589_v23, %v5312_v56  ;;  %v2790_v35 = vsub.f32 %v4781_v7, %v5328_v34  ;;  %v6585_v34 = vld [vmem:[#allocation25_spill] sm:$0xff] }
 0x33a   :  { %6581 = vst [vmem:[#allocation66_spill] sm:$0xff] %v5567_v12 }
 0x33e   :  { %2914 = vrot.lane.b32.xlu2 %v3386_v41, %s3782_s0  ;;  %2018 = vrot.lane.b32.xlu1 %v5500_v62, %s3785_s18 }
 0x33f   :  { %2722 = vrot.lane.b32.xlu0 %v5500_v62, %s3786_s19 }
 0x340   :  { %v5509_v47 = vpop.permute.xlu1 %2356  ;;  %v5511_v43 = vpop.permute.xlu2 %1526 }
 0x341   :  { %v5513_v17 = vpop.permute.xlu0 %1652 }
 0x346   :  { %1792 = vrot.lane.b32.xlu2 %v5479_v60, %s3782_s0  ;;  %2564 = vrot.lane.b32.xlu1 %v3388_v36, %s3783_s16 }
 0x347   :  { %2212 = vrot.lane.b32.xlu0 %v3390_v22, %s3784_s17  ;;  %v3394_v22 = vpop.eup %3393 }
 0x348   :  { %v5524_v11 = vpop.permute.xlu1 %1524  ;;  %v5526_v57 = vpop.permute.xlu2 %2008 }
 0x349   :  { %v5528_v41 = vpop.permute.xlu0 %2710 }
 0x34e   :  { %2370 = vrot.lane.b32.xlu2 %v5500_v62, %s3787_s20  ;;  %2724 = vrot.lane.b32.xlu1 %v5531_v38, %s3786_s19  ;;  %v3396_v62 = vpop.eup %3395 }
 0x34f   :  { %2916 = vrot.lane.b32.xlu0 %v3392_v10, %s3782_s0  ;;  %v2788_v10 = vsub.f32 %v4749_v50, %v5274_v2  ;;  %v2472_v2 = vmul.f32 1.442695, %v2437_v24  ;;  %v3398_v6 = vpop.eup %3397  ;;  %v2438_v24 = vsub.f32 %v4781_v7, %v5293_v63 }
 0x350   :  { %v5540_v25 = vpop.permute.xlu1 %2006  ;;  %v5542_v1 = vpop.permute.xlu2 %1656 }
 0x351   :  { %v5544_v36 = vpop.permute.xlu0 %1782  ;;  %v2474_v63 = vmul.f32 1.442695, %v2438_v24 }
 0x356   :  { %2020 = vrot.lane.b32.xlu2 %v5531_v38, %s3785_s18  ;;  %2214 = vrot.lane.b32.xlu1 %v3394_v22, %s3784_s17  ;;  %v2822_v22 = vmul.f32 1.442695, %v2788_v10 }
 0x357   :  { %2372 = vrot.lane.b32.xlu0 %v5531_v38, %s3787_s20 }
 0x358   :  { %v5559_v14 = vpop.permute.xlu1 %1654  ;;  %v5561_v59 = vpop.permute.xlu2 %2714  ;;  %3399 = vpow2.f32 %v2822_v22  ;;  %v2086_v22 = vsub.f32 %v4781_v7, %v5340_v5 }
 0x359   :  { %v5563_v48 = vpop.permute.xlu0 %2360  ;;  %3401 = vpow2.f32 %v2472_v2 }
 0x35a   :  { %v2122_v46 = vmul.f32 1.442695, %v2086_v22  ;;  %3403 = vpow2.f32 %v2474_v63  ;;  %v6584_v63 = vld [vmem:[#allocation46_spill] sm:$0xff] }
 0x35e   :  { %2566 = vrot.lane.b32.xlu2 %v3396_v62, %s3783_s16  ;;  %2374 = vrot.lane.b32.xlu1 %v5567_v12, %s3787_s20  ;;  %v3400_v10 = vpop.eup %3399 }
 0x35f   :  { %2022 = vrot.lane.b32.xlu0 %v5567_v12, %s3785_s18  ;;  %v3402_v62 = vpop.eup %3401 }
 0x360   :  { %v5574_v37 = vpop.permute.xlu1 %2712  ;;  %v5576_v33 = vpop.permute.xlu2 %1786 }
 0x361   :  { %v5578_v54 = vpop.permute.xlu0 %1528  ;;  %v3404_v23 = vpop.eup %3403 }
 0x366   :  { %2918 = vrot.lane.b32.xlu2 %v3400_v10, %s3782_s0  ;;  %2920 = vrot.lane.b32.xlu1 %v3398_v6, %s3782_s0  ;;  %v2120_v10 = vmul.f32 1.442695, %v2085_v18  ;;  %v5599_v6 = vmax.f32 %v1717_v40, %v5276_v16  ;;  %v6583_v40 = vld [vmem:[#allocation24_spill] sm:$0xff] }
 0x367   :  { %2568 = vrot.lane.b32.xlu0 %v3402_v62, %s3783_s16  ;;  %v2826_v62 = vmul.f32 1.442695, %v2790_v35  ;;  %v1590_v22 = vmax.f32 %v6583_v40, %v5309_v27 }
 0x368   :  { %v5592_v20 = vpop.permute.xlu1 %1784  ;;  %v5594_v2 = vpop.permute.xlu2 %2364  ;;  %6582 = vst [vmem:[#allocation67_spill] sm:$0xff] %v5599_v6  ;;  %3405 = vpow2.f32 %v2120_v10 }
 0x369   :  { %v5596_v38 = vpop.permute.xlu0 %2010  ;;  %3407 = vpow2.f32 %v2122_v46  ;;  %v2087_v46 = vsub.f32 %v6585_v34, %v6584_v63  ;;  %v1718_v10 = vmax.f32 %v1590_v22, %v5357_v39  ;;  %v2439_v39 = vsub.f32 %v6585_v34, %v5361_v19  ;;  %v6588_v63 = vld [vmem:[#allocation30_spill] sm:$0xff] }
 0x36a   :  { %3409 = vpow2.f32 %v2826_v62  ;;  %v3788_v19 = vmov 0.0  }
 0x36b   :  { %v2124_v29 = vmul.f32 1.442695, %v2087_v46  ;;  %v5630_v27 = vmax.f32 %v1718_v10, %v5344_v61  ;;  %v2476_v61 = vmul.f32 1.442695, %v2439_v39  ;;  %v2792_v46 = vsub.f32 %v6588_v63, %v5359_v15  ;;  %v6589_v10 = vld [vmem:[#allocation34_spill] sm:$0xff]  ;;  %76 = vst.msk [vmem:[#allocation2] sm:$0xff] %vm75_vm0, %v3788_v19 }
 0x36c   :  { %77 = vst.msk [vmem:[#allocation2 + $0x8] sm:$0xff] %vm75_vm0, %v3788_v19  ;;  %v2440_v15 = vsub.f32 %v6588_v63, %v5406_v4 }
 0x36d   :  { %6586 = vst [vmem:[#allocation46_spill] sm:$0xff] %v5630_v27  ;;  %3411 = vpow2.f32 %v2124_v29  ;;  %v1591_v29 = vmax.f32 %v6589_v10, %v5378_v9 }
 0x36e   :  { %2726 = vrot.lane.b32.xlu2 %v5567_v12, %s3786_s19  ;;  %2024 = vrot.lane.b32.xlu1 %v5599_v6, %s3785_s18  ;;  %v3406_v24 = vpop.eup %3405  ;;  %3413 = vpow2.f32 %v2476_v61  ;;  %78 = vst.msk [vmem:[#allocation2 + $0x10] sm:$0xff] %vm75_vm0, %v3788_v19  ;;  %v2478_v10 = vmul.f32 1.442695, %v2440_v15 }
 0x36f   :  { %2728 = vrot.lane.b32.xlu0 %v5599_v6, %s3786_s19  ;;  %v3408_v18 = vpop.eup %3407  ;;  %79 = vst.msk [vmem:[#allocation2 + $0x18] sm:$0xff] %vm75_vm0, %v3788_v19 }
 0x370   :  { %v5609_v5 = vpop.permute.xlu1 %2362  ;;  %v5611_v16 = vpop.permute.xlu2 %1532  ;;  %80 = vst.msk [vmem:[#allocation2 + $0x20] sm:$0xff] %vm75_vm0, %v3788_v19 }
 0x371   :  { %v5613_v56 = vpop.permute.xlu0 %1658  ;;  %81 = vst.msk [vmem:[#allocation2 + $0x28] sm:$0xff] %vm75_vm0, %v3788_v19 }
 0x372   :  { %82 = vst.msk [vmem:[#allocation2 + $0x30] sm:$0xff] %vm75_vm0, %v3788_v19 }
 0x373   :  { %83 = vst.msk [vmem:[#allocation2 + $0x38] sm:$0xff] %vm75_vm0, %v3788_v19 }
 0x374   :  { %84 = vst.msk [vmem:[#allocation2 + $0x40] sm:$0xff] %vm75_vm0, %v3788_v19 }
 0x375   :  { %85 = vst.msk [vmem:[#allocation2 + $0x48] sm:$0xff] %vm75_vm0, %v3788_v19 }
 0x376   :  { %2216 = vrot.lane.b32.xlu2 %v3406_v24, %s3784_s17  ;;  %2570 = vrot.lane.b32.xlu1 %v3404_v23, %s3783_s16  ;;  %v3410_v24 = vpop.eup %3409  ;;  %86 = vst.msk [vmem:[#allocation2 + $0x50] sm:$0xff] %vm75_vm0, %v3788_v19 }
 0x377   :  { %2218 = vrot.lane.b32.xlu0 %v3408_v18, %s3784_s17  ;;  %v3412_v22 = vpop.eup %3411  ;;  %87 = vst.msk [vmem:[#allocation2 + $0x58] sm:$0xff] %vm75_vm0, %v3788_v19 }
 0x378   :  { %v5623_v12 = vpop.permute.xlu1 %1530  ;;  %v5625_v35 = vpop.permute.xlu2 %2014  ;;  %88 = vst.msk [vmem:[#allocation2 + $0x60] sm:$0xff] %vm75_vm0, %v3788_v19 }
 0x379   :  { %v5627_v51 = vpop.permute.xlu0 %2716  ;;  %v3414_v40 = vpop.eup %3413  ;;  %89 = vst.msk [vmem:[#allocation2 + $0x68] sm:$0xff] %vm75_vm0, %v3788_v19 }
 0x37a   :  { %90 = vst.msk [vmem:[#allocation2 + $0x70] sm:$0xff] %vm75_vm0, %v3788_v19 }
 0x37b   :  { %91 = vst.msk [vmem:[#allocation2 + $0x78] sm:$0xff] %vm75_vm0, %v3788_v19 }
 0x37c   :  { %92 = vst.msk [vmem:[#allocation2 + $0x80] sm:$0xff] %vm75_vm0, %v3788_v19 }
 0x37d   :  { %93 = vst.msk [vmem:[#allocation2 + $0x88] sm:$0xff] %vm75_vm0, %v3788_v19 }
 0x37e   :  { %2376 = vrot.lane.b32.xlu2 %v5599_v6, %s3787_s20  ;;  %2730 = vrot.lane.b32.xlu1 %v5630_v27, %s3786_s19  ;;  %94 = vst.msk [vmem:[#allocation2 + $0x90] sm:$0xff] %vm75_vm0, %v3788_v19 }
 0x37f   :  { %2922 = vrot.lane.b32.xlu0 %v3410_v24, %s3782_s0  ;;  %v2791_v24 = vsub.f32 %v6585_v34, %v5373_v28  ;;  %v2830_v28 = vmul.f32 1.442695, %v2792_v46  ;;  %95 = vst.msk [vmem:[#allocation2 + $0x98] sm:$0xff] %vm75_vm0, %v3788_v19 }
 0x380   :  { %v5639_v23 = vpop.permute.xlu1 %2012  ;;  %v5641_v62 = vpop.permute.xlu2 %1662  ;;  %96 = vst.msk [vmem:[#allocation2 + $0xa0] sm:$0xff] %vm75_vm0, %v3788_v19 }
 0x381   :  { %6587 = vst [vmem:[#allocation25_spill] sm:$0xff] %v5641_v62  ;;  %v5643_v18 = vpop.permute.xlu0 %1788  ;;  %v2828_v6 = vmul.f32 1.442695, %v2791_v24  ;;  %3415 = vpow2.f32 %v2830_v28 }
 0x382   :  { %97 = vst.msk [vmem:[#allocation2 + $0xa8] sm:$0xff] %vm75_vm0, %v3788_v19 }
 0x383   :  { %3417 = vpow2.f32 %v2828_v6  ;;  %98 = vst.msk [vmem:[#allocation2 + $0xb0] sm:$0xff] %vm75_vm0, %v3788_v19 }
 0x384   :  { %3419 = vpow2.f32 %v2478_v10  ;;  %v6596_v10 = vld [vmem:[#allocation36_spill] sm:$0xff]  ;;  %99 = vst.msk [vmem:[#allocation2 + $0xb8] sm:$0xff] %vm75_vm0, %v3788_v19 }
 0x385   :  { %v1592_v24 = vmax.f32 %v6596_v10, %v5423_v32  ;;  %v6599_v32 = vld [vmem:[#allocation54_spill] sm:$0xff]  ;;  %100 = vst.msk [vmem:[#allocation2 + $0xc0] sm:$0xff] %vm75_vm0, %v3788_v19 }
 0x386   :  { %2026 = vrot.lane.b32.xlu2 %v5630_v27, %s3785_s18  ;;  %2220 = vrot.lane.b32.xlu1 %v3412_v22, %s3784_s17  ;;  %v6591_v22 = vld [vmem:[#allocation48_spill] sm:$0xff]  ;;  %v2088_v10 = vsub.f32 %v6588_v63, %v6599_v32  ;;  %101 = vst.msk [vmem:[#allocation2 + $0xc8] sm:$0xff] %vm75_vm0, %v3788_v19 }
 0x387   :  { %2378 = vrot.lane.b32.xlu0 %v5630_v27, %s3787_s20  ;;  %v1719_v27 = vmax.f32 %v1591_v29, %v6591_v22  ;;  %v3416_v6 = vpop.eup %3415  ;;  %v6597_v22 = vld [vmem:[#allocation53_spill] sm:$0xff]  ;;  %102 = vst.msk [vmem:[#allocation2 + $0xd0] sm:$0xff] %vm75_vm0, %v3788_v19 }
 0x388   :  { %v5662_v9 = vpop.permute.xlu1 %1660  ;;  %v5664_v39 = vpop.permute.xlu2 %2720  ;;  %103 = vst.msk [vmem:[#allocation2 + $0xd8] sm:$0xff] %vm75_vm0, %v3788_v19 }
 0x389   :  { %6590 = vst [vmem:[#allocation30_spill] sm:$0xff] %v5664_v39  ;;  %v5668_v61 = vpop.permute.xlu0 %2366  ;;  %v5678_v4 = vmax.f32 %v1719_v27, %v5390_v31  ;;  %v3418_v15 = vpop.eup %3417  ;;  %v6598_v39 = vld [vmem:[#allocation31_spill] sm:$0xff] }
 0x38a   :  { %v3420_v28 = vpop.eup %3419  ;;  %v2441_v62 = vsub.f32 %v6598_v39, %v6597_v22  ;;  %v2089_v22 = vsub.f32 %v6598_v39, %v5441_v3  ;;  %v6602_v3 = vld [vmem:[#allocation51_spill] sm:$0xff]  ;;  %104 = vst.msk [vmem:[#allocation2 + $0xe0] sm:$0xff] %vm75_vm0, %v3788_v19 }
 0x38b   :  { %6592 = vst [vmem:[#allocation48_spill] sm:$0xff] %v5678_v4 }
 0x38c   :  { %v2128_v32 = vmul.f32 1.442695, %v2089_v22  ;;  %105 = vst.msk [vmem:[#allocation2 + $0xe8] sm:$0xff] %vm75_vm0, %v3788_v19 }
 0x38d   :  { %106 = vst.msk [vmem:[#allocation2 + $0xf0] sm:$0xff] %vm75_vm0, %v3788_v19 }
 0x38e   :  { %2572 = vrot.lane.b32.xlu2 %v3414_v40, %s3783_s16  ;;  %2380 = vrot.lane.b32.xlu1 %v5678_v4, %s3787_s20  ;;  %v6594_v40 = vld [vmem:[#allocation15_spill] sm:$0xff]  ;;  %107 = vst.msk [vmem:[#allocation2 + $0xf8] sm:$0xff] %vm75_vm0, %v3788_v19 }
 0x38f   :  { %2028 = vrot.lane.b32.xlu0 %v5678_v4, %s3785_s18  ;;  %v1858_v46 = vsub.f32 %v4717_v30, %v6594_v40 }
 0x390   :  { %v5693_v31 = vpop.permute.xlu1 %2718  ;;  %v2211_v27 = vpop.permute.xlu2 %2210 }
 0x391   :  { %6593 = vst [vmem:[#allocation68_spill] sm:$0xff] %v5693_v31  ;;  %v5699_v29 = vpop.permute.xlu0 %1534  ;;  %v1890_v30 = vmul.f32 1.442695, %v1858_v46  ;;  %v1720_v46 = vmax.f32 %v1592_v24, %v5411_v0  ;;  %v2126_v0 = vmul.f32 1.442695, %v2088_v10  ;;  %v2793_v10 = vsub.f32 %v6598_v39, %v5427_v58 }
 0x392   :  { %6595 = vst [vmem:[#allocation15_spill] sm:$0xff] %v5699_v29 }
 0x393   :  { %3421 = vpow2.f32 %v1890_v30  ;;  %v5740_v24 = vmax.f32 %v1720_v46, %v6602_v3  ;;  %v2832_v3 = vmul.f32 1.442695, %v2793_v10 }
 0x395   :  { %6603 = vst [vmem:[#allocation54_spill] sm:$0xff] %v5740_v24 }
 0x396   :  { %2924 = vrot.lane.b32.xlu2 %v3418_v15, %s3782_s0  ;;  %2926 = vrot.lane.b32.xlu1 %v3416_v6, %s3782_s0 }
 0x397   :  { %2574 = vrot.lane.b32.xlu0 %v3420_v28, %s3783_s16  ;;  %v2480_v28 = vmul.f32 1.442695, %v2441_v62 }
 0x398   :  { %v5727_v31 = vpop.permute.xlu1 %1790  ;;  %v2915_v15 = vpop.permute.xlu2 %2914 }
 0x399   :  { %6600 = vst [vmem:[#allocation53_spill] sm:$0xff] %v5727_v31  ;;  %v5731_v6 = vpop.permute.xlu0 %2016  ;;  %3423 = vpow2.f32 %v2480_v28  ;;  %v3422_v62 = vpop.eup %3421 }
 0x39a   :  { %6601 = vst [vmem:[#allocation31_spill] sm:$0xff] %v5731_v6  ;;  %3425 = vpow2.f32 %v2126_v0  ;;  %v2306_v30 = vadd.f32 %v3422_v62, %v2211_v27 }
 0x39b   :  { %3427 = vpow2.f32 %v2128_v32 }
 0x39e   :  { %2732 = vrot.lane.b32.xlu2 %v5678_v4, %s3786_s19  ;;  %2030 = vrot.lane.b32.xlu1 %v5740_v24, %s3785_s18  ;;  %v6605_v4 = vld [vmem:[#allocation38_spill] sm:$0xff] }
 0x39f   :  { %2734 = vrot.lane.b32.xlu0 %v5740_v24, %s3786_s19  ;;  %v3424_v58 = vpop.eup %3423 }
 0x3a0   :  { %v5758_v46 = vpop.permute.xlu1 %2368  ;;  %v1793_v22 = vpop.permute.xlu2 %1792 }
 0x3a1   :  { %6604 = vst [vmem:[#allocation51_spill] sm:$0xff] %v5758_v46  ;;  %v2563_v28 = vpop.permute.xlu0 %2562  ;;  %v3426_v32 = vpop.eup %3425 }
 0x3a2   :  { %v2658_v0 = vadd.f32 %v2563_v28, %v2306_v30  ;;  %v3428_v62 = vpop.eup %3427  ;;  %v1593_v30 = vmax.f32 %v6605_v4, %v5408_v52  ;;  %v6606_v28 = vld [vmem:[#allocation32_spill] sm:$0xff] }
 0x3a3   :  { %v2090_v10 = vsub.f32 %v6606_v28, %v5425_v49  ;;  %v6609_v49 = vld [vmem:[#allocation17_spill] sm:$0xff] }
 0x3a4   :  { %v3010_v27 = vadd.f32 %v2915_v15, %v2658_v0  ;;  %v1721_v15 = vmax.f32 %v1593_v30, %v5459_v26  ;;  %v3042_v26 = vld [vmem:[#allocation2] sm:$0xff] }
 0x3a5   :  { %v2130_v52 = vmul.f32 1.442695, %v2090_v10 }
 0x3a6   :  { %3429 = vlog2.f32 %v3010_v27  ;;  %2222 = vrot.lane.b32.xlu2 %v3426_v32, %s3784_s17  ;;  %2576 = vrot.lane.b32.xlu1 %v3424_v58, %s3783_s16  ;;  %v6607_v32 = vld [vmem:[#allocation59_spill] sm:$0xff] }
 0x3a7   :  { %2224 = vrot.lane.b32.xlu0 %v3428_v62, %s3784_s17  ;;  %3431 = vpow2.f32 %v2832_v3  ;;  %v5784_v31 = vmax.f32 %v1721_v15, %v6607_v32  ;;  %v1859_v3 = vsub.f32 %v4734_v42, %v6609_v49 }
 0x3a8   :  { %v5780_v0 = vpop.permute.xlu2 %2370  ;;  %v1537_v19 = vpop.permute.xlu1 %1536  ;;  %3433 = vpow2.f32 %v2130_v52  ;;  %v2794_v52 = vsub.f32 %v6606_v28, %v5473_v21  ;;  %v6613_v21 = vld [vmem:[#allocation58_spill] sm:$0xff] }
 0x3a9   :  { %v1665_v46 = vpop.permute.xlu0 %1664  ;;  %v1601_v6 = vmax.f32 %v5479_v60, %v1537_v19  ;;  %6608 = vst [vmem:[#allocation32_spill] sm:$0xff] %v5784_v31  ;;  %v1892_v15 = vmul.f32 1.442695, %v1859_v3 }
 0x3ab   :  { %v1729_v27 = vmax.f32 %v1601_v6, %v1665_v46  ;;  %v6610_v6 = vld [vmem:[#allocation62_spill] sm:$0xff]  ;;  %3435 = vpow2.f32 %v1892_v15 }
 0x3ac   :  { %v3430_v4 = vpop.eup %3429  ;;  %v2442_v46 = vsub.f32 %v6606_v28, %v6610_v6 }
 0x3ad   :  { %v3075_v58 = vmul.f32 0.6931472, %v3430_v4  ;;  %v5786_v29 = vmax.f32 %v1729_v27, %v1793_v22  ;;  %v3432_v62 = vpop.eup %3431 }
 0x3ae   :  { %2382 = vrot.lane.b32.xlu2 %v5740_v24, %s3787_s20  ;;  %2736 = vrot.lane.b32.xlu1 %v5784_v31, %s3786_s19  ;;  %v2482_v19 = vmul.f32 1.442695, %v2442_v46  ;;  %v3434_v27 = vpop.eup %3433  ;;  %v2834_v46 = vmul.f32 1.442695, %v2794_v52 }
 0x3af   :  { %v3138_v30 = vadd.f32 %v3075_v58, %v6594_v40  ;;  %2928 = vrot.lane.b32.xlu0 %v3432_v62, %s3782_s0  ;;  %v6611_v40 = vld [vmem:[#allocation40_spill] sm:$0xff]  ;;  %v6612_v58 = vld [vmem:[#allocation26_spill] sm:$0xff] }
 0x3b0   :  { %v5798_v4 = vpop.permute.xlu2 %2020  ;;  %v5800_v22 = vpop.permute.xlu1 %2018  ;;  %v1594_v32 = vmax.f32 %v6611_v40, %v5477_v55  ;;  %3437 = vpow2.f32 %v2482_v19  ;;  %v2443_v3 = vsub.f32 %v6612_v58, %v5509_v47  ;;  %v6615_v47 = vld [vmem:[#allocation42_spill] sm:$0xff] }
 0x3b1   :  { %v3170_v42 = vadd.f32 %v3138_v30, %v3042_v26  ;;  %v5802_v10 = vpop.permute.xlu0 %2722  ;;  %v3436_v15 = vpop.eup %3435  ;;  %v1595_v40 = vmax.f32 %v6615_v47, %v5524_v11  ;;  %3439 = vpow2.f32 %v2834_v46 }
 0x3b2   :  { %v1722_v30 = vmax.f32 %v1594_v32, %v6613_v21  ;;  %v2484_v24 = vmul.f32 1.442695, %v2443_v3  ;;  %v6616_v32 = vld [vmem:[#allocation61_spill] sm:$0xff] }
 0x3b3   :  { %3203 = vst.msk [vmem:[#allocation2] sm:$0xff] %vm75_vm0, %v3170_v42  ;;  %v6614_v42 = vld [vmem:[#allocation19_spill] sm:$0xff] }
 0x3b4   :  { %v1860_v55 = vsub.f32 %v4749_v50, %v6614_v42  ;;  %v2795_v50 = vsub.f32 %v6612_v58, %v6616_v32  ;;  %3441 = vpow2.f32 %v2484_v24 }
 0x3b6   :  { %2032 = vrot.lane.b32.xlu2 %v5784_v31, %s3785_s18  ;;  %2226 = vrot.lane.b32.xlu1 %v3434_v27, %s3784_s17  ;;  %v5820_v27 = vmax.f32 %v1722_v30, %v5493_v8  ;;  %v3438_v60 = vpop.eup %3437  ;;  %v1894_v52 = vmul.f32 1.442695, %v1860_v55  ;;  %v6617_v8 = vld [vmem:[#allocation27_spill] sm:$0xff]  ;;  %v2836_v55 = vmul.f32 1.442695, %v2795_v50 }
 0x3b7   :  { %2384 = vrot.lane.b32.xlu0 %v5784_v31, %s3787_s20  ;;  %v2092_v3 = vsub.f32 %v6617_v8, %v5540_v25  ;;  %v2091_v25 = vsub.f32 %v6612_v58, %v5497_v13  ;;  %v6618_v13 = vld [vmem:[#allocation21_spill] sm:$0xff] }
 0x3b8   :  { %v2567_v62 = vpop.permute.xlu2 %2566  ;;  %v2565_v26 = vpop.permute.xlu1 %2564  ;;  %3443 = vpow2.f32 %v1894_v52  ;;  %v1861_v50 = vsub.f32 %v4764_v53, %v6618_v13  ;;  %v2796_v53 = vsub.f32 %v6617_v8, %v5528_v41 }
 0x3b9   :  { %v2213_v6 = vpop.permute.xlu0 %2212  ;;  %v2134_v31 = vmul.f32 1.442695, %v2092_v3 }
 0x3ba   :  { %v2307_v19 = vadd.f32 %v3436_v15, %v2213_v6  ;;  %v3440_v15 = vpop.eup %3439 }
 0x3bb   :  { %v3442_v24 = vpop.eup %3441 }
 0x3bc   :  { %v2659_v6 = vadd.f32 %v2565_v26, %v2307_v19 }
 0x3be   :  { %2578 = vrot.lane.b32.xlu2 %v3438_v60, %s3783_s16  ;;  %2386 = vrot.lane.b32.xlu1 %v5820_v27, %s3787_s20  ;;  %v1723_v60 = vmax.f32 %v1595_v40, %v5513_v17  ;;  %v3444_v17 = vpop.eup %3443  ;;  %v2444_v40 = vsub.f32 %v6617_v8, %v5495_v45 }
 0x3bf   :  { %2034 = vrot.lane.b32.xlu0 %v5820_v27, %s3785_s18 }
 0x3c0   :  { %v2919_v21 = vpop.permute.xlu2 %2918  ;;  %v5833_v11 = vpop.permute.xlu1 %2724  ;;  %v5837_v32 = vmax.f32 %v1723_v60, %v5475_v44 }
 0x3c1   :  { %v2917_v46 = vpop.permute.xlu0 %2916 }
 0x3c2   :  { %v3011_v30 = vadd.f32 %v2917_v46, %v2659_v6  ;;  %v2132_v6 = vmul.f32 1.442695, %v2091_v25 }
 0x3c4   :  { %3445 = vlog2.f32 %v3011_v30  ;;  %v2486_v30 = vmul.f32 1.442695, %v2444_v40  ;;  %v2838_v40 = vmul.f32 1.442695, %v2796_v53 }
 0x3c5   :  { %3447 = vpow2.f32 %v2836_v55  ;;  %v3043_v55 = vld [vmem:[#allocation2 + $0x8] sm:$0xff] }
 0x3c6   :  { %2930 = vrot.lane.b32.xlu2 %v3440_v15, %s3782_s0  ;;  %2580 = vrot.lane.b32.xlu1 %v3442_v24, %s3783_s16  ;;  %3449 = vpow2.f32 %v2134_v31  ;;  %v1896_v31 = vmul.f32 1.442695, %v1861_v50  ;;  %v6619_v50 = vld [vmem:[#allocation44_spill] sm:$0xff] }
 0x3c7   :  { %2740 = vrot.lane.b32.xlu0 %v5837_v32, %s3786_s19  ;;  %3451 = vpow2.f32 %v2132_v6  ;;  %v6620_v6 = vld [vmem:[#allocation28_spill] sm:$0xff] }
 0x3c8   :  { %v5847_v26 = vpop.permute.xlu2 %2726  ;;  %v2215_v44 = vpop.permute.xlu1 %2214 }
 0x3c9   :  { %v5849_v19 = vpop.permute.xlu0 %2372  ;;  %v2308_v52 = vadd.f32 %v3444_v17, %v2215_v44 }
 0x3ca   :  { %v3446_v3 = vpop.eup %3445 }
 0x3cb   :  { %v3077_v60 = vmul.f32 0.6931472, %v3446_v3  ;;  %v2660_v46 = vadd.f32 %v2567_v62, %v2308_v52  ;;  %v3448_v15 = vpop.eup %3447  ;;  %v1596_v3 = vmax.f32 %v6619_v50, %v5511_v43 }
 0x3cc   :  { %v3450_v47 = vpop.eup %3449 }
 0x3cd   :  { %v3139_v24 = vadd.f32 %v3077_v60, %v6609_v49  ;;  %v3012_v45 = vadd.f32 %v2919_v21, %v2660_v46  ;;  %v3452_v21 = vpop.eup %3451  ;;  %v2093_v60 = vsub.f32 %v6620_v6, %v5526_v57  ;;  %v3044_v46 = vld [vmem:[#allocation2 + $0x10] sm:$0xff] }
 0x3ce   :  { %2738 = vrot.lane.b32.xlu2 %v5820_v27, %s3786_s19  ;;  %2932 = vrot.lane.b32.xlu1 %v3448_v15, %s3782_s0 }
 0x3cf   :  { %v3171_v17 = vadd.f32 %v3139_v24, %v3043_v55  ;;  %3453 = vlog2.f32 %v3012_v45  ;;  %2230 = vrot.lane.b32.xlu0 %v3450_v47, %s3784_s17  ;;  %v2136_v53 = vmul.f32 1.442695, %v2093_v60 }
 0x3d0   :  { %3455 = vpow2.f32 %v2486_v30  ;;  %v2217_v62 = vpop.permute.xlu2 %2216  ;;  %v5860_v25 = vpop.permute.xlu1 %2374  ;;  %v1724_v30 = vmax.f32 %v1596_v3, %v5559_v14 }
 0x3d1   :  { %3204 = vst.msk [vmem:[#allocation2 + $0x8] sm:$0xff] %vm75_vm0, %v3171_v17  ;;  %3457 = vpow2.f32 %v1896_v31  ;;  %v5863_v49 = vpop.permute.xlu0 %2022 }
 0x3d2   :  { %3459 = vpow2.f32 %v2838_v40 }
 0x3d5   :  { %v3454_v44 = vpop.eup %3453 }
 0x3d6   :  { %v3456_v52 = vpop.eup %3455  ;;  %v3079_v47 = vmul.f32 0.6931472, %v3454_v44  ;;  %2228 = vrot.lane.b32.xlu2 %v3452_v21, %s3784_s17  ;;  %2036 = vrot.lane.b32.xlu1 %v5837_v32, %s3785_s18  ;;  %v5878_v21 = vmax.f32 %v1724_v30, %v5544_v36  ;;  %v6621_v44 = vld [vmem:[#allocation23_spill] sm:$0xff] }
 0x3d7   :  { %v3458_v41 = vpop.eup %3457  ;;  %2582 = vrot.lane.b32.xlu0 %v3456_v52, %s3783_s16  ;;  %v1862_v40 = vsub.f32 %v4781_v7, %v6621_v44 }
 0x3d8   :  { %v3140_v55 = vadd.f32 %v3079_v47, %v6614_v42  ;;  %v2309_v15 = vadd.f32 %v3458_v41, %v2217_v62  ;;  %v5875_v43 = vpop.permute.xlu2 %2376  ;;  %v2921_v24 = vpop.permute.xlu1 %2920  ;;  %v2445_v42 = vsub.f32 %v6620_v6, %v5563_v48  ;;  %v2797_v48 = vsub.f32 %v6620_v6, %v5574_v37 }
 0x3d9   :  { %v2569_v45 = vpop.permute.xlu0 %2568  ;;  %v3460_v14 = vpop.eup %3459  ;;  %v1898_v7 = vmul.f32 1.442695, %v1862_v40 }
 0x3da   :  { %v3172_v31 = vadd.f32 %v3140_v55, %v3044_v46  ;;  %v2661_v17 = vadd.f32 %v2569_v45, %v2309_v15  ;;  %v2488_v3 = vmul.f32 1.442695, %v2445_v42  ;;  %v6622_v46 = vld [vmem:[#allocation47_spill] sm:$0xff]  ;;  %v3045_v55 = vld [vmem:[#allocation2 + $0x18] sm:$0xff] }
 0x3db   :  { %v1597_v30 = vmax.f32 %v6622_v46, %v5578_v54 }
 0x3dc   :  { %3205 = vst.msk [vmem:[#allocation2 + $0x10] sm:$0xff] %vm75_vm0, %v3172_v31  ;;  %v3013_v57 = vadd.f32 %v2921_v24, %v2661_v17 }
 0x3dd   :  { %v1725_v54 = vmax.f32 %v1597_v30, %v5542_v1 }
 0x3de   :  { %3461 = vlog2.f32 %v3013_v57  ;;  %2388 = vrot.lane.b32.xlu2 %v5837_v32, %s3787_s20  ;;  %2742 = vrot.lane.b32.xlu1 %v5878_v21, %s3786_s19 }
 0x3df   :  { %3463 = vpow2.f32 %v2136_v53  ;;  %2934 = vrot.lane.b32.xlu0 %v3460_v14, %s3782_s0  ;;  %v6623_v53 = vld [vmem:[#allocation33_spill] sm:$0xff]  ;;  %v2840_v14 = vmul.f32 1.442695, %v2797_v48  ;;  %v5911_v37 = vmax.f32 %v1725_v54, %v5592_v20 }
 0x3e0   :  { %v5890_v36 = vpop.permute.xlu2 %2026  ;;  %v5892_v62 = vpop.permute.xlu1 %2024  ;;  %3465 = vpow2.f32 %v1898_v7  ;;  %v1863_v57 = vsub.f32 %v6585_v34, %v6623_v53  ;;  %v6624_v7 = vld [vmem:[#allocation50_spill] sm:$0xff]  ;;  %v6626_v20 = vld [vmem:[#allocation13_spill] sm:$0xff] }
 0x3e1   :  { %v5894_v52 = vpop.permute.xlu0 %2728  ;;  %3467 = vpow2.f32 %v2488_v3  ;;  %v1598_v3 = vmax.f32 %v6624_v7, %v5623_v12 }
 0x3e2   :  { %v1900_v1 = vmul.f32 1.442695, %v1863_v57  ;;  %3469 = vpow2.f32 %v2840_v14 }
 0x3e4   :  { %v3462_v47 = vpop.eup %3461  ;;  %3471 = vpow2.f32 %v1900_v1 }
 0x3e5   :  { %v3464_v41 = vpop.eup %3463  ;;  %v3081_v60 = vmul.f32 0.6931472, %v3462_v47  ;;  %v6625_v47 = vld [vmem:[#allocation12_spill] sm:$0xff] }
 0x3e6   :  { %2038 = vrot.lane.b32.xlu2 %v5878_v21, %s3785_s18  ;;  %2232 = vrot.lane.b32.xlu1 %v3464_v41, %s3784_s17  ;;  %v3466_v40 = vpop.eup %3465  ;;  %v2094_v41 = vsub.f32 %v6625_v47, %v5596_v38  ;;  %v2446_v34 = vsub.f32 %v6625_v47, %v5609_v5  ;;  %v1726_v38 = vmax.f32 %v1598_v3, %v5613_v56 }
 0x3e7   :  { %v3141_v15 = vadd.f32 %v3081_v60, %v6618_v13  ;;  %2390 = vrot.lane.b32.xlu0 %v5878_v21, %s3787_s20  ;;  %v3468_v42 = vpop.eup %3467  ;;  %v2095_v60 = vsub.f32 %v6626_v20, %v5639_v23  ;;  %v2798_v23 = vsub.f32 %v6625_v47, %v5561_v59 }
 0x3e8   :  { %v2573_v24 = vpop.permute.xlu2 %2572  ;;  %v2571_v45 = vpop.permute.xlu1 %2570  ;;  %v5930_v57 = vmax.f32 %v1726_v38, %v5576_v33  ;;  %v3046_v38 = vld [vmem:[#allocation2 + $0x20] sm:$0xff] }
 0x3e9   :  { %v3173_v31 = vadd.f32 %v3141_v15, %v3045_v55  ;;  %v2219_v17 = vpop.permute.xlu0 %2218  ;;  %v2138_v15 = vmul.f32 1.442695, %v2094_v41  ;;  %v2140_v54 = vmul.f32 1.442695, %v2095_v60  ;;  %v3470_v5 = vpop.eup %3469  ;;  %v2842_v41 = vmul.f32 1.442695, %v2798_v23 }
 0x3ea   :  { %v2310_v13 = vadd.f32 %v3466_v40, %v2219_v17  ;;  %v2490_v17 = vmul.f32 1.442695, %v2446_v34  ;;  %v3472_v56 = vpop.eup %3471 }
 0x3eb   :  { %3206 = vst.msk [vmem:[#allocation2 + $0x18] sm:$0xff] %vm75_vm0, %v3173_v31 }
 0x3ec   :  { %v2662_v12 = vadd.f32 %v2571_v45, %v2310_v13  ;;  %v2447_v45 = vsub.f32 %v6626_v20, %v5594_v2  ;;  %v6627_v13 = vld [vmem:[#allocation35_spill] sm:$0xff] }
 0x3ee   :  { %2584 = vrot.lane.b32.xlu2 %v3468_v42, %s3783_s16  ;;  %2392 = vrot.lane.b32.xlu1 %v5911_v37, %s3787_s20  ;;  %v1864_v42 = vsub.f32 %v6588_v63, %v6627_v13  ;;  %v2799_v63 = vsub.f32 %v6626_v20, %v5627_v51 }
 0x3ef   :  { %2040 = vrot.lane.b32.xlu0 %v5911_v37, %s3785_s18 }
 0x3f0   :  { %v2925_v30 = vpop.permute.xlu2 %2924  ;;  %v5926_v55 = vpop.permute.xlu1 %2730  ;;  %v2844_v23 = vmul.f32 1.442695, %v2799_v63 }
 0x3f1   :  { %v2923_v48 = vpop.permute.xlu0 %2922 }
 0x3f2   :  { %v3014_v31 = vadd.f32 %v2923_v48, %v2662_v12  ;;  %v2492_v12 = vmul.f32 1.442695, %v2447_v45 }
 0x3f4   :  { %3473 = vlog2.f32 %v3014_v31  ;;  %v1902_v31 = vmul.f32 1.442695, %v1864_v42 }
 0x3f5   :  { %3475 = vpow2.f32 %v2138_v15 }
 0x3f6   :  { %2936 = vrot.lane.b32.xlu2 %v3470_v5, %s3782_s0  ;;  %2744 = vrot.lane.b32.xlu1 %v5911_v37, %s3786_s19  ;;  %3477 = vpow2.f32 %v2490_v17 }
 0x3f7   :  { %2746 = vrot.lane.b32.xlu0 %v5930_v57, %s3786_s19  ;;  %3479 = vpow2.f32 %v2140_v54 }
 0x3f8   :  { %v5941_v33 = vpop.permute.xlu2 %2732  ;;  %v2221_v40 = vpop.permute.xlu1 %2220  ;;  %3481 = vpow2.f32 %v2842_v41 }
 0x3f9   :  { %v5943_v14 = vpop.permute.xlu0 %2378  ;;  %v2311_v59 = vadd.f32 %v3472_v56, %v2221_v40  ;;  %v6628_v40 = vld [vmem:[#allocation55_spill] sm:$0xff] }
 0x3fa   :  { %v3474_v3 = vpop.eup %3473 }
 0x3fb   :  { %v3083_v1 = vmul.f32 0.6931472, %v3474_v3  ;;  %v2663_v34 = vadd.f32 %v2573_v24, %v2311_v59  ;;  %v3476_v60 = vpop.eup %3475  ;;  %v1599_v59 = vmax.f32 %v6628_v40, %v5611_v16  ;;  %v6629_v3 = vld [vmem:[#allocation14_spill] sm:$0xff] }
 0x3fc   :  { %v3478_v48 = vpop.eup %3477  ;;  %v2096_v41 = vsub.f32 %v6629_v3, %v5625_v35 }
 0x3fd   :  { %v3142_v2 = vadd.f32 %v3083_v1, %v6621_v44  ;;  %v3015_v15 = vadd.f32 %v2925_v30, %v2663_v34  ;;  %v3480_v17 = vpop.eup %3479  ;;  %v3047_v1 = vld [vmem:[#allocation2 + $0x28] sm:$0xff]  ;;  %v1727_v34 = vmax.f32 %v1599_v59, %v5662_v9 }
 0x3fe   :  { %2234 = vrot.lane.b32.xlu2 %v3476_v60, %s3784_s17  ;;  %2586 = vrot.lane.b32.xlu1 %v3478_v48, %s3783_s16  ;;  %v3482_v30 = vpop.eup %3481 }
 0x3ff   :  { %v3174_v54 = vadd.f32 %v3142_v2, %v3046_v38  ;;  %3483 = vlog2.f32 %v3015_v15  ;;  %2236 = vrot.lane.b32.xlu0 %v3480_v17, %s3784_s17  ;;  %v5971_v17 = vmax.f32 %v1727_v34, %v5643_v18 }
 0x400   :  { %3485 = vpow2.f32 %v2492_v12  ;;  %v2223_v24 = vpop.permute.xlu2 %2222  ;;  %v5953_v5 = vpop.permute.xlu1 %2380 }
 0x401   :  { %3207 = vst.msk [vmem:[#allocation2 + $0x20] sm:$0xff] %vm75_vm0, %v3174_v54  ;;  %3487 = vpow2.f32 %v1902_v31  ;;  %v5956_v44 = vpop.permute.xlu0 %2028  ;;  %v2142_v31 = vmul.f32 1.442695, %v2096_v41  ;;  %v6631_v54 = vld [vmem:[#allocation37_spill] sm:$0xff] }
 0x402   :  { %3489 = vpow2.f32 %v2844_v23  ;;  %6630 = vst [vmem:[#allocation59_spill] sm:$0xff] %v5971_v17  ;;  %v1865_v63 = vsub.f32 %v6598_v39, %v6631_v54 }
 0x404   :  { %v1904_v39 = vmul.f32 1.442695, %v1865_v63 }
 0x405   :  { %v3484_v56 = vpop.eup %3483 }
 0x406   :  { %v3486_v45 = vpop.eup %3485  ;;  %v3085_v42 = vmul.f32 0.6931472, %v3484_v56  ;;  %2394 = vrot.lane.b32.xlu2 %v5930_v57, %s3787_s20  ;;  %2938 = vrot.lane.b32.xlu1 %v3482_v30, %s3782_s0 }
 0x407   :  { %v3488_v51 = vpop.eup %3487  ;;  %2588 = vrot.lane.b32.xlu0 %v3486_v45, %s3783_s16 }
 0x408   :  { %v3143_v60 = vadd.f32 %v3085_v42, %v6623_v53  ;;  %v2312_v12 = vadd.f32 %v3488_v51, %v2223_v24  ;;  %v5968_v16 = vpop.permute.xlu2 %2382  ;;  %v2927_v38 = vpop.permute.xlu1 %2926  ;;  %v2448_v53 = vsub.f32 %v6629_v3, %v5668_v61  ;;  %v6632_v42 = vld [vmem:[#allocation15_spill] sm:$0xff]  ;;  %v6633_v51 = vld [vmem:[#allocation57_spill] sm:$0xff]  ;;  %v6634_v61 = vld [vmem:[#allocation68_spill] sm:$0xff] }
 0x409   :  { %v2575_v48 = vpop.permute.xlu0 %2574  ;;  %v3490_v9 = vpop.eup %3489  ;;  %v1600_v41 = vmax.f32 %v6633_v51, %v6632_v42  ;;  %v2800_v34 = vsub.f32 %v6629_v3, %v6634_v61  ;;  %v6642_v61 = vld [vmem:[#allocation16_spill] sm:$0xff] }
 0x40a   :  { %v3175_v2 = vadd.f32 %v3143_v60, %v3047_v1  ;;  %v2664_v15 = vadd.f32 %v2575_v48, %v2312_v12  ;;  %v2494_v23 = vmul.f32 1.442695, %v2448_v53  ;;  %v3048_v1 = vld [vmem:[#allocation2 + $0x30] sm:$0xff] }
 0x40b   :  { %v2846_v53 = vmul.f32 1.442695, %v2800_v34  ;;  %v2098_v34 = vsub.f32 %v6642_v61, %v5800_v22 }
 0x40c   :  { %3208 = vst.msk [vmem:[#allocation2 + $0x28] sm:$0xff] %vm75_vm0, %v3175_v2  ;;  %v3016_v35 = vadd.f32 %v2927_v38, %v2664_v15  ;;  %v6635_v15 = vld [vmem:[#allocation25_spill] sm:$0xff] }
 0x40e   :  { %3491 = vlog2.f32 %v3016_v35  ;;  %2044 = vrot.lane.b32.xlu2 %v5971_v17, %s3785_s18  ;;  %2042 = vrot.lane.b32.xlu1 %v5930_v57, %s3785_s18  ;;  %v6636_v35 = vld [vmem:[#allocation39_spill] sm:$0xff] }
 0x40f   :  { %3493 = vpow2.f32 %v2142_v31  ;;  %2940 = vrot.lane.b32.xlu0 %v3490_v9, %s3782_s0  ;;  %v1728_v31 = vmax.f32 %v1600_v41, %v6635_v15  ;;  %v1866_v63 = vsub.f32 %v6606_v28, %v6636_v35  ;;  %v6641_v28 = vld [vmem:[#allocation51_spill] sm:$0xff] }
 0x410   :  { %v5983_v18 = vpop.permute.xlu2 %2032  ;;  %v5985_v24 = vpop.permute.xlu1 %2030  ;;  %3495 = vpow2.f32 %v1904_v39  ;;  %v6637_v39 = vld [vmem:[#allocation53_spill] sm:$0xff] }
 0x411   :  { %v5987_v30 = vpop.permute.xlu0 %2734  ;;  %3497 = vpow2.f32 %v2494_v23  ;;  %v6004_v23 = vmax.f32 %v1728_v31, %v6637_v39  ;;  %v1906_v41 = vmul.f32 1.442695, %v1866_v63  ;;  %v2146_v63 = vmul.f32 1.442695, %v2098_v34 }
 0x412   :  { %3499 = vpow2.f32 %v2846_v53 }
 0x413   :  { %6638 = vst [vmem:[#allocation17_spill] sm:$0xff] %v6004_v23  ;;  %3501 = vpow2.f32 %v1906_v41 }
 0x414   :  { %v3492_v56 = vpop.eup %3491 }
 0x415   :  { %v3494_v45 = vpop.eup %3493  ;;  %v3087_v59 = vmul.f32 0.6931472, %v3492_v56 }
 0x416   :  { %2748 = vrot.lane.b32.xlu2 %v5971_v17, %s3786_s19  ;;  %2238 = vrot.lane.b32.xlu1 %v3494_v45, %s3784_s17  ;;  %v3496_v9 = vpop.eup %3495  ;;  %v6639_v45 = vld [vmem:[#allocation31_spill] sm:$0xff] }
 0x417   :  { %v3144_v60 = vadd.f32 %v3087_v59, %v6627_v13  ;;  %2396 = vrot.lane.b32.xlu0 %v5971_v17, %s3787_s20  ;;  %v3498_v56 = vpop.eup %3497  ;;  %v6640_v59 = vld [vmem:[#allocation29_spill] sm:$0xff] }
 0x418   :  { %v2579_v12 = vpop.permute.xlu2 %2578  ;;  %v2577_v38 = vpop.permute.xlu1 %2576  ;;  %v2097_v42 = vsub.f32 %v6640_v59, %v6639_v45 }
 0x419   :  { %v3176_v48 = vadd.f32 %v3144_v60, %v3048_v1  ;;  %v2225_v2 = vpop.permute.xlu0 %2224  ;;  %v2449_v1 = vsub.f32 %v6640_v59, %v6641_v28  ;;  %v3500_v53 = vpop.eup %3499 }
 0x41a   :  { %v2313_v13 = vadd.f32 %v3496_v9, %v2225_v2  ;;  %v2144_v31 = vmul.f32 1.442695, %v2097_v42  ;;  %v3502_v22 = vpop.eup %3501 }
 0x41b   :  { %3209 = vst.msk [vmem:[#allocation2 + $0x30] sm:$0xff] %vm75_vm0, %v3176_v48  ;;  %v2496_v39 = vmul.f32 1.442695, %v2449_v1 }
 0x41c   :  { %v2665_v60 = vadd.f32 %v2577_v38, %v2313_v13  ;;  %v2450_v38 = vsub.f32 %v6642_v61, %v5780_v0  ;;  %v6644_v0 = vld [vmem:[#allocation41_spill] sm:$0xff] }
 0x41e   :  { %2590 = vrot.lane.b32.xlu2 %v3498_v56, %s3783_s16  ;;  %2398 = vrot.lane.b32.xlu1 %v6004_v23, %s3787_s20  ;;  %v6643_v56 = vld [vmem:[#allocation30_spill] sm:$0xff] }
 0x41f   :  { %2046 = vrot.lane.b32.xlu0 %v6004_v23, %s3785_s18  ;;  %v2801_v45 = vsub.f32 %v6640_v59, %v6643_v56 }
 0x420   :  { %v2931_v48 = vpop.permute.xlu2 %2930  ;;  %v6017_v2 = vpop.permute.xlu1 %2736 }
 0x421   :  { %v2929_v15 = vpop.permute.xlu0 %2928  ;;  %v2848_v34 = vmul.f32 1.442695, %v2801_v45  ;;  %v6645_v45 = vld [vmem:[#allocation18_spill] sm:$0xff] }
 0x422   :  { %v3017_v9 = vadd.f32 %v2929_v15, %v2665_v60 }
 0x424   :  { %3503 = vlog2.f32 %v3017_v9  ;;  %v2498_v9 = vmul.f32 1.442695, %v2450_v38 }
 0x425   :  { %3505 = vpow2.f32 %v2144_v31 }
 0x426   :  { %2942 = vrot.lane.b32.xlu2 %v3500_v53, %s3782_s0  ;;  %2750 = vrot.lane.b32.xlu1 %v6004_v23, %s3786_s19  ;;  %3507 = vpow2.f32 %v2496_v39  ;;  %v3049_v39 = vld [vmem:[#allocation2 + $0x38] sm:$0xff] }
 0x427   :  { %2752 = vrot.lane.b32.xlu0 %v5786_v29, %s3786_s19  ;;  %3509 = vpow2.f32 %v2146_v63  ;;  %v1867_v63 = vsub.f32 %v6612_v58, %v6644_v0 }
 0x428   :  { %v6028_v13 = vpop.permute.xlu2 %2738  ;;  %v2227_v42 = vpop.permute.xlu1 %2226  ;;  %3511 = vpow2.f32 %v2848_v34 }
 0x429   :  { %v6030_v41 = vpop.permute.xlu0 %2384  ;;  %v2314_v28 = vadd.f32 %v3502_v22, %v2227_v42  ;;  %v2451_v22 = vsub.f32 %v6645_v45, %v5849_v19 }
 0x42a   :  { %v3504_v1 = vpop.eup %3503 }
 0x42b   :  { %v3089_v60 = vmul.f32 0.6931472, %v3504_v1  ;;  %v2666_v15 = vadd.f32 %v2579_v12, %v2314_v28  ;;  %v3506_v31 = vpop.eup %3505  ;;  %v1908_v28 = vmul.f32 1.442695, %v1867_v63  ;;  %v2500_v58 = vmul.f32 1.442695, %v2451_v22 }
 0x42c   :  { %v3508_v53 = vpop.eup %3507 }
 0x42d   :  { %v3145_v56 = vadd.f32 %v3089_v60, %v6631_v54  ;;  %v3018_v23 = vadd.f32 %v2931_v48, %v2666_v15  ;;  %v3510_v17 = vpop.eup %3509  ;;  %v2802_v54 = vsub.f32 %v6642_v61, %v5802_v10  ;;  %v2803_v10 = vsub.f32 %v6645_v45, %v5833_v11  ;;  %v3050_v15 = vld [vmem:[#allocation2 + $0x40] sm:$0xff] }
 0x42e   :  { %2240 = vrot.lane.b32.xlu2 %v3506_v31, %s3784_s17  ;;  %2592 = vrot.lane.b32.xlu1 %v3508_v53, %s3783_s16  ;;  %v3512_v1 = vpop.eup %3511  ;;  %v6646_v31 = vld [vmem:[#allocation22_spill] sm:$0xff] }
 0x42f   :  { %v3177_v12 = vadd.f32 %v3145_v56, %v3049_v39  ;;  %3513 = vlog2.f32 %v3018_v23  ;;  %2242 = vrot.lane.b32.xlu0 %v3510_v17, %s3784_s17  ;;  %v2850_v34 = vmul.f32 1.442695, %v2802_v54  ;;  %v2099_v17 = vsub.f32 %v6645_v45, %v5798_v4 }
 0x430   :  { %3515 = vpow2.f32 %v2498_v9  ;;  %v2229_v48 = vpop.permute.xlu2 %2228  ;;  %v6042_v38 = vpop.permute.xlu1 %2386  ;;  %v2101_v9 = vsub.f32 %v6646_v31, %v5892_v62 }
 0x431   :  { %3210 = vst.msk [vmem:[#allocation2 + $0x38] sm:$0xff] %vm75_vm0, %v3177_v12  ;;  %v6045_v42 = vpop.permute.xlu0 %2034  ;;  %3517 = vpow2.f32 %v1908_v28  ;;  %v2148_v63 = vmul.f32 1.442695, %v2099_v17  ;;  %v2852_v12 = vmul.f32 1.442695, %v2803_v10 }
 0x432   :  { %3519 = vpow2.f32 %v2500_v58  ;;  %v2152_v11 = vmul.f32 1.442695, %v2101_v9 }
 0x433   :  { %3521 = vpow2.f32 %v2850_v34 }
 0x434   :  { %3523 = vpow2.f32 %v2148_v63 }
 0x435   :  { %v3514_v19 = vpop.eup %3513  ;;  %3525 = vpow2.f32 %v2852_v12 }
 0x436   :  { %v3516_v60 = vpop.eup %3515  ;;  %v3091_v23 = vmul.f32 0.6931472, %v3514_v19  ;;  %2944 = vrot.lane.b32.xlu1 %v3512_v1, %s3782_s0  ;;  %2400 = vrot.lane.b32.xlu2 %v5786_v29, %s3787_s20  ;;  %v6647_v1 = vld [vmem:[#allocation43_spill] sm:$0xff]  ;;  %3527 = vpow2.f32 %v2152_v11  ;;  %v2805_v11 = vsub.f32 %v6646_v31, %v5894_v52 }
 0x437   :  { %2594 = vrot.lane.b32.xlu0 %v3516_v60, %s3783_s16  ;;  %v3518_v54 = vpop.eup %3517  ;;  %v1868_v34 = vsub.f32 %v6617_v8, %v6647_v1  ;;  %v2453_v8 = vsub.f32 %v6646_v31, %v5875_v43  ;;  %v6649_v43 = vld [vmem:[#allocation24_spill] sm:$0xff] }
 0x438   :  { %v3146_v4 = vadd.f32 %v3091_v23, %v6636_v35  ;;  %v6058_v39 = vpop.permute.xlu2 %2388  ;;  %v2581_v53 = vpop.permute.xlu1 %2580  ;;  %v2315_v58 = vadd.f32 %v3518_v54, %v2229_v48  ;;  %v6648_v35 = vld [vmem:[#allocation20_spill] sm:$0xff]  ;;  %v2454_v54 = vsub.f32 %v6649_v43, %v5943_v14 }
 0x439   :  { %v6060_v56 = vpop.permute.xlu0 %2740  ;;  %v3520_v28 = vpop.eup %3519  ;;  %v2452_v19 = vsub.f32 %v6648_v35, %v5860_v25  ;;  %v2100_v60 = vsub.f32 %v6648_v35, %v5863_v49  ;;  %v1910_v25 = vmul.f32 1.442695, %v1868_v34 }
 0x43a   :  { %v3178_v22 = vadd.f32 %v3146_v4, %v3050_v15  ;;  %v3522_v62 = vpop.eup %3521  ;;  %v2667_v17 = vadd.f32 %v2581_v53, %v2315_v58  ;;  %v2804_v53 = vsub.f32 %v6648_v35, %v5847_v26 }
 0x43b   :  { %v2502_v9 = vmul.f32 1.442695, %v2452_v19  ;;  %v2150_v4 = vmul.f32 1.442695, %v2100_v60  ;;  %v3524_v63 = vpop.eup %3523 }
 0x43c   :  { %3211 = vst.msk [vmem:[#allocation2 + $0x40] sm:$0xff] %vm75_vm0, %v3178_v22  ;;  %v2504_v22 = vmul.f32 1.442695, %v2453_v8  ;;  %v3526_v12 = vpop.eup %3525  ;;  %v2854_v60 = vmul.f32 1.442695, %v2804_v53 }
 0x43d   :  { %v3528_v49 = vpop.eup %3527 }
 0x43e   :  { %2596 = vrot.lane.b32.xlu2 %v3520_v28, %s3783_s16  ;;  %2048 = vrot.lane.b32.xlu1 %v5786_v29, %s3785_s18 }
 0x43f   :  { %2946 = vrot.lane.b32.xlu0 %v3522_v62, %s3782_s0  ;;  %v6650_v62 = vld [vmem:[#allocation45_spill] sm:$0xff] }
 0x440   :  { %v6075_v48 = vpop.permute.xlu2 %2038  ;;  %v2933_v23 = vpop.permute.xlu1 %2932  ;;  %v1869_v19 = vsub.f32 %v6620_v6, %v6650_v62  ;;  %v2806_v6 = vsub.f32 %v6649_v43, %v5926_v55 }
 0x441   :  { %v2231_v10 = vpop.permute.xlu0 %2230  ;;  %v3019_v15 = vadd.f32 %v2933_v23, %v2667_v17  ;;  %v2506_v23 = vmul.f32 1.442695, %v2454_v54 }
 0x443   :  { %3529 = vlog2.f32 %v3019_v15  ;;  %v2856_v15 = vmul.f32 1.442695, %v2805_v11 }
 0x444   :  { %3531 = vpow2.f32 %v1910_v25  ;;  %v3051_v25 = vld [vmem:[#allocation2 + $0x48] sm:$0xff] }
 0x445   :  { %3533 = vpow2.f32 %v2502_v9 }
 0x446   :  { %2244 = vrot.lane.b32.xlu1 %v3524_v63, %s3784_s17  ;;  %2948 = vrot.lane.b32.xlu2 %v3526_v12, %s3782_s0  ;;  %3535 = vpow2.f32 %v2150_v4  ;;  %v1912_v63 = vmul.f32 1.442695, %v1869_v19 }
 0x447   :  { %2248 = vrot.lane.b32.xlu0 %v3528_v49, %s3784_s17  ;;  %3537 = vpow2.f32 %v2504_v22  ;;  %v2102_v22 = vsub.f32 %v6649_v43, %v5890_v36 }
 0x448   :  { %v2585_v28 = vpop.permute.xlu2 %2584  ;;  %v6086_v58 = vpop.permute.xlu1 %2036  ;;  %3539 = vpow2.f32 %v2854_v60  ;;  %v2858_v60 = vmul.f32 1.442695, %v2806_v6 }
 0x449   :  { %v3530_v34 = vpop.eup %3529  ;;  %v2583_v26 = vpop.permute.xlu0 %2582  ;;  %3541 = vpow2.f32 %v2506_v23  ;;  %v6652_v23 = vld [vmem:[#allocation34_spill] sm:$0xff] }
 0x44a   :  { %v3093_v17 = vmul.f32 0.6931472, %v3530_v34  ;;  %v3532_v8 = vpop.eup %3531  ;;  %3543 = vpow2.f32 %v2856_v15  ;;  %v2154_v34 = vmul.f32 1.442695, %v2102_v22 }
 0x44b   :  { %v3534_v14 = vpop.eup %3533  ;;  %v2316_v12 = vadd.f32 %v3532_v8, %v2231_v10  ;;  %3545 = vpow2.f32 %v1912_v63 }
 0x44c   :  { %v3147_v9 = vadd.f32 %v3093_v17, %v6644_v0  ;;  %v3536_v4 = vpop.eup %3535  ;;  %v6651_v0 = vld [vmem:[#allocation36_spill] sm:$0xff] }
 0x44d   :  { %v3538_v52 = vpop.eup %3537  ;;  %v2104_v53 = vsub.f32 %v6651_v0, %v5985_v24  ;;  %v2668_v54 = vadd.f32 %v2583_v26, %v2316_v12  ;;  %v2103_v24 = vsub.f32 %v6652_v23, %v5956_v44  ;;  %v2456_v15 = vsub.f32 %v6651_v0, %v5968_v16 }
 0x44e   :  { %v3179_v49 = vadd.f32 %v3147_v9, %v3051_v25  ;;  %2246 = vrot.lane.b32.xlu2 %v3536_v4, %s3784_s17  ;;  %2598 = vrot.lane.b32.xlu1 %v3534_v14, %s3783_s16  ;;  %v3540_v17 = vpop.eup %3539  ;;  %v2455_v25 = vsub.f32 %v6652_v23, %v5953_v5 }
 0x44f   :  { %2600 = vrot.lane.b32.xlu0 %v3538_v52, %s3783_s16  ;;  %v2158_v55 = vmul.f32 1.442695, %v2104_v53  ;;  %v3542_v8 = vpop.eup %3541  ;;  %v2156_v22 = vmul.f32 1.442695, %v2103_v24  ;;  %v2510_v53 = vmul.f32 1.442695, %v2456_v15 }
 0x450   :  { %3212 = vst.msk [vmem:[#allocation2 + $0x48] sm:$0xff] %vm75_vm0, %v3179_v49  ;;  %v2937_v36 = vpop.permute.xlu2 %2936  ;;  %v6101_v10 = vpop.permute.xlu1 %2742  ;;  %v2508_v4 = vmul.f32 1.442695, %v2455_v25 }
 0x451   :  { %v2935_v11 = vpop.permute.xlu0 %2934  ;;  %v3544_v14 = vpop.eup %3543 }
 0x452   :  { %v3020_v19 = vadd.f32 %v2935_v11, %v2668_v54  ;;  %v3546_v26 = vpop.eup %3545  ;;  %v3052_v54 = vld [vmem:[#allocation2 + $0x50] sm:$0xff] }
 0x454   :  { %3547 = vlog2.f32 %v3020_v19 }
 0x455   :  { %3549 = vpow2.f32 %v2154_v34 }
 0x456   :  { %2602 = vrot.lane.b32.xlu2 %v3542_v8, %s3783_s16  ;;  %2950 = vrot.lane.b32.xlu1 %v3540_v17, %s3782_s0  ;;  %3551 = vpow2.f32 %v2858_v60  ;;  %v2807_v60 = vsub.f32 %v6652_v23, %v5941_v33  ;;  %v6653_v17 = vld [vmem:[#allocation38_spill] sm:$0xff] }
 0x457   :  { %2952 = vrot.lane.b32.xlu0 %v3544_v14, %s3782_s0  ;;  %3553 = vpow2.f32 %v2158_v55 }
 0x458   :  { %v6112_v9 = vpop.permute.xlu2 %2234  ;;  %v2233_v5 = vpop.permute.xlu1 %2232  ;;  %3555 = vpow2.f32 %v2508_v4  ;;  %v2860_v25 = vmul.f32 1.442695, %v2807_v60 }
 0x459   :  { %v6114_v63 = vpop.permute.xlu0 %2390  ;;  %v2317_v52 = vadd.f32 %v3546_v26, %v2233_v5  ;;  %3557 = vpow2.f32 %v2156_v22  ;;  %v6654_v5 = vld [vmem:[#allocation49_spill] sm:$0xff]  ;;  %v2809_v22 = vsub.f32 %v6653_v17, %v6017_v2 }
 0x45a   :  { %v3548_v44 = vpop.eup %3547  ;;  %v1870_v4 = vsub.f32 %v6625_v47, %v6654_v5  ;;  %v6655_v47 = vld [vmem:[#allocation42_spill] sm:$0xff] }
 0x45b   :  { %v3095_v12 = vmul.f32 0.6931472, %v3548_v44  ;;  %v2669_v49 = vadd.f32 %v2585_v28, %v2317_v52  ;;  %v3550_v6 = vpop.eup %3549  ;;  %v2457_v28 = vsub.f32 %v6653_v17, %v6030_v41  ;;  %v2864_v2 = vmul.f32 1.442695, %v2809_v22 }
 0x45c   :  { %v3552_v11 = vpop.eup %3551 }
 0x45d   :  { %v3148_v34 = vadd.f32 %v3095_v12, %v6647_v1  ;;  %v3021_v16 = vadd.f32 %v2937_v36, %v2669_v49  ;;  %v3554_v19 = vpop.eup %3553  ;;  %v2808_v1 = vsub.f32 %v6651_v0, %v5987_v30  ;;  %v2512_v24 = vmul.f32 1.442695, %v2457_v28  ;;  %v3053_v12 = vld [vmem:[#allocation2 + $0x58] sm:$0xff] }
 0x45e   :  { %2250 = vrot.lane.b32.xlu1 %v3550_v6, %s3784_s17  ;;  %2954 = vrot.lane.b32.xlu2 %v3552_v11, %s3782_s0  ;;  %v3556_v14 = vpop.eup %3555  ;;  %v2105_v30 = vsub.f32 %v6653_v17, %v5983_v18  ;;  %v2107_v49 = vsub.f32 %v6655_v47, %v6086_v58 }
 0x45f   :  { %v3180_v55 = vadd.f32 %v3148_v34, %v3052_v54  ;;  %3559 = vlog2.f32 %v3021_v16  ;;  %2254 = vrot.lane.b32.xlu0 %v3554_v19, %s3784_s17  ;;  %v3558_v41 = vpop.eup %3557  ;;  %v2862_v26 = vmul.f32 1.442695, %v2808_v1  ;;  %v1914_v54 = vmul.f32 1.442695, %v1870_v4  ;;  %v6657_v1 = vld [vmem:[#allocation40_spill] sm:$0xff] }
 0x460   :  { %3561 = vpow2.f32 %v2510_v53  ;;  %v6126_v36 = vpop.permute.xlu2 %2394  ;;  %v6128_v8 = vpop.permute.xlu1 %2392  ;;  %v2160_v34 = vmul.f32 1.442695, %v2105_v30  ;;  %v2164_v60 = vmul.f32 1.442695, %v2107_v49  ;;  %v2810_v49 = vsub.f32 %v6657_v1, %v6028_v13 }
 0x461   :  { %3213 = vst.msk [vmem:[#allocation2 + $0x50] sm:$0xff] %vm75_vm0, %v3180_v55  ;;  %v6131_v33 = vpop.permute.xlu0 %2040  ;;  %3563 = vpow2.f32 %v2860_v25  ;;  %v6656_v55 = vld [vmem:[#allocation52_spill] sm:$0xff]  ;;  %v2458_v25 = vsub.f32 %v6657_v1, %v6042_v38 }
 0x462   :  { %3565 = vpow2.f32 %v2512_v24  ;;  %v1871_v58 = vsub.f32 %v6626_v20, %v6656_v55  ;;  %v2459_v24 = vsub.f32 %v6655_v47, %v6058_v39  ;;  %v2460_v39 = vsub.f32 %v6619_v50, %v6114_v63 }
 0x463   :  { %3567 = vpow2.f32 %v2862_v26  ;;  %v2514_v38 = vmul.f32 1.442695, %v2458_v25 }
 0x464   :  { %3569 = vpow2.f32 %v1914_v54  ;;  %v1916_v26 = vmul.f32 1.442695, %v1871_v58  ;;  %v2518_v58 = vmul.f32 1.442695, %v2460_v39 }
 0x465   :  { %v3560_v15 = vpop.eup %3559  ;;  %3571 = vpow2.f32 %v2160_v34 }
 0x466   :  { %v3562_v52 = vpop.eup %3561  ;;  %v3097_v44 = vmul.f32 0.6931472, %v3560_v15  ;;  %2252 = vrot.lane.b32.xlu2 %v3558_v41, %s3784_s17  ;;  %2604 = vrot.lane.b32.xlu1 %v3556_v14, %s3783_s16  ;;  %3573 = vpow2.f32 %v2864_v2  ;;  %v2106_v14 = vsub.f32 %v6657_v1, %v6045_v42  ;;  %v2866_v2 = vmul.f32 1.442695, %v2810_v49 }
 0x467   :  { %2606 = vrot.lane.b32.xlu0 %v3562_v52, %s3783_s16  ;;  %v3564_v19 = vpop.eup %3563  ;;  %3575 = vpow2.f32 %v2164_v60 }
 0x468   :  { %v3149_v6 = vadd.f32 %v3097_v44, %v6650_v62  ;;  %v6145_v53 = vpop.permute.xlu2 %2044  ;;  %v6147_v18 = vpop.permute.xlu1 %2744  ;;  %v2162_v52 = vmul.f32 1.442695, %v2106_v14  ;;  %v2516_v44 = vmul.f32 1.442695, %v2459_v24  ;;  %3577 = vpow2.f32 %v1916_v26 }
 0x469   :  { %v6149_v11 = vpop.permute.xlu0 %2746  ;;  %v3566_v28 = vpop.eup %3565  ;;  %3579 = vpow2.f32 %v2514_v38  ;;  %v2108_v24 = vsub.f32 %v6619_v50, %v6075_v48 }
 0x46a   :  { %v3181_v16 = vadd.f32 %v3149_v6, %v3053_v12  ;;  %v3568_v62 = vpop.eup %3567  ;;  %3581 = vpow2.f32 %v2162_v52 }
 0x46b   :  { %v3570_v4 = vpop.eup %3569  ;;  %3583 = vpow2.f32 %v2516_v44 }
 0x46c   :  { %3214 = vst.msk [vmem:[#allocation2 + $0x58] sm:$0xff] %vm75_vm0, %v3181_v16  ;;  %v3572_v30 = vpop.eup %3571  ;;  %v2318_v12 = vadd.f32 %v3570_v4, %v6112_v9  ;;  %v2811_v9 = vsub.f32 %v6655_v47, %v6060_v56 }
 0x46d   :  { %v3574_v22 = vpop.eup %3573 }
 0x46e   :  { %2608 = vrot.lane.b32.xlu2 %v3566_v28, %s3783_s16  ;;  %2956 = vrot.lane.b32.xlu1 %v3564_v19, %s3782_s0  ;;  %v3576_v42 = vpop.eup %3575  ;;  %v6658_v19 = vld [vmem:[#allocation56_spill] sm:$0xff]  ;;  %v2868_v63 = vmul.f32 1.442695, %v2811_v9  ;;  %v2109_v9 = vsub.f32 %v6622_v46, %v6131_v33 }
 0x46f   :  { %2958 = vrot.lane.b32.xlu0 %v3568_v62, %s3782_s0  ;;  %v1872_v60 = vsub.f32 %v6629_v3, %v6658_v19  ;;  %v3578_v28 = vpop.eup %3577  ;;  %v2812_v3 = vsub.f32 %v6619_v50, %v6101_v10 }
 0x470   :  { %v6163_v20 = vpop.permute.xlu2 %2748  ;;  %v2587_v41 = vpop.permute.xlu1 %2586 }
 0x471   :  { %v2237_v15 = vpop.permute.xlu0 %2236  ;;  %v2670_v6 = vadd.f32 %v2587_v41, %v2318_v12  ;;  %v3580_v62 = vpop.eup %3579  ;;  %v1918_v41 = vmul.f32 1.442695, %v1872_v60  ;;  %v2870_v12 = vmul.f32 1.442695, %v2812_v3 }
 0x472   :  { %v3582_v25 = vpop.eup %3581  ;;  %v2319_v56 = vadd.f32 %v3578_v28, %v2237_v15  ;;  %v2166_v15 = vmul.f32 1.442695, %v2108_v24  ;;  %v2168_v28 = vmul.f32 1.442695, %v2109_v9  ;;  %v2111_v9 = vsub.f32 %v6628_v40, %v6145_v53 }
 0x473   :  { %v3584_v14 = vpop.eup %3583 }
 0x476   :  { %2256 = vrot.lane.b32.xlu1 %v3572_v30, %s3784_s17  ;;  %2960 = vrot.lane.b32.xlu2 %v3574_v22, %s3782_s0 }
 0x477   :  { %2260 = vrot.lane.b32.xlu0 %v3576_v42, %s3784_s17  ;;  %v3054_v42 = vld [vmem:[#allocation2 + $0x60] sm:$0xff] }
 0x478   :  { %v2591_v54 = vpop.permute.xlu2 %2590  ;;  %v2939_v34 = vpop.permute.xlu1 %2938 }
 0x479   :  { %v2589_v16 = vpop.permute.xlu0 %2588  ;;  %v3022_v13 = vadd.f32 %v2939_v34, %v2670_v6 }
 0x47a   :  { %v2671_v26 = vadd.f32 %v2589_v16, %v2319_v56  ;;  %v2461_v16 = vsub.f32 %v6622_v46, %v6128_v8 }
 0x47b   :  { %3585 = vlog2.f32 %v3022_v13 }
 0x47c   :  { %3587 = vpow2.f32 %v2866_v2  ;;  %v2462_v2 = vsub.f32 %v6624_v7, %v6126_v36 }
 0x47d   :  { %3589 = vpow2.f32 %v2518_v58 }
 0x47e   :  { %2258 = vrot.lane.b32.xlu2 %v3582_v25, %s3784_s17  ;;  %2610 = vrot.lane.b32.xlu1 %v3580_v62, %s3783_s16  ;;  %3591 = vpow2.f32 %v2868_v63  ;;  %v2520_v63 = vmul.f32 1.442695, %v2461_v16  ;;  %v2522_v56 = vmul.f32 1.442695, %v2462_v2  ;;  %v3056_v16 = vld [vmem:[#allocation2 + $0x70] sm:$0xff] }
 0x47f   :  { %2612 = vrot.lane.b32.xlu0 %v3584_v14, %s3783_s16  ;;  %3593 = vpow2.f32 %v1918_v41  ;;  %v3055_v41 = vld [vmem:[#allocation2 + $0x68] sm:$0xff] }
 0x480   :  { %v2943_v38 = vpop.permute.xlu2 %2942  ;;  %v2043_v4 = vpop.permute.xlu1 %2042 }
 0x481   :  { %v3586_v52 = vpop.eup %3585  ;;  %v2941_v30 = vpop.permute.xlu0 %2940  ;;  %v2110_v48 = vsub.f32 %v6624_v7, %v2043_v4 }
 0x482   :  { %v3099_v44 = vmul.f32 0.6931472, %v3586_v52  ;;  %v3023_v22 = vadd.f32 %v2941_v30, %v2671_v26  ;;  %v3588_v49 = vpop.eup %3587  ;;  %v2813_v52 = vsub.f32 %v6622_v46, %v6147_v18 }
 0x483   :  { %v2170_v39 = vmul.f32 1.442695, %v2110_v48  ;;  %v3590_v6 = vpop.eup %3589 }
 0x484   :  { %v3150_v10 = vadd.f32 %v3099_v44, %v6654_v5  ;;  %3595 = vlog2.f32 %v3023_v22  ;;  %v3592_v34 = vpop.eup %3591 }
 0x485   :  { %3597 = vpow2.f32 %v2166_v15  ;;  %v3594_v5 = vpop.eup %3593  ;;  %v2872_v15 = vmul.f32 1.442695, %v2813_v52 }
 0x486   :  { %v3182_v13 = vadd.f32 %v3150_v10, %v3054_v42  ;;  %2614 = vrot.lane.b32.xlu2 %v3590_v6, %s3783_s16  ;;  %2962 = vrot.lane.b32.xlu1 %v3588_v49, %s3782_s0  ;;  %3599 = vpow2.f32 %v2870_v12  ;;  %v6659_v10 = vld [vmem:[#allocation60_spill] sm:$0xff] }
 0x487   :  { %2964 = vrot.lane.b32.xlu0 %v3592_v34, %s3782_s0  ;;  %3601 = vpow2.f32 %v2170_v39  ;;  %v1873_v39 = vsub.f32 %v6640_v59, %v6659_v10  ;;  %v2815_v34 = vsub.f32 %v6628_v40, %v6163_v20  ;;  %v6660_v20 = vld [vmem:[#allocation64_spill] sm:$0xff] }
 0x488   :  { %3215 = vst.msk [vmem:[#allocation2 + $0x60] sm:$0xff] %vm75_vm0, %v3182_v13  ;;  %v6196_v33 = vpop.permute.xlu2 %2240  ;;  %v2239_v60 = vpop.permute.xlu1 %2238  ;;  %3603 = vpow2.f32 %v2168_v28 }
 0x489   :  { %v2397_v8 = vpop.permute.xlu0 %2396  ;;  %v2320_v58 = vadd.f32 %v3594_v5, %v2239_v60  ;;  %3605 = vpow2.f32 %v2520_v63  ;;  %v1920_v53 = vmul.f32 1.442695, %v1873_v39  ;;  %v2172_v60 = vmul.f32 1.442695, %v2111_v9 }
 0x48a   :  { %v3596_v62 = vpop.eup %3595  ;;  %v1874_v63 = vsub.f32 %v6642_v61, %v6660_v20 }
 0x48b   :  { %v3101_v25 = vmul.f32 0.6931472, %v3596_v62  ;;  %v2672_v14 = vadd.f32 %v2591_v54, %v2320_v58  ;;  %v3598_v24 = vpop.eup %3597  ;;  %v2463_v54 = vsub.f32 %v6628_v40, %v2397_v8  ;;  %v2876_v8 = vmul.f32 1.442695, %v2815_v34 }
 0x48c   :  { %v3600_v3 = vpop.eup %3599 }
 0x48d   :  { %v3151_v36 = vadd.f32 %v3101_v25, %v6656_v55  ;;  %v3024_v26 = vadd.f32 %v2943_v38, %v2672_v14  ;;  %v3602_v4 = vpop.eup %3601  ;;  %v2814_v55 = vsub.f32 %v6624_v7, %v6149_v11  ;;  %v2524_v22 = vmul.f32 1.442695, %v2463_v54 }
 0x48e   :  { %2262 = vrot.lane.b32.xlu1 %v3598_v24, %s3784_s17  ;;  %2966 = vrot.lane.b32.xlu2 %v3600_v3, %s3782_s0  ;;  %v3604_v44 = vpop.eup %3603 }
 0x48f   :  { %v3183_v30 = vadd.f32 %v3151_v36, %v3055_v41  ;;  %3607 = vlog2.f32 %v3024_v26  ;;  %2266 = vrot.lane.b32.xlu0 %v3602_v4, %s3784_s17  ;;  %v3606_v12 = vpop.eup %3605  ;;  %v2874_v42 = vmul.f32 1.442695, %v2814_v55  ;;  %v1922_v41 = vmul.f32 1.442695, %v1874_v63  ;;  %v6661_v55 = vld [vmem:[#allocation63_spill] sm:$0xff]  ;;  %v6663_v63 = vld [vmem:[#allocation66_spill] sm:$0xff] }
 0x490   :  { %3609 = vpow2.f32 %v2522_v56  ;;  %v6207_v38 = vpop.permute.xlu2 %2400  ;;  %v2399_v48 = vpop.permute.xlu1 %2398 }
 0x491   :  { %3216 = vst.msk [vmem:[#allocation2 + $0x68] sm:$0xff] %vm75_vm0, %v3183_v30  ;;  %v2047_v18 = vpop.permute.xlu0 %2046  ;;  %3611 = vpow2.f32 %v2872_v15  ;;  %v2464_v14 = vsub.f32 %v6633_v51, %v2399_v48 }
 0x492   :  { %3613 = vpow2.f32 %v2524_v22 }
 0x493   :  { %3615 = vpow2.f32 %v2874_v42  ;;  %v2526_v26 = vmul.f32 1.442695, %v2464_v14 }
 0x494   :  { %3617 = vpow2.f32 %v1920_v53 }
 0x495   :  { %v3608_v49 = vpop.eup %3607  ;;  %3619 = vpow2.f32 %v2172_v60 }
 0x496   :  { %v3610_v6 = vpop.eup %3609  ;;  %v3103_v11 = vmul.f32 0.6931472, %v3608_v49  ;;  %2264 = vrot.lane.b32.xlu2 %v3604_v44, %s3784_s17  ;;  %2616 = vrot.lane.b32.xlu1 %v3606_v12, %s3783_s16  ;;  %3621 = vpow2.f32 %v2876_v8  ;;  %v6662_v49 = vld [vmem:[#allocation65_spill] sm:$0xff] }
 0x497   :  { %2618 = vrot.lane.b32.xlu0 %v3610_v6, %s3783_s16  ;;  %v3612_v58 = vpop.eup %3611  ;;  %3623 = vpow2.f32 %v1922_v41  ;;  %v3057_v8 = vld [vmem:[#allocation2 + $0x78] sm:$0xff]  ;;  %v2465_v41 = vsub.f32 %v6661_v55, %v6207_v38 }
 0x498   :  { %v3152_v59 = vadd.f32 %v3103_v11, %v6658_v19  ;;  %v6220_v13 = vpop.permute.xlu2 %2596  ;;  %v2751_v5 = vpop.permute.xlu1 %2750  ;;  %v2112_v19 = vsub.f32 %v6633_v51, %v2047_v18 }
 0x499   :  { %v2753_v2 = vpop.permute.xlu0 %2752  ;;  %v3614_v62 = vpop.eup %3613  ;;  %v2816_v54 = vsub.f32 %v6633_v51, %v2751_v5 }
 0x49a   :  { %v3184_v28 = vadd.f32 %v3152_v59, %v3056_v16  ;;  %v3616_v25 = vpop.eup %3615  ;;  %v2174_v36 = vmul.f32 1.442695, %v2112_v19  ;;  %v2817_v48 = vsub.f32 %v6661_v55, %v2753_v2 }
 0x49b   :  { %v3618_v61 = vpop.eup %3617  ;;  %v2878_v12 = vmul.f32 1.442695, %v2816_v54 }
 0x49c   :  { %3217 = vst.msk [vmem:[#allocation2 + $0x70] sm:$0xff] %vm75_vm0, %v3184_v28  ;;  %v3620_v4 = vpop.eup %3619  ;;  %v2321_v30 = vadd.f32 %v3618_v61, %v6196_v33  ;;  %3625 = vpow2.f32 %v2174_v36  ;;  %v1875_v33 = vsub.f32 %v6645_v45, %v6662_v49  ;;  %v2880_v6 = vmul.f32 1.442695, %v2817_v48  ;;  %v6664_v36 = vld [vmem:[#allocation67_spill] sm:$0xff] }
 0x49d   :  { %v3622_v52 = vpop.eup %3621  ;;  %3627 = vpow2.f32 %v2526_v26  ;;  %v1877_v61 = vsub.f32 %v6646_v31, %v6664_v36 }
 0x49e   :  { %2620 = vrot.lane.b32.xlu2 %v3614_v62, %s3783_s16  ;;  %2968 = vrot.lane.b32.xlu1 %v3612_v58, %s3782_s0  ;;  %v3624_v39 = vpop.eup %3623  ;;  %v1924_v16 = vmul.f32 1.442695, %v1875_v33 }
 0x49f   :  { %2970 = vrot.lane.b32.xlu0 %v3616_v25, %s3782_s0  ;;  %v1876_v25 = vsub.f32 %v6648_v35, %v6663_v63  ;;  %v1928_v48 = vmul.f32 1.442695, %v1877_v61 }
 0x4a0   :  { %v6230_v24 = vpop.permute.xlu2 %2948  ;;  %v2593_v56 = vpop.permute.xlu1 %2592 }
 0x4a1   :  { %v2243_v3 = vpop.permute.xlu0 %2242  ;;  %v2673_v18 = vadd.f32 %v2593_v56, %v2321_v30  ;;  %v1926_v35 = vmul.f32 1.442695, %v1876_v25 }
 0x4a2   :  { %v3626_v9 = vpop.eup %3625  ;;  %v2322_v34 = vadd.f32 %v3624_v39, %v2243_v3 }
 0x4a3   :  { %v3628_v11 = vpop.eup %3627 }
 0x4a6   :  { %2972 = vrot.lane.b32.xlu2 %v3622_v52, %s3782_s0  ;;  %2268 = vrot.lane.b32.xlu1 %v3620_v4, %s3784_s17  ;;  %v2528_v4 = vmul.f32 1.442695, %v2465_v41  ;;  %v6667_v41 = vld [vmem:[#allocation54_spill] sm:$0xff] }
 0x4a8   :  { %v2945_v15 = vpop.permute.xlu1 %2944  ;;  %v6237_v42 = vpop.permute.xlu2 %2246 }
 0x4a9   :  { %v2595_v44 = vpop.permute.xlu0 %2594  ;;  %v3025_v22 = vadd.f32 %v2945_v15, %v2673_v18 }
 0x4aa   :  { %v2674_v59 = vadd.f32 %v2595_v44, %v2322_v34  ;;  %v3058_v44 = vld [vmem:[#allocation2 + $0x80] sm:$0xff] }
 0x4ab   :  { %3629 = vlog2.f32 %v3025_v22 }
 0x4ac   :  { %3631 = vpow2.f32 %v2878_v12 }
 0x4ad   :  { %3633 = vpow2.f32 %v2880_v6 }
 0x4ae   :  { %2270 = vrot.lane.b32.xlu2 %v3626_v9, %s3784_s17  ;;  %2622 = vrot.lane.b32.xlu1 %v3628_v11, %s3783_s16  ;;  %3635 = vpow2.f32 %v1924_v16  ;;  %v6665_v11 = vld [vmem:[#allocation46_spill] sm:$0xff] }
 0x4b0   :  { %v2049_v5 = vpop.permute.xlu1 %2048  ;;  %v6247_v14 = vpop.permute.xlu2 %2602 }
 0x4b1   :  { %v3630_v53 = vpop.eup %3629  ;;  %v2947_v2 = vpop.permute.xlu0 %2946  ;;  %v2113_v60 = vsub.f32 %v6661_v55, %v2049_v5 }
 0x4b2   :  { %v3105_v45 = vmul.f32 0.6931472, %v3630_v53  ;;  %v3026_v28 = vadd.f32 %v2947_v2, %v2674_v59  ;;  %v3632_v62 = vpop.eup %3631  ;;  %v3059_v2 = vld [vmem:[#allocation2 + $0x88] sm:$0xff] }
 0x4b3   :  { %v2176_v58 = vmul.f32 1.442695, %v2113_v60  ;;  %v3634_v56 = vpop.eup %3633 }
 0x4b4   :  { %v3153_v19 = vadd.f32 %v3105_v45, %v6659_v10  ;;  %3637 = vlog2.f32 %v3026_v28  ;;  %v3636_v26 = vpop.eup %3635 }
 0x4b5   :  { %3639 = vpow2.f32 %v2176_v58 }
 0x4b6   :  { %v3185_v3 = vadd.f32 %v3153_v19, %v3057_v8  ;;  %2976 = vrot.lane.b32.xlu2 %v3634_v56, %s3782_s0  ;;  %2974 = vrot.lane.b32.xlu1 %v3632_v62, %s3782_s0  ;;  %3641 = vpow2.f32 %v1926_v35 }
 0x4b7   :  { %3643 = vpow2.f32 %v2528_v4 }
 0x4b8   :  { %3218 = vst.msk [vmem:[#allocation2 + $0x78] sm:$0xff] %vm75_vm0, %v3185_v3  ;;  %v2245_v10 = vpop.permute.xlu1 %2244  ;;  %3645 = vpow2.f32 %v1928_v48  ;;  %v2955_v12 = vpop.permute.xlu2 %2954  ;;  %v1880_v3 = vsub.f32 %v6651_v0, %v6667_v41 }
 0x4b9   :  { %v2249_v52 = vpop.permute.xlu0 %2248  ;;  %v2323_v30 = vadd.f32 %v3636_v26, %v2245_v10 }
 0x4ba   :  { %v3638_v54 = vpop.eup %3637  ;;  %v1934_v48 = vmul.f32 1.442695, %v1880_v3 }
 0x4bb   :  { %v3640_v38 = vpop.eup %3639  ;;  %v3107_v18 = vmul.f32 0.6931472, %v3638_v54  ;;  %v2675_v15 = vadd.f32 %v6220_v13, %v2323_v30  ;;  %v1878_v13 = vsub.f32 %v6649_v43, %v6665_v11 }
 0x4bc   :  { %2272 = vrot.lane.b32.xlu0 %v3640_v38, %s3784_s17  ;;  %v3642_v9 = vpop.eup %3641 }
 0x4bd   :  { %v3154_v31 = vadd.f32 %v3107_v18, %v6660_v20  ;;  %v3027_v22 = vadd.f32 %v6230_v24, %v2675_v15  ;;  %v3644_v34 = vpop.eup %3643  ;;  %v2324_v20 = vadd.f32 %v3642_v9, %v6237_v42  ;;  %v1930_v53 = vmul.f32 1.442695, %v1878_v13  ;;  %v6666_v42 = vld [vmem:[#allocation48_spill] sm:$0xff] }
 0x4be   :  { %v3646_v16 = vpop.eup %3645  ;;  %v1879_v56 = vsub.f32 %v6652_v23, %v6666_v42  ;;  %v3060_v18 = vld [vmem:[#allocation2 + $0x90] sm:$0xff] }
 0x4bf   :  { %v3186_v33 = vadd.f32 %v3154_v31, %v3058_v44  ;;  %3647 = vlog2.f32 %v3027_v22  ;;  %v2325_v24 = vadd.f32 %v3646_v16, %v2249_v52  ;;  %v3061_v44 = vld [vmem:[#allocation2 + $0x98] sm:$0xff]  ;;  %v6668_v9 = vld [vmem:[#allocation32_spill] sm:$0xff] }
 0x4c0   :  { %v2599_v39 = vpop.permute.xlu1 %2598  ;;  %v2253_v8 = vpop.permute.xlu2 %2252  ;;  %3649 = vpow2.f32 %v1930_v53  ;;  %v1932_v35 = vmul.f32 1.442695, %v1879_v56 }
 0x4c1   :  { %3219 = vst.msk [vmem:[#allocation2 + $0x80] sm:$0xff] %vm75_vm0, %v3186_v33  ;;  %v2601_v6 = vpop.permute.xlu0 %2600  ;;  %v2676_v60 = vadd.f32 %v2599_v39, %v2324_v20 }
 0x4c2   :  { %v2677_v28 = vadd.f32 %v2601_v6, %v2325_v24  ;;  %v3062_v24 = vld [vmem:[#allocation2 + $0xa0] sm:$0xff] }
 0x4c4   :  { %2624 = vrot.lane.b32.xlu0 %v3644_v34, %s3783_s16 }
 0x4c5   :  { %v3648_v59 = vpop.eup %3647 }
 0x4c6   :  { %v3109_v5 = vmul.f32 0.6931472, %v3648_v59  ;;  %v3650_v61 = vpop.eup %3649 }
 0x4c8   :  { %v3155_v45 = vadd.f32 %v3109_v5, %v6662_v49  ;;  %v2951_v58 = vpop.permute.xlu1 %2950  ;;  %v2609_v30 = vpop.permute.xlu2 %2608 }
 0x4c9   :  { %v2953_v62 = vpop.permute.xlu0 %2952  ;;  %v3028_v25 = vadd.f32 %v2951_v58, %v2676_v60 }
 0x4ca   :  { %v3187_v43 = vadd.f32 %v3155_v45, %v3059_v2  ;;  %v3029_v19 = vadd.f32 %v2953_v62, %v2677_v28 }
 0x4cb   :  { %3651 = vlog2.f32 %v3028_v25  ;;  %v1883_v25 = vsub.f32 %v6655_v47, %v5837_v32 }
 0x4cc   :  { %3220 = vst.msk [vmem:[#allocation2 + $0x88] sm:$0xff] %vm75_vm0, %v3187_v43  ;;  %3653 = vlog2.f32 %v3029_v19 }
 0x4cd   :  { %3655 = vpow2.f32 %v1932_v35  ;;  %v1940_v35 = vmul.f32 1.442695, %v1883_v25 }
 0x4ce   :  { %3657 = vpow2.f32 %v1934_v48 }
 0x4d0   :  { %v2251_v49 = vpop.permute.xlu1 %2250 }
 0x4d1   :  { %v3652_v26 = vpop.eup %3651  ;;  %v2255_v10 = vpop.permute.xlu0 %2254  ;;  %v2326_v4 = vadd.f32 %v3650_v61, %v2251_v49 }
 0x4d2   :  { %v3654_v52 = vpop.eup %3653  ;;  %v3111_v54 = vmul.f32 0.6931472, %v3652_v26 }
 0x4d3   :  { %v3113_v38 = vmul.f32 0.6931472, %v3654_v52  ;;  %v2678_v15 = vadd.f32 %v6247_v14, %v2326_v4  ;;  %v1881_v14 = vsub.f32 %v6653_v17, %v6668_v9  ;;  %v3656_v13 = vpop.eup %3655  ;;  %v1882_v17 = vsub.f32 %v6657_v1, %v5820_v27  ;;  %v3063_v4 = vld [vmem:[#allocation2 + $0xa8] sm:$0xff] }
 0x4d4   :  { %v3156_v23 = vadd.f32 %v3111_v54, %v6663_v63  ;;  %v3658_v34 = vpop.eup %3657  ;;  %v2961_v63 = vpop.permute.xlu2 %2960  ;;  %v2327_v59 = vadd.f32 %v3656_v13, %v2253_v8  ;;  %v3064_v54 = vld [vmem:[#allocation2 + $0xb0] sm:$0xff] }
 0x4d5   :  { %v3157_v0 = vadd.f32 %v3113_v38, %v6664_v36  ;;  %v3030_v31 = vadd.f32 %v2955_v12, %v2678_v15  ;;  %v2328_v36 = vadd.f32 %v3658_v34, %v2255_v10  ;;  %v1936_v20 = vmul.f32 1.442695, %v1881_v14 }
 0x4d6   :  { %v3188_v22 = vadd.f32 %v3156_v23, %v3060_v18  ;;  %v1938_v56 = vmul.f32 1.442695, %v1882_v17 }
 0x4d7   :  { %v3189_v33 = vadd.f32 %v3157_v0, %v3061_v44  ;;  %3659 = vlog2.f32 %v3030_v31 }
 0x4d8   :  { %3221 = vst.msk [vmem:[#allocation2 + $0x90] sm:$0xff] %vm75_vm0, %v3188_v22  ;;  %v2605_v39 = vpop.permute.xlu1 %2604  ;;  %3661 = vpow2.f32 %v1936_v20 }
 0x4d9   :  { %3222 = vst.msk [vmem:[#allocation2 + $0x98] sm:$0xff] %vm75_vm0, %v3189_v33  ;;  %v2607_v6 = vpop.permute.xlu0 %2606  ;;  %v2679_v5 = vadd.f32 %v2605_v39, %v2327_v59 }
 0x4da   :  { %v2680_v2 = vadd.f32 %v2607_v6, %v2328_v36  ;;  %v3065_v6 = vld [vmem:[#allocation2 + $0xb8] sm:$0xff] }
 0x4dc   :  { %v2259_v8 = vpop.permute.xlu2 %2258 }
 0x4dd   :  { %v3660_v16 = vpop.eup %3659 }
 0x4de   :  { %v3115_v12 = vmul.f32 0.6931472, %v3660_v16  ;;  %v3662_v43 = vpop.eup %3661 }
 0x4e0   :  { %v3158_v53 = vadd.f32 %v3115_v12, %v6665_v11  ;;  %v2957_v60 = vpop.permute.xlu1 %2956 }
 0x4e1   :  { %v2959_v45 = vpop.permute.xlu0 %2958  ;;  %v3031_v28 = vadd.f32 %v2957_v60, %v2679_v5 }
 0x4e2   :  { %v3190_v58 = vadd.f32 %v3158_v53, %v3062_v24  ;;  %v3032_v62 = vadd.f32 %v2959_v45, %v2680_v2  ;;  %v1886_v24 = vsub.f32 %v6624_v7, %v5930_v57 }
 0x4e3   :  { %3663 = vlog2.f32 %v3031_v28 }
 0x4e4   :  { %3223 = vst.msk [vmem:[#allocation2 + $0xa0] sm:$0xff] %vm75_vm0, %v3190_v58  ;;  %3665 = vlog2.f32 %v3032_v62  ;;  %v2615_v15 = vpop.permute.xlu2 %2614  ;;  %v1946_v62 = vmul.f32 1.442695, %v1886_v24  ;;  %v3245_v24 = vld [vmem:[#allocation2 + $0x38] sm:$0xff] }
 0x4e5   :  { %3667 = vpow2.f32 %v1938_v56 }
 0x4e6   :  { %3669 = vpow2.f32 %v1940_v35  ;;  %v3240_v35 = vld [vmem:[#allocation2 + $0x10] sm:$0xff] }
 0x4e8   :  { %v2257_v11 = vpop.permute.xlu1 %2256 }
 0x4e9   :  { %v3664_v19 = vpop.eup %3663  ;;  %v2261_v3 = vpop.permute.xlu0 %2260  ;;  %v2329_v61 = vadd.f32 %v3662_v43, %v2257_v11  ;;  %v3067_v11 = vld [vmem:[#allocation2 + $0xc8] sm:$0xff] }
 0x4ea   :  { %v3666_v49 = vpop.eup %3665  ;;  %v3117_v26 = vmul.f32 0.6931472, %v3664_v19 }
 0x4eb   :  { %v3119_v10 = vmul.f32 0.6931472, %v3666_v49  ;;  %v2681_v52 = vadd.f32 %v2609_v30, %v2329_v61  ;;  %v1884_v30 = vsub.f32 %v6619_v50, %v5878_v21  ;;  %v3668_v0 = vpop.eup %3667  ;;  %v1885_v50 = vsub.f32 %v6622_v46, %v5911_v37 }
 0x4ec   :  { %v3159_v48 = vadd.f32 %v3117_v26, %v6666_v42  ;;  %v3670_v42 = vpop.eup %3669  ;;  %v2330_v22 = vadd.f32 %v3668_v0, %v2259_v8  ;;  %v2967_v36 = vpop.permute.xlu2 %2966  ;;  %v3066_v8 = vld [vmem:[#allocation2 + $0xc0] sm:$0xff] }
 0x4ed   :  { %v3160_v1 = vadd.f32 %v3119_v10, %v6667_v41  ;;  %v3033_v38 = vadd.f32 %v2961_v63, %v2681_v52  ;;  %v2331_v41 = vadd.f32 %v3670_v42, %v2261_v3  ;;  %v1942_v39 = vmul.f32 1.442695, %v1884_v30  ;;  %v3239_v3 = vld [vmem:[#allocation2 + $0x8] sm:$0xff]  ;;  %v3238_v26 = vld [vmem:[#allocation2] sm:$0xff] }
 0x4ee   :  { %v3191_v47 = vadd.f32 %v3159_v48, %v3063_v4  ;;  %v1944_v2 = vmul.f32 1.442695, %v1885_v50  ;;  %v3271_v4 = vsel %vm75_vm0, %v3239_v3, 0.0 }
 0x4ef   :  { %v3192_v18 = vadd.f32 %v3160_v1, %v3064_v54  ;;  %3671 = vlog2.f32 %v3033_v38  ;;  %v3241_v54 = vld [vmem:[#allocation2 + $0x18] sm:$0xff]  ;;  %v3270_v1 = vsel %vm75_vm0, %v3238_v26, 0.0  ;;  %v3273_v38 = vsel %vm75_vm0, %v3240_v35, 0.0 }
 0x4f0   :  { %3224 = vst.msk [vmem:[#allocation2 + $0xa8] sm:$0xff] %vm75_vm0, %v3191_v47  ;;  %v2611_v44 = vpop.permute.xlu1 %2610  ;;  %3673 = vpow2.f32 %v1942_v39 }
 0x4f1   :  { %3225 = vst.msk [vmem:[#allocation2 + $0xb0] sm:$0xff] %vm75_vm0, %v3192_v18  ;;  %v2613_v23 = vpop.permute.xlu0 %2612  ;;  %v2682_v14 = vadd.f32 %v2611_v44, %v2330_v22  ;;  %v3272_v18 = vadd.f32 %v3271_v4, %v3270_v1 }
 0x4f2   :  { %v2683_v34 = vadd.f32 %v2613_v23, %v2331_v41  ;;  %v3275_v23 = vsel %vm75_vm0, %v3241_v54, 0.0  ;;  %v3243_v41 = vld [vmem:[#allocation2 + $0x28] sm:$0xff] }
 0x4f3   :  { %v3274_v22 = vadd.f32 %v3273_v38, %v3272_v18 }
 0x4f4   :  { %v2265_v43 = vpop.permute.xlu2 %2264 }
 0x4f5   :  { %v3672_v31 = vpop.eup %3671 }
 0x4f6   :  { %v3121_v33 = vmul.f32 0.6931472, %v3672_v31  ;;  %v3674_v5 = vpop.eup %3673 }
 0x4f8   :  { %v3161_v13 = vadd.f32 %v3121_v33, %v6668_v9  ;;  %v2963_v63 = vpop.permute.xlu1 %2962 }
 0x4f9   :  { %v2965_v16 = vpop.permute.xlu0 %2964  ;;  %v3034_v59 = vadd.f32 %v2963_v63, %v2682_v14  ;;  %v3244_v63 = vld [vmem:[#allocation2 + $0x30] sm:$0xff] }
 0x4fa   :  { %v3193_v12 = vadd.f32 %v3161_v13, %v3065_v6  ;;  %v3035_v20 = vadd.f32 %v2965_v16, %v2683_v34  ;;  %v3276_v34 = vadd.f32 %v3275_v23, %v3274_v22 }
 0x4fb   :  { %3675 = vlog2.f32 %v3034_v59 }
 0x4fc   :  { %3226 = vst.msk [vmem:[#allocation2 + $0xb8] sm:$0xff] %vm75_vm0, %v3193_v12  ;;  %3677 = vlog2.f32 %v3035_v20  ;;  %v2621_v30 = vpop.permute.xlu2 %2620 }
 0x4fd   :  { %3679 = vpow2.f32 %v1944_v2  ;;  %v6670_v2 = vld [vmem:[#allocation17_spill] sm:$0xff] }
 0x4fe   :  { %3681 = vpow2.f32 %v1946_v62 }
 0x500   :  { %v2263_v9 = vpop.permute.xlu1 %2262 }
 0x501   :  { %v3676_v53 = vpop.eup %3675  ;;  %v2267_v60 = vpop.permute.xlu0 %2266  ;;  %v2332_v45 = vadd.f32 %v3674_v5, %v2263_v9  ;;  %v3281_v5 = vsel %vm75_vm0, %v3244_v63, 0.0  ;;  %v3246_v9 = vld [vmem:[#allocation2 + $0x40] sm:$0xff] }
 0x502   :  { %v3678_v28 = vpop.eup %3677  ;;  %v3123_v58 = vmul.f32 0.6931472, %v3676_v53  ;;  %v3283_v53 = vsel %vm75_vm0, %v3245_v24, 0.0 }
 0x503   :  { %v3125_v17 = vmul.f32 0.6931472, %v3678_v28  ;;  %v2684_v25 = vadd.f32 %v2615_v15, %v2332_v45  ;;  %v3242_v15 = vld [vmem:[#allocation2 + $0x20] sm:$0xff]  ;;  %v3247_v28 = vld [vmem:[#allocation2 + $0x48] sm:$0xff] }
 0x504   :  { %v3162_v19 = vadd.f32 %v3123_v58, %v5820_v27  ;;  %v6669_v27 = vld [vmem:[#allocation59_spill] sm:$0xff]  ;;  %v3277_v39 = vsel %vm75_vm0, %v3242_v15, 0.0  ;;  %v2973_v62 = vpop.permute.xlu2 %2972 }
 0x505   :  { %v3163_v46 = vadd.f32 %v3125_v17, %v5837_v32  ;;  %v3036_v7 = vadd.f32 %v2967_v36, %v2684_v25  ;;  %v1887_v52 = vsub.f32 %v6628_v40, %v6669_v27  ;;  %v3680_v32 = vpop.eup %3679  ;;  %v3068_v40 = vld [vmem:[#allocation2 + $0xd0] sm:$0xff]  ;;  %v3279_v36 = vsel %vm75_vm0, %v3243_v41, 0.0  ;;  %v3251_v15 = vld [vmem:[#allocation2 + $0x68] sm:$0xff] }
 0x506   :  { %v3194_v56 = vadd.f32 %v3162_v19, %v3066_v8  ;;  %v3682_v48 = vpop.eup %3681  ;;  %v2333_v44 = vadd.f32 %v3680_v32, %v2265_v43  ;;  %v3278_v50 = vadd.f32 %v3277_v39, %v3276_v34  ;;  %v3285_v8 = vsel %vm75_vm0, %v3246_v9, 0.0 }
 0x507   :  { %v3195_v61 = vadd.f32 %v3163_v46, %v3067_v11  ;;  %3683 = vlog2.f32 %v3036_v7  ;;  %v2334_v0 = vadd.f32 %v3682_v48, %v2267_v60  ;;  %v1948_v31 = vmul.f32 1.442695, %v1887_v52  ;;  %v3248_v11 = vld [vmem:[#allocation2 + $0x50] sm:$0xff]  ;;  %v3250_v48 = vld [vmem:[#allocation2 + $0x60] sm:$0xff] }
 0x508   :  { %3227 = vst.msk [vmem:[#allocation2 + $0xc0] sm:$0xff] %vm75_vm0, %v3194_v56  ;;  %v2617_v49 = vpop.permute.xlu1 %2616  ;;  %v1888_v60 = vsub.f32 %v6633_v51, %v6670_v2  ;;  %v3287_v7 = vsel %vm75_vm0, %v3247_v28, 0.0  ;;  %v3249_v51 = vld [vmem:[#allocation2 + $0x58] sm:$0xff]  ;;  %v3289_v52 = vsel %vm75_vm0, %v3248_v11, 0.0  ;;  %v1889_v34 = vsub.f32 %v6661_v55, %v5786_v29 }
 0x509   :  { %3228 = vst.msk [vmem:[#allocation2 + $0xc8] sm:$0xff] %vm75_vm0, %v3195_v61  ;;  %v2619_v10 = vpop.permute.xlu0 %2618  ;;  %v2685_v33 = vadd.f32 %v2617_v49, %v2333_v44  ;;  %3685 = vpow2.f32 %v1948_v31  ;;  %v3069_v49 = vld [vmem:[#allocation2 + $0xd8] sm:$0xff] }
 0x50a   :  { %v2686_v14 = vadd.f32 %v2619_v10, %v2334_v0  ;;  %v1950_v56 = vmul.f32 1.442695, %v1888_v60  ;;  %v3070_v10 = vld [vmem:[#allocation2 + $0xe0] sm:$0xff]  ;;  %v3253_v31 = vld [vmem:[#allocation2 + $0x78] sm:$0xff]  ;;  %v1952_v60 = vmul.f32 1.442695, %v1889_v34 }
 0x50b   :  { %v3299_v63 = vsel %vm75_vm0, %v3253_v31, 0.0 }
 0x50c   :  { %v2271_v0 = vpop.permute.xlu2 %2270 }
 0x50d   :  { %v3684_v47 = vpop.eup %3683 }
 0x50e   :  { %v3127_v42 = vmul.f32 0.6931472, %v3684_v47  ;;  %v3291_v47 = vsel %vm75_vm0, %v3249_v51, 0.0 }
 0x50f   :  { %v3686_v58 = vpop.eup %3685 }
 0x510   :  { %v3164_v6 = vadd.f32 %v3127_v42, %v5878_v21  ;;  %v2969_v13 = vpop.permute.xlu1 %2968  ;;  %v3280_v21 = vadd.f32 %v3279_v36, %v3278_v50  ;;  %v3295_v42 = vsel %vm75_vm0, %v3251_v15, 0.0  ;;  %v3255_v36 = vld [vmem:[#allocation2 + $0x88] sm:$0xff] }
 0x511   :  { %v2971_v16 = vpop.permute.xlu0 %2970  ;;  %v3037_v59 = vadd.f32 %v2969_v13, %v2685_v33 }
 0x512   :  { %v3196_v12 = vadd.f32 %v3164_v6, %v3068_v40  ;;  %v3038_v20 = vadd.f32 %v2971_v16, %v2686_v14  ;;  %v3282_v45 = vadd.f32 %v3281_v5, %v3280_v21  ;;  %v3254_v6 = vld [vmem:[#allocation2 + $0x80] sm:$0xff]  ;;  %v3071_v16 = vld [vmem:[#allocation2 + $0xe8] sm:$0xff]  ;;  %v3256_v21 = vld [vmem:[#allocation2 + $0x90] sm:$0xff] }
 0x513   :  { %3687 = vlog2.f32 %v3037_v59  ;;  %v3301_v24 = vsel %vm75_vm0, %v3254_v6, 0.0  ;;  %v3305_v28 = vsel %vm75_vm0, %v3256_v21, 0.0 }
 0x514   :  { %3229 = vst.msk [vmem:[#allocation2 + $0xd0] sm:$0xff] %vm75_vm0, %v3196_v12  ;;  %3689 = vlog2.f32 %v3038_v20  ;;  %v3284_v43 = vadd.f32 %v3283_v53, %v3282_v45  ;;  %v3303_v45 = vsel %vm75_vm0, %v3255_v36, 0.0 }
 0x515   :  { %3691 = vpow2.f32 %v1950_v56 }
 0x516   :  { %v3286_v35 = vadd.f32 %v3285_v8, %v3284_v43  ;;  %v3259_v43 = vld [vmem:[#allocation2 + $0xa8] sm:$0xff] }
 0x518   :  { %v2269_v17 = vpop.permute.xlu1 %2268  ;;  %v3288_v1 = vadd.f32 %v3287_v7, %v3286_v35  ;;  %v3072_v7 = vld [vmem:[#allocation2 + $0xf0] sm:$0xff] }
 0x519   :  { %v3688_v25 = vpop.eup %3687  ;;  %v2335_v19 = vadd.f32 %v3686_v58, %v2269_v17  ;;  %v3258_v17 = vld [vmem:[#allocation2 + $0xa0] sm:$0xff] }
 0x51a   :  { %v3690_v46 = vpop.eup %3689  ;;  %v3129_v3 = vmul.f32 0.6931472, %v3688_v25  ;;  %v3290_v44 = vadd.f32 %v3289_v52, %v3288_v1  ;;  %v3260_v52 = vld [vmem:[#allocation2 + $0xb0] sm:$0xff] }
 0x51b   :  { %v3131_v61 = vmul.f32 0.6931472, %v3690_v46  ;;  %v2687_v26 = vadd.f32 %v2621_v30, %v2335_v19  ;;  %v3252_v30 = vld [vmem:[#allocation2 + $0x70] sm:$0xff]  ;;  %v3692_v41 = vpop.eup %3691  ;;  %v3309_v46 = vsel %vm75_vm0, %v3258_v17, 0.0 }
 0x51c   :  { %v3165_v4 = vadd.f32 %v3129_v3, %v5911_v37  ;;  %v3293_v37 = vsel %vm75_vm0, %v3250_v48, 0.0  ;;  %v3297_v40 = vsel %vm75_vm0, %v3252_v30, 0.0  ;;  %v2336_v39 = vadd.f32 %v3692_v41, %v2271_v0  ;;  %v2977_v48 = vpop.permute.xlu2 %2976  ;;  %v3073_v41 = vld [vmem:[#allocation2 + $0xf8] sm:$0xff] }
 0x51d   :  { %v3166_v32 = vadd.f32 %v3131_v61, %v5930_v57  ;;  %v3039_v54 = vadd.f32 %v2973_v62, %v2687_v26  ;;  %v3292_v57 = vadd.f32 %v3291_v47, %v3290_v44  ;;  %v3313_v47 = vsel %vm75_vm0, %v3260_v52, 0.0 }
 0x51e   :  { %v3197_v38 = vadd.f32 %v3165_v4, %v3069_v49  ;;  %v3311_v49 = vsel %vm75_vm0, %v3259_v43, 0.0 }
 0x51f   :  { %v3198_v18 = vadd.f32 %v3166_v32, %v3070_v10  ;;  %3693 = vlog2.f32 %v3039_v54  ;;  %v3294_v22 = vadd.f32 %v3293_v37, %v3292_v57  ;;  %v3261_v32 = vld [vmem:[#allocation2 + $0xb8] sm:$0xff]  ;;  %v3264_v37 = vld [vmem:[#allocation2 + $0xd0] sm:$0xff] }
 0x520   :  { %3230 = vst.msk [vmem:[#allocation2 + $0xd8] sm:$0xff] %vm75_vm0, %v3197_v38  ;;  %v2623_v23 = vpop.permute.xlu1 %2622  ;;  %v3262_v38 = vld [vmem:[#allocation2 + $0xc0] sm:$0xff] }
 0x521   :  { %3231 = vst.msk [vmem:[#allocation2 + $0xe0] sm:$0xff] %vm75_vm0, %v3198_v18  ;;  %v3296_v14 = vadd.f32 %v3295_v42, %v3294_v22  ;;  %v2688_v59 = vadd.f32 %v2623_v23, %v2336_v39  ;;  %v3315_v18 = vsel %vm75_vm0, %v3261_v32, 0.0  ;;  %v3317_v15 = vsel %vm75_vm0, %v3262_v38, 0.0  ;;  %v3263_v23 = vld [vmem:[#allocation2 + $0xc8] sm:$0xff] }
 0x522   :  { %v3319_v31 = vsel %vm75_vm0, %v3263_v23, 0.0  ;;  %v3321_v22 = vsel %vm75_vm0, %v3264_v37, 0.0 }
 0x523   :  { %v3298_v12 = vadd.f32 %v3297_v40, %v3296_v14 }
 0x525   :  { %v3694_v33 = vpop.eup %3693  ;;  %v3300_v9 = vadd.f32 %v3299_v63, %v3298_v12 }
 0x526   :  { %v3133_v13 = vmul.f32 0.6931472, %v3694_v33 }
 0x527   :  { %v3302_v55 = vadd.f32 %v3301_v24, %v3300_v9  ;;  %v3265_v0 = vld [vmem:[#allocation2 + $0xd8] sm:$0xff] }
 0x528   :  { %v3167_v20 = vadd.f32 %v3133_v13, %v6669_v27  ;;  %v2975_v50 = vpop.permute.xlu1 %2974  ;;  %v3257_v27 = vld [vmem:[#allocation2 + $0x98] sm:$0xff]  ;;  %v3323_v39 = vsel %vm75_vm0, %v3265_v0, 0.0  ;;  %v3266_v13 = vld [vmem:[#allocation2 + $0xe0] sm:$0xff] }
 0x529   :  { %v3040_v5 = vadd.f32 %v2975_v50, %v2688_v59  ;;  %v3304_v58 = vadd.f32 %v3303_v45, %v3302_v55  ;;  %v3307_v19 = vsel %vm75_vm0, %v3257_v27, 0.0  ;;  %v3325_v59 = vsel %vm75_vm0, %v3266_v13, 0.0 }
 0x52a   :  { %v3199_v53 = vadd.f32 %v3167_v20, %v3071_v16 }
 0x52b   :  { %3695 = vlog2.f32 %v3040_v5  ;;  %v3306_v8 = vadd.f32 %v3305_v28, %v3304_v58 }
 0x52c   :  { %3232 = vst.msk [vmem:[#allocation2 + $0xe8] sm:$0xff] %vm75_vm0, %v3199_v53  ;;  %3697 = vpow2.f32 %v1952_v60 }
 0x52d   :  { %v3308_v56 = vadd.f32 %v3307_v19, %v3306_v8 }
 0x52e   :  { %v2273_v62 = vpop.permute.xlu0 %2272 }
 0x52f   :  { %v3310_v51 = vadd.f32 %v3309_v46, %v3308_v56 }
 0x531   :  { %v3696_v25 = vpop.eup %3695  ;;  %v3312_v54 = vadd.f32 %v3311_v49, %v3310_v51 }
 0x532   :  { %v3135_v11 = vmul.f32 0.6931472, %v3696_v25  ;;  %v3698_v3 = vpop.eup %3697 }
 0x533   :  { %v2337_v26 = vadd.f32 %v3698_v3, %v2273_v62  ;;  %v3267_v34 = vld [vmem:[#allocation2 + $0xe8] sm:$0xff] }
 0x534   :  { %v3168_v61 = vadd.f32 %v3135_v11, %v6670_v2  ;;  %v3314_v2 = vadd.f32 %v3313_v47, %v3312_v54  ;;  %v3327_v36 = vsel %vm75_vm0, %v3267_v34, 0.0 }
 0x536   :  { %v3200_v35 = vadd.f32 %v3168_v61, %v3072_v7  ;;  %v2625_v10 = vpop.permute.xlu0 %2624  ;;  %v3316_v44 = vadd.f32 %v3315_v18, %v3314_v2 }
 0x537   :  { %v2689_v4 = vadd.f32 %v2625_v10, %v2337_v26 }
 0x538   :  { %3233 = vst.msk [vmem:[#allocation2 + $0xf0] sm:$0xff] %vm75_vm0, %v3200_v35  ;;  %v3318_v30 = vadd.f32 %v3317_v15, %v3316_v44 }
 0x539   :  { %v3041_v1 = vadd.f32 %v2977_v48, %v2689_v4 }
 0x53a   :  { %v3320_v40 = vadd.f32 %v3319_v31, %v3318_v30 }
 0x53b   :  { %3699 = vlog2.f32 %v3041_v1 }
 0x53c   :  { %v3322_v6 = vadd.f32 %v3321_v22, %v3320_v40 }
 0x53e   :  { %v3324_v63 = vadd.f32 %v3323_v39, %v3322_v6 }
 0x53f   :  { %v3268_v16 = vld [vmem:[#allocation2 + $0xf0] sm:$0xff] }
 0x540   :  { %v3326_v12 = vadd.f32 %v3325_v59, %v3324_v63  ;;  %v3329_v20 = vsel %vm75_vm0, %v3268_v16, 0.0 }
 0x541   :  { %v3700_v57 = vpop.eup %3699 }
 0x542   :  { %v3137_v42 = vmul.f32 0.6931472, %v3700_v57  ;;  %v3328_v50 = vadd.f32 %v3327_v36, %v3326_v12 }
 0x544   :  { %v3169_v33 = vadd.f32 %v3137_v42, %v5786_v29  ;;  %v3330_v29 = vadd.f32 %v3329_v20, %v3328_v50 }
 0x546   :  { %v3201_v14 = vadd.f32 %v3169_v33, %v3073_v41 }
 0x548   :  { %3234 = vst.msk [vmem:[#allocation2 + $0xf8] sm:$0xff] %vm75_vm0, %v3201_v14 }
 0x54f   :  { %v3269_v24 = vld [vmem:[#allocation2 + $0xf8] sm:$0xff] }
 0x550   :  { %v3331_v5 = vsel %vm75_vm0, %v3269_v24, 0.0 }
 0x551   :  { %v3332_v21 = vadd.f32 %v3331_v5, %v3330_v29 }
 0x553   :  { %3333 = vadd.xlane.f32.xlu0 %v3332_v21 }
 0x5c6   :  { %v3334_v9 = vpop.xlane.xlu0 %3333 }
 0x5c7   :  { %v3335_v53 = vrot.slane %v3334_v9, 4 }
 0x5c9   :  { %v3336_v60 = vadd.f32 %v3335_v53, %v3334_v9 }
 0x5cb   :  { %v3337_v45 = vrot.slane %v3336_v60, 2 }
 0x5cd   :  { %v3338_v55 = vadd.f32 %v3337_v45, %v3336_v60 }
 0x5cf   :  { %v3339_v28 = vrot.slane %v3338_v55, 1 }
 0x5d1   :  { %v3340_v58 = vadd.f32 %v3339_v28, %v3338_v55 }
 0x5d3   :  { %3368 = vpush %v3340_v58 }
 0x604   :  { %s3369_s26 = spop %3368 }
 0x605   :  { %v3342_v62 = vstv %s3369_s26 }
 0x606   :  { %3343 = vst [vmem:[#allocation8] sm:$0xff] %v3342_v62 }
 0x607   :  { %3354 = dma.vmem_to_hbm [thread:$0]  %s3350_s25, 128, %s3352_s23, [#allocation5]  }
 0x608   :  { %3778 = dma.done.wait [#allocation5], 128  }
 0x609   :  { %3779 = vsyncadd [#allocation5], 4294967168 }
 0x60a   :  { %3359 = vsyncpa [#allocation4], 1 }
 0x60b   :  { %3360 = vsyncpa [#allocation7], 1 }
 0x60c   :  { %3361 = vsyncpa [#allocation5], 1 }

</bundles_post_ra>
